<compile_context>
chip_gen: v7x
topology: tpu7x:2x2x1
jax: 0.10.0
libtpu: 0.0.40
codegen_flags: <defaults>
</compile_context>

<pallas_src>
from functools import partial

import numpy as np
import jax
import jax.numpy as jnp
from jax.experimental import pallas as pl
from jax.experimental.pallas import tpu as pltpu


# ----------------------------------------------------------------------------- kernel

def network1_kernel(x_ref, w1_ref, b1_ref, w2_ref, b2_ref, o_ref):
    # x_ref : (H*W, B)       bf16, input pixels, batch on lanes
    # w1_ref: (4, K2, H*W)   bf16, conv1 lowered per pool-window offset
    # b1_ref: (K2, 1)        f32,  conv1 bias broadcast over pooled spatial positions
    # w2_ref: (M2, K2)       bf16, conv2 lowered over all output positions
    # b2_ref: (M2, 1)        f32
    # o_ref : (M2, B)        f32,  output (C2*H2*W2, B), batch on lanes
    x = x_ref[...]                                                           # bf16

    # conv1 for the 4 max-pool offsets: 4 accumulated MXU matmuls + running max.
    # Keeps only one (K2, B) f32 live intermediate instead of (4*K2, B).
    m = jnp.dot(w1_ref[0], x, preferred_element_type=jnp.float32)           # (K2, B)
    for off in range(1, 4):
        m = jnp.maximum(
            m, jnp.dot(w1_ref[off], x, preferred_element_type=jnp.float32))

    # bias (commutes with max) + relu, then cast for the second bf16 matmul.
    z1 = jnp.maximum(m + b1_ref[...], 0.0).astype(jnp.bfloat16)             # (K2, B)

    # conv2 (all output positions) as one MXU matmul, + bias, f32 out.
    o_ref[...] = (jnp.dot(w2_ref[...], z1, preferred_element_type=jnp.float32)
                  + b2_ref[...])


# ------------------------------------------------------------------ weight lowering (host)

def build_conv1_matrix(w1, H, W, Hp, Wp):
    """w1: (C1, 1, 5, 5) -> (4, C1*Hp*Wp, H*W).

    Block `off` (off = di*2 + dj) holds, in row (c1, r, t), the conv1 taps for pooled
    position (r, t), channel c1, evaluated at pool-window element (2r+di, 2t+dj), so a
    matmul against the flattened image gives conv1 at every pool-window element.
    """
    C1n = w1.shape[0]
    OFF, C1, R, T, KH, KW = np.meshgrid(
        np.arange(4), np.arange(C1n), np.arange(Hp), np.arange(Wp),
        np.arange(5), np.arange(5), indexing="ij")
    DI, DJ = OFF // 2, OFF % 2
    HH = 2 * R + DI + KH
    WW = 2 * T + DJ + KW
    k2 = C1n * Hp * Wp
    offs = OFF.ravel()
    rows = (C1 * (Hp * Wp) + R * Wp + T).ravel()
    cols = (HH * W + WW).ravel()
    vals = w1[C1.ravel(), 0, KH.ravel(), KW.ravel()]
    return jnp.zeros((4, k2, H * W), jnp.float32).at[offs, rows, cols].set(vals)


def build_conv2_matrix(w2, Hp, Wp, H2, W2):
    """w2: (C2, C1, 5, 5) -> (C2*H2*W2, C1*Hp*Wp)."""
    C2n, C1n = w2.shape[0], w2.shape[1]
    C2, OH, OW, C1, KH, KW = np.meshgrid(
        np.arange(C2n), np.arange(H2), np.arange(W2),
        np.arange(C1n), np.arange(5), np.arange(5), indexing="ij")
    rows = (C2 * (H2 * W2) + OH * W2 + OW).ravel()
    cols = (C1 * (Hp * Wp) + (OH + KH) * Wp + (OW + KW)).ravel()
    vals = w2[C2.ravel(), C1.ravel(), KH.ravel(), KW.ravel()]
    return jnp.zeros((C2n * H2 * W2, C1n * Hp * Wp), jnp.float32).at[rows, cols].set(vals)


# --------------------------------------------------------------------------- wrapper

@partial(jax.jit, static_argnames=("block_b",))
def network1_forward(x_nchw, w1, b1, w2, b2, *, block_b=1024):
    """x_nchw: (N,1,H,W) f32; w1:(10,1,5,5); b1:(10,); w2:(20,10,5,5); b2:(20,).

    block_b: target samples per grid step.  Default 1024 (multiple of 256 so the
    v6e/v7x MXU N-dimension is full); it is clamped down near N for small batches
    and never drops below 128.  For very large N on v5e/v7x, 1024-2048 in bf16 stays
    well inside default scoped VMEM.
    """
    N, _, H, W = x_nchw.shape
    Hp, Wp = (H - 4) // 2, (W - 4) // 2          # pooled spatial (floor, like PyTorch)
    H2, W2 = Hp - 4, Wp - 4                       # conv2 output spatial
    C2 = w2.shape[0]
    HW = H * W
    K2 = w1.shape[0] * Hp * Wp                    # conv2 input features
    M2 = C2 * H2 * W2                             # output features per sample

    # Effective batch block: <= block_b, >= 128, multiple of 128 (256-rounded vs N).
    bb = max(128, min(block_b, ((N + 255) // 256) * 256))
    bb = ((bb + 127) // 128) * 128

    # Lowered weights / biases (pure parameter layout glue, done once, fused under jit).
    w1_big = build_conv1_matrix(w1, H, W, Hp, Wp).astype(jnp.bfloat16)   # (4, K2, HW)
    w2_big = build_conv2_matrix(w2, Hp, Wp, H2, W2).astype(jnp.bfloat16)  # (M2, K2)
    b1_col = jnp.repeat(b1, Hp * Wp).reshape(K2, 1).astype(jnp.float32)
    b2_col = jnp.repeat(b2, H2 * W2).reshape(M2, 1).astype(jnp.float32)

    # Input -> lane-dense bf16 (H*W, N), batch padded to a multiple of bb.
    # TODO(synk): the (N,HW)<->(HW,N) layout glue stays in the wrapper; if the caller
    # can produce/consume (features, batch) directly, drop these transposes.
    n_pad = ((N + bb - 1) // bb) * bb
    xf = jnp.transpose(x_nchw.reshape(N, HW).astype(jnp.bfloat16), (1, 0))   # (HW, N)
    if n_pad != N:
        xf = jnp.pad(xf, ((0, 0), (0, n_pad - N)))

    grid = (n_pad // bb,)
    out = pl.pallas_call(
        network1_kernel,
        out_shape=jax.ShapeDtypeStruct((M2, n_pad), jnp.float32),
        grid_spec=pltpu.PrefetchScalarGridSpec(
            num_scalar_prefetch=0,
            grid=grid,
            in_specs=[
                pl.BlockSpec((HW, bb), lambda i: (0, i)),
                pl.BlockSpec((4, K2, HW), lambda i: (0, 0, 0)),   # resident weights
                pl.BlockSpec((K2, 1), lambda i: (0, 0)),
                pl.BlockSpec((M2, K2), lambda i: (0, 0)),
                pl.BlockSpec((M2, 1), lambda i: (0, 0)),
            ],
            out_specs=pl.BlockSpec((M2, bb), lambda i: (0, i)),
        ),
        compiler_params=pltpu.CompilerParams(
            dimension_semantics=("parallel",)),
    )(xf, w1_big, b1_col, w2_big, b2_col)                                    # (M2, n_pad)

    # Lane-dense (M2, N) -> NCHW (N, C2, H2, W2): small layout glue, fused under jit.
    return jnp.transpose(out[:, :N], (1, 0)).reshape(N, C2, H2, W2)


# -------------------------------------------------------------------------- reference

def reference_forward(x, w1, b1, w2, b2):
    """Pure-JAX reference mirroring the PyTorch forward (dropout in eval mode)."""
    dn = ("NCHW", "OIHW", "NCHW")
    hi = jax.lax.Precision.HIGHEST
    y1 = jax.lax.conv_general_dilated(x, w1, (1, 1), "VALID", dimension_numbers=dn,
                                      precision=hi) + b1.reshape(1, -1, 1, 1)
    p1 = jax.lax.reduce_window(y1, -jnp.inf, jax.lax.max,
                               (1, 1, 2, 2), (1, 1, 2, 2), "VALID")
    z1 = jnp.maximum(p1, 0.0)
    z2 = jax.lax.conv_general_dilated(z1, w2, (1, 1), "VALID", dimension_numbers=dn,
                                      precision=hi) + b2.reshape(1, -1, 1, 1)
    return z2


if __name__ == "__main__":
    key = jax.random.PRNGKey(0)
    k1, k2, k3, k4, k5 = jax.random.split(key, 5)

    # Small MNIST-like input: batch=2, 1 channel, 16x16 spatial.
    x = jax.random.normal(k1, (2, 1, 16, 16), jnp.float32)

    # Deterministic parameter init (uniform with PyTorch-like fan-in bounds).
    bound1 = 1.0 / (1 * 5 * 5) ** 0.5
    bound2 = 1.0 / (10 * 5 * 5) ** 0.5
    w1 = jax.random.uniform(k2, (10, 1, 5, 5), jnp.float32, -bound1, bound1)
    b1 = jax.random.uniform(k3, (10,), jnp.float32, -bound1, bound1)
    w2 = jax.random.uniform(k4, (20, 10, 5, 5), jnp.float32, -bound2, bound2)
    b2 = jax.random.uniform(k5, (20,), jnp.float32, -bound2, bound2)

    out = network1_forward(x, w1, b1, w2, b2)
    out = jax.block_until_ready(out)

    # Reference on bf16-quantized operands (kernel feeds the MXU bf16); accumulation
    # stays f32 on both sides, so only the z1 re-quantization differs (tiny).
    q = lambda a: a.astype(jnp.bfloat16).astype(jnp.float32)
    ref = reference_forward(q(x), q(w1), b1, q(w2), b2)

    assert out.shape == (2, 20, 2, 2), out.shape
    assert jnp.allclose(out, ref, atol=1e-2, rtol=1e-2), "mismatch vs reference"
    print("KERNEL_OK")
</pallas_src>

<mosaic_0001>
module attributes {stable_mosaic.version = 11 : i64} {
  func.func @network1_kernel(%arg0: i32, %arg1: memref<256x256xbf16, #tpu.memory_space<vmem>>, %arg2: memref<4x360x256xbf16, #tpu.memory_space<vmem>>, %arg3: memref<360x1xf32, #tpu.memory_space<vmem>>, %arg4: memref<80x360xbf16, #tpu.memory_space<vmem>>, %arg5: memref<80x1xf32, #tpu.memory_space<vmem>>, %arg6: memref<80x256xf32, #tpu.memory_space<vmem>>) attributes {dimension_semantics = [#tpu.dimension_semantics<parallel>], iteration_bounds = array<i64: 1>, scalar_prefetch = 0 : i64, scratch_operands = 0 : i64, tpu.core_type = #tpu.core_type<tc>, window_params = [{transform_indices = @transform_0, window_bounds = array<i64: 256, 256>}, {pipeline_mode = #tpu.pipeline_mode<synchronous>, transform_indices = @transform_1, window_bounds = array<i64: 4, 360, 256>}, {pipeline_mode = #tpu.pipeline_mode<synchronous>, transform_indices = @transform_2, window_bounds = array<i64: 360, 1>}, {pipeline_mode = #tpu.pipeline_mode<synchronous>, transform_indices = @transform_3, window_bounds = array<i64: 80, 360>}, {pipeline_mode = #tpu.pipeline_mode<synchronous>, transform_indices = @transform_4, window_bounds = array<i64: 80, 1>}, {transform_indices = @transform_5, window_bounds = array<i64: 80, 256>}]} {
    %c0 = arith.constant 0 : index
    %c0_0 = arith.constant 0 : index
    %0 = vector.load %arg1[%c0, %c0_0] : memref<256x256xbf16, #tpu.memory_space<vmem>>, vector<256x256xbf16>
    %c0_1 = arith.constant 0 : index
    %c0_2 = arith.constant 0 : index
    %c0_3 = arith.constant 0 : index
    %1 = vector.load %arg2[%c0_1, %c0_2, %c0_3] : memref<4x360x256xbf16, #tpu.memory_space<vmem>>, vector<1x360x256xbf16>
    %2 = vector.shape_cast %1 : vector<1x360x256xbf16> to vector<360x256xbf16>
    %cst = arith.constant dense<0.000000e+00> : vector<360x256xf32>
    %3 = tpu.matmul %2, %0, %cst {dimension_numbers = #tpu.dot_dimension_numbers<[1], [0], [0], [1], [0, 0, 1, 1], [], []>} : vector<360x256xbf16>, vector<256x256xbf16>, vector<360x256xf32> -> vector<360x256xf32>
    %c1 = arith.constant 1 : index
    %c0_4 = arith.constant 0 : index
    %c0_5 = arith.constant 0 : index
    %4 = vector.load %arg2[%c1, %c0_4, %c0_5] : memref<4x360x256xbf16, #tpu.memory_space<vmem>>, vector<1x360x256xbf16>
    %5 = vector.shape_cast %4 : vector<1x360x256xbf16> to vector<360x256xbf16>
    %cst_6 = arith.constant dense<0.000000e+00> : vector<360x256xf32>
    %6 = tpu.matmul %5, %0, %cst_6 {dimension_numbers = #tpu.dot_dimension_numbers<[1], [0], [0], [1], [0, 0, 1, 1], [], []>} : vector<360x256xbf16>, vector<256x256xbf16>, vector<360x256xf32> -> vector<360x256xf32>
    %7 = arith.maximumf %3, %6 : vector<360x256xf32>
    %c2 = arith.constant 2 : index
    %c0_7 = arith.constant 0 : index
    %c0_8 = arith.constant 0 : index
    %8 = vector.load %arg2[%c2, %c0_7, %c0_8] : memref<4x360x256xbf16, #tpu.memory_space<vmem>>, vector<1x360x256xbf16>
    %9 = vector.shape_cast %8 : vector<1x360x256xbf16> to vector<360x256xbf16>
    %cst_9 = arith.constant dense<0.000000e+00> : vector<360x256xf32>
    %10 = tpu.matmul %9, %0, %cst_9 {dimension_numbers = #tpu.dot_dimension_numbers<[1], [0], [0], [1], [0, 0, 1, 1], [], []>} : vector<360x256xbf16>, vector<256x256xbf16>, vector<360x256xf32> -> vector<360x256xf32>
    %11 = arith.maximumf %7, %10 : vector<360x256xf32>
    %c3 = arith.constant 3 : index
    %c0_10 = arith.constant 0 : index
    %c0_11 = arith.constant 0 : index
    %12 = vector.load %arg2[%c3, %c0_10, %c0_11] : memref<4x360x256xbf16, #tpu.memory_space<vmem>>, vector<1x360x256xbf16>
    %13 = vector.shape_cast %12 : vector<1x360x256xbf16> to vector<360x256xbf16>
    %cst_12 = arith.constant dense<0.000000e+00> : vector<360x256xf32>
    %14 = tpu.matmul %13, %0, %cst_12 {dimension_numbers = #tpu.dot_dimension_numbers<[1], [0], [0], [1], [0, 0, 1, 1], [], []>} : vector<360x256xbf16>, vector<256x256xbf16>, vector<360x256xf32> -> vector<360x256xf32>
    %15 = arith.maximumf %11, %14 : vector<360x256xf32>
    %c0_13 = arith.constant 0 : index
    %c0_14 = arith.constant 0 : index
    %16 = vector.load %arg3[%c0_13, %c0_14] : memref<360x1xf32, #tpu.memory_space<vmem>>, vector<360x1xf32>
    %17 = vector.broadcast %16 : vector<360x1xf32> to vector<360x256xf32>
    %18 = arith.addf %15, %17 : vector<360x256xf32>
    %cst_15 = arith.constant 0.000000e+00 : f32
    %19 = vector.broadcast %cst_15 : f32 to vector<360x256xf32>
    %20 = arith.maximumf %18, %19 : vector<360x256xf32>
    %21 = arith.truncf %20 : vector<360x256xf32> to vector<360x256xbf16>
    %c0_16 = arith.constant 0 : index
    %c0_17 = arith.constant 0 : index
    %22 = vector.load %arg4[%c0_16, %c0_17] : memref<80x360xbf16, #tpu.memory_space<vmem>>, vector<80x360xbf16>
    %cst_18 = arith.constant dense<0.000000e+00> : vector<80x256xf32>
    %23 = tpu.matmul %22, %21, %cst_18 {dimension_numbers = #tpu.dot_dimension_numbers<[1], [0], [0], [1], [0, 0, 1, 1], [], []>} : vector<80x360xbf16>, vector<360x256xbf16>, vector<80x256xf32> -> vector<80x256xf32>
    %c0_19 = arith.constant 0 : index
    %c0_20 = arith.constant 0 : index
    %24 = vector.load %arg5[%c0_19, %c0_20] : memref<80x1xf32, #tpu.memory_space<vmem>>, vector<80x1xf32>
    %25 = vector.broadcast %24 : vector<80x1xf32> to vector<80x256xf32>
    %26 = arith.addf %23, %25 : vector<80x256xf32>
    %c0_21 = arith.constant 0 : index
    %c0_22 = arith.constant 0 : index
    %27 = vector.load %arg6[%c0_21, %c0_22] : memref<80x256xf32, #tpu.memory_space<vmem>>, vector<80x256xf32>
    tpu.vector_store %arg6[%c0_21, %c0_22], %26 {strides = array<i32>} : memref<80x256xf32, #tpu.memory_space<vmem>>, vector<80x256xf32>,
    return
  }
  func.func @transform_0(%arg0: i32) -> (i32, i32) {
    %c0_i32 = arith.constant 0 : i32
    %c0_i32_0 = arith.constant 0 : i32
    return %c0_i32, %arg0 : i32, i32
  }
  func.func @transform_1(%arg0: i32) -> (i32, i32, i32) {
    %c0_i32 = arith.constant 0 : i32
    %c0_i32_0 = arith.constant 0 : i32
    %c0_i32_1 = arith.constant 0 : i32
    %c0_i32_2 = arith.constant 0 : i32
    return %c0_i32, %c0_i32_0, %c0_i32_1 : i32, i32, i32
  }
  func.func @transform_2(%arg0: i32) -> (i32, i32) {
    %c0_i32 = arith.constant 0 : i32
    %c0_i32_0 = arith.constant 0 : i32
    %c0_i32_1 = arith.constant 0 : i32
    return %c0_i32, %c0_i32_0 : i32, i32
  }
  func.func @transform_3(%arg0: i32) -> (i32, i32) {
    %c0_i32 = arith.constant 0 : i32
    %c0_i32_0 = arith.constant 0 : i32
    %c0_i32_1 = arith.constant 0 : i32
    return %c0_i32, %c0_i32_0 : i32, i32
  }
  func.func @transform_4(%arg0: i32) -> (i32, i32) {
    %c0_i32 = arith.constant 0 : i32
    %c0_i32_0 = arith.constant 0 : i32
    %c0_i32_1 = arith.constant 0 : i32
    return %c0_i32, %c0_i32_0 : i32, i32
  }
  func.func @transform_5(%arg0: i32) -> (i32, i32) {
    %c0_i32 = arith.constant 0 : i32
    %c0_i32_0 = arith.constant 0 : i32
    return %c0_i32, %arg0 : i32, i32
  }
}

</mosaic_0001>

<bundles_post_ra>
// kernel: network1_forward.1
= control target key start
LH: loop header
LB: loop body
LE: loop exit
PB: predicated region body
PF: predicated region fallthrough
CT: control target
= control target key end

     0   :  { %vm3285_vm0 = vcmask 1043456   ;;  %vm3269_vm1 = vcmask 850944   ;;  %s6363_s0 = inlined_call_operand.vmem [shape: bf16[256,256], index: 0, kind: input, shape index: {}]   ;;  %s6364_s1 = inlined_call_operand.vmem [shape: bf16[4,360,256], index: 1, kind: input, shape index: {}]   ;;  %s6365_s2 = inlined_call_operand.vmem [shape: f32[360,1], index: 2, kind: input, shape index: {}]   ;;  %s6366_s4 = inlined_call_operand.vmem [shape: f32[80,1], index: 4, kind: input, shape index: {}]   ;;  %s6367_s3 = inlined_call_operand.vmem [shape: bf16[80,360], index: 3, kind: input, shape index: {}]   ;;  %s6368_s5 = inlined_call_operand.vmem [shape: f32[80,256], index: 5, kind: output, shape index: {}]  }
   0x1   :  { %v4271_v0 = vld [vmem:[%s6363_s0 + $0x4] ss:$8 sps:$4 sm:$0xff]   ;;  %v4276_v1 = vld [vmem:[%s6363_s0] ss:$8 sps:$4 sm:$0xff]   ;;  %v4283_v2 = vld [vmem:[%s6363_s0 + $0x14] ss:$8 sps:$4 sm:$0xff]  }
   0x2   :  { %485 = vmatprep.subr.bf16.mxu0 %v4271_v0  ;;  %1019 = vmatprep.subr.bf16.mxu1 %v4271_v0  ;;  %v4290_v3 = vld [vmem:[%s6363_s0 + $0x10] ss:$8 sps:$4 sm:$0xff]   ;;  %v4297_v4 = vld [vmem:[%s6363_s0 + $0x24] ss:$8 sps:$4 sm:$0xff]   ;;  %v4304_v5 = vld [vmem:[%s6363_s0 + $0x20] ss:$8 sps:$4 sm:$0xff]  }
   0x3   :  { %486 = vmatpush1.bf16.msra.mxu0 %v4276_v1  ;;  %1020 = vmatpush1.bf16.msra.mxu1 %v4276_v1  ;;  %v4311_v6 = vld [vmem:[%s6363_s0 + $0x34] ss:$8 sps:$4 sm:$0xff]   ;;  %v4318_v7 = vld [vmem:[%s6363_s0 + $0x30] ss:$8 sps:$4 sm:$0xff]   ;;  %v4325_v8 = vld [vmem:[%s6363_s0 + $0x44] ss:$8 sps:$4 sm:$0xff]  }
   0x4   :  { %487 = vmatprep.subr.bf16.mxu0 %v4283_v2  ;;  %1021 = vmatprep.subr.bf16.mxu1 %v4283_v2  ;;  %v4332_v9 = vld [vmem:[%s6363_s0 + $0x40] ss:$8 sps:$4 sm:$0xff]   ;;  %v4339_v10 = vld [vmem:[%s6363_s0 + $0x54] ss:$8 sps:$4 sm:$0xff]   ;;  %v4346_v11 = vld [vmem:[%s6363_s0 + $0x50] ss:$8 sps:$4 sm:$0xff]  }
   0x5   :  { %v4353_v12 = vld [vmem:[%s6363_s0 + $0x64] ss:$8 sps:$4 sm:$0xff]   ;;  %v4363_v14 = vld [vmem:[%s6363_s0 + $0x60] ss:$8 sps:$4 sm:$0xff]   ;;  %v4373_v16 = vld [vmem:[%s6363_s0 + $0x74] ss:$8 sps:$4 sm:$0xff]  }
   0x6   :  { %v3947_v13 = vld [vmem:[%s6364_s1 + $0x4] ss:$8 sps:$4 sm:$0xff]   ;;  %v4380_v17 = vld [vmem:[%s6363_s0 + $0x70] ss:$8 sps:$4 sm:$0xff]   ;;  %v4394_v19 = vld [vmem:[%s6363_s0 + $0x80] ss:$8 sps:$4 sm:$0xff]  }
   0x7   :  { %488 = vmatpush1.bf16.msra.mxu0 %v4290_v3  ;;  %1022 = vmatpush1.bf16.msra.mxu1 %v4290_v3  ;;  %v3950_v15 = vld [vmem:[%s6364_s1 + $0x16c] ss:$8 sps:$4 sm:$0xff]   ;;  %v4408_v21 = vld [vmem:[%s6363_s0 + $0x90] ss:$8 sps:$4 sm:$0xff]   ;;  %v4422_v23 = vld [vmem:[%s6363_s0 + $0xa0] ss:$8 sps:$4 sm:$0xff]  }
   0x8   :  { %489 = vmatprep.subr.bf16.mxu0 %v4297_v4  ;;  %1023 = vmatprep.subr.bf16.mxu1 %v4297_v4  ;;  %v4387_v18 = vld [vmem:[%s6363_s0 + $0x84] ss:$8 sps:$4 sm:$0xff]   ;;  %v4401_v20 = vld [vmem:[%s6363_s0 + $0x94] ss:$8 sps:$4 sm:$0xff]   ;;  %v4436_v25 = vld [vmem:[%s6363_s0 + $0xb0] ss:$8 sps:$4 sm:$0xff]  }
   0x9   :  { %517 = vmatprep.mubr.bf16.mxu0 %v3947_v13  ;;  %1051 = vmatprep.mubr.bf16.mxu1 %v3950_v15  ;;  %v4415_v22 = vld [vmem:[%s6363_s0 + $0xa4] ss:$8 sps:$4 sm:$0xff]   ;;  %v4429_v24 = vld [vmem:[%s6363_s0 + $0xb4] ss:$8 sps:$4 sm:$0xff]   ;;  %v4450_v27 = vld [vmem:[%s6363_s0 + $0xc0] ss:$8 sps:$4 sm:$0xff]  }
   0xa   :  { %v4443_v26 = vld [vmem:[%s6363_s0 + $0xc4] ss:$8 sps:$4 sm:$0xff]   ;;  %v4457_v28 = vld [vmem:[%s6363_s0 + $0xd4] ss:$8 sps:$4 sm:$0xff]   ;;  %v4464_v29 = vld [vmem:[%s6363_s0 + $0xd0] ss:$8 sps:$4 sm:$0xff]  }
   0xb   :  { %490 = vmatpush1.bf16.msra.mxu0 %v4304_v5  ;;  %1024 = vmatpush1.bf16.msra.mxu1 %v4304_v5  ;;  %v4471_v30 = vld [vmem:[%s6363_s0 + $0xe4] ss:$8 sps:$4 sm:$0xff]   ;;  %v4478_v31 = vld [vmem:[%s6363_s0 + $0xe0] ss:$8 sps:$4 sm:$0xff]   ;;  %v4485_v32 = vld [vmem:[%s6363_s0 + $0xf4] ss:$8 sps:$4 sm:$0xff]  }
   0xc   :  { %491 = vmatprep.subr.bf16.mxu0 %v4311_v6  ;;  %1025 = vmatprep.subr.bf16.mxu1 %v4311_v6  ;;  %v4492_v33 = vld [vmem:[%s6363_s0 + $0xf0] ss:$8 sps:$4 sm:$0xff]   ;;  %v3945_v34 = vld [vmem:[%s6364_s1] ss:$8 sps:$4 sm:$0xff]   ;;  %v3951_v36 = vld [vmem:[%s6364_s1 + $0x14] ss:$8 sps:$4 sm:$0xff]  }
   0xd   :  { %v3948_v35 = vld [vmem:[%s6364_s1 + $0x168] ss:$8 sps:$4 sm:$0xff]   ;;  %v3953_v37 = vld [vmem:[%s6364_s1 + $0x17c] ss:$8 sps:$4 sm:$0xff]   ;;  %v3956_v39 = vld [vmem:[%s6364_s1 + $0x178] ss:$8 sps:$4 sm:$0xff]  }
   0xe   :  { %v3955_v38 = vld [vmem:[%s6364_s1 + $0x10] ss:$8 sps:$4 sm:$0xff]   ;;  %v3957_v40 = vld [vmem:[%s6364_s1 + $0x24] ss:$8 sps:$4 sm:$0xff]   ;;  %v3961_v42 = vld [vmem:[%s6364_s1 + $0x20] ss:$8 sps:$4 sm:$0xff]  }
   0xf   :  { %492 = vmatpush1.bf16.msra.mxu0 %v4318_v7  ;;  %1026 = vmatpush1.bf16.msra.mxu1 %v4318_v7  ;;  %v3959_v41 = vld [vmem:[%s6364_s1 + $0x18c] ss:$8 sps:$4 sm:$0xff]   ;;  %v3962_v43 = vld [vmem:[%s6364_s1 + $0x188] ss:$8 sps:$4 sm:$0xff]   ;;  %v3965_v45 = vld [vmem:[%s6364_s1 + $0x19c] ss:$8 sps:$4 sm:$0xff]  }
  0x10   :  { %493 = vmatprep.subr.bf16.mxu0 %v4325_v8  ;;  %1027 = vmatprep.subr.bf16.mxu1 %v4325_v8  ;;  %v3963_v44 = vld [vmem:[%s6364_s1 + $0x34] ss:$8 sps:$4 sm:$0xff]   ;;  %v3967_v46 = vld [vmem:[%s6364_s1 + $0x30] ss:$8 sps:$4 sm:$0xff]   ;;  %v3969_v48 = vld [vmem:[%s6364_s1 + $0x44] ss:$8 sps:$4 sm:$0xff]  }
  0x11   :  { %v3968_v47 = vld [vmem:[%s6364_s1 + $0x198] ss:$8 sps:$4 sm:$0xff]   ;;  %v3971_v49 = vld [vmem:[%s6364_s1 + $0x1ac] ss:$8 sps:$4 sm:$0xff]   ;;  %v3974_v51 = vld [vmem:[%s6364_s1 + $0x1a8] ss:$8 sps:$4 sm:$0xff]  }
  0x12   :  { %v3973_v50 = vld [vmem:[%s6364_s1 + $0x40] ss:$8 sps:$4 sm:$0xff]   ;;  %v3975_v52 = vld [vmem:[%s6364_s1 + $0x54] ss:$8 sps:$4 sm:$0xff]   ;;  %v3979_v54 = vld [vmem:[%s6364_s1 + $0x50] ss:$8 sps:$4 sm:$0xff]  }
  0x13   :  { %494 = vmatpush1.bf16.msra.mxu0 %v4332_v9  ;;  %1028 = vmatpush1.bf16.msra.mxu1 %v4332_v9  ;;  %v3977_v53 = vld [vmem:[%s6364_s1 + $0x1bc] ss:$8 sps:$4 sm:$0xff]   ;;  %v3980_v55 = vld [vmem:[%s6364_s1 + $0x1b8] ss:$8 sps:$4 sm:$0xff]   ;;  %v3983_v57 = vld [vmem:[%s6364_s1 + $0x1cc] ss:$8 sps:$4 sm:$0xff]  }
  0x14   :  { %495 = vmatprep.subr.bf16.mxu0 %v4339_v10  ;;  %1029 = vmatprep.subr.bf16.mxu1 %v4339_v10  ;;  %v3981_v56 = vld [vmem:[%s6364_s1 + $0x64] ss:$8 sps:$4 sm:$0xff]   ;;  %v3985_v58 = vld [vmem:[%s6364_s1 + $0x60] ss:$8 sps:$4 sm:$0xff]   ;;  %v3987_v60 = vld [vmem:[%s6364_s1 + $0x74] ss:$8 sps:$4 sm:$0xff]  }
  0x15   :  { %v3986_v59 = vld [vmem:[%s6364_s1 + $0x1c8] ss:$8 sps:$4 sm:$0xff]   ;;  %v3989_v61 = vld [vmem:[%s6364_s1 + $0x1dc] ss:$8 sps:$4 sm:$0xff]   ;;  %v3992_v63 = vld [vmem:[%s6364_s1 + $0x1d8] ss:$8 sps:$4 sm:$0xff]  }
  0x16   :  { %v3991_v62 = vld [vmem:[%s6364_s1 + $0x70] ss:$8 sps:$4 sm:$0xff]   ;;  %v4013_v13 = vld [vmem:[%s6364_s1 + $0x21c] ss:$8 sps:$4 sm:$0xff]  }
  0x17   :  { %496 = vmatpush1.bf16.msra.mxu0 %v4346_v11  ;;  %1030 = vmatpush1.bf16.msra.mxu1 %v4346_v11  ;;  %v4016_v15 = vld [vmem:[%s6364_s1 + $0x218] ss:$8 sps:$4 sm:$0xff]  }
  0x18   :  { %497 = vmatprep.subr.bf16.mxu0 %v4353_v12  ;;  %1031 = vmatprep.subr.bf16.mxu1 %v4353_v12 }
  0x1b   :  { %498 = vmatpush1.bf16.msra.mxu0 %v4363_v14  ;;  %1032 = vmatpush1.bf16.msra.mxu1 %v4363_v14 }
  0x1c   :  { %499 = vmatprep.subr.bf16.mxu0 %v4373_v16  ;;  %1033 = vmatprep.subr.bf16.mxu1 %v4373_v16 }
  0x1f   :  { %500 = vmatpush1.bf16.msra.mxu0 %v4380_v17  ;;  %1034 = vmatpush1.bf16.msra.mxu1 %v4380_v17 }
  0x20   :  { %501 = vmatprep.subr.bf16.mxu0 %v4387_v18  ;;  %1035 = vmatprep.subr.bf16.mxu1 %v4387_v18 }
  0x23   :  { %502 = vmatpush1.bf16.msra.mxu0 %v4394_v19  ;;  %1036 = vmatpush1.bf16.msra.mxu1 %v4394_v19 }
  0x24   :  { %503 = vmatprep.subr.bf16.mxu0 %v4401_v20  ;;  %1037 = vmatprep.subr.bf16.mxu1 %v4401_v20 }
  0x27   :  { %504 = vmatpush1.bf16.msra.mxu0 %v4408_v21  ;;  %1038 = vmatpush1.bf16.msra.mxu1 %v4408_v21 }
  0x28   :  { %505 = vmatprep.subr.bf16.mxu0 %v4415_v22  ;;  %1039 = vmatprep.subr.bf16.mxu1 %v4415_v22 }
  0x2b   :  { %506 = vmatpush1.bf16.msra.mxu0 %v4422_v23  ;;  %1040 = vmatpush1.bf16.msra.mxu1 %v4422_v23 }
  0x2c   :  { %507 = vmatprep.subr.bf16.mxu0 %v4429_v24  ;;  %1041 = vmatprep.subr.bf16.mxu1 %v4429_v24 }
  0x2f   :  { %508 = vmatpush1.bf16.msra.mxu0 %v4436_v25  ;;  %1042 = vmatpush1.bf16.msra.mxu1 %v4436_v25 }
  0x30   :  { %509 = vmatprep.subr.bf16.mxu0 %v4443_v26  ;;  %1043 = vmatprep.subr.bf16.mxu1 %v4443_v26 }
  0x33   :  { %510 = vmatpush1.bf16.msra.mxu0 %v4450_v27  ;;  %1044 = vmatpush1.bf16.msra.mxu1 %v4450_v27 }
  0x34   :  { %511 = vmatprep.subr.bf16.mxu0 %v4457_v28  ;;  %1045 = vmatprep.subr.bf16.mxu1 %v4457_v28 }
  0x37   :  { %512 = vmatpush1.bf16.msra.mxu0 %v4464_v29  ;;  %1046 = vmatpush1.bf16.msra.mxu1 %v4464_v29 }
  0x38   :  { %513 = vmatprep.subr.bf16.mxu0 %v4471_v30  ;;  %1047 = vmatprep.subr.bf16.mxu1 %v4471_v30 }
  0x3b   :  { %514 = vmatpush1.bf16.msra.mxu0 %v4478_v31  ;;  %1048 = vmatpush1.bf16.msra.mxu1 %v4478_v31 }
  0x3c   :  { %515 = vmatprep.subr.bf16.mxu0 %v4485_v32  ;;  %1049 = vmatprep.subr.bf16.mxu1 %v4485_v32 }
  0x3f   :  { %516 = vmatpush1.bf16.msra.mxu0 %v4492_v33  ;;  %1050 = vmatpush1.bf16.msra.mxu1 %v4492_v33 }
  0x40   :  { %1643 = vmatprep.subr.bf16.mxu0 %v4271_v0  ;;  %2267 = vmatprep.subr.bf16.mxu1 %v4271_v0  ;;  %v3993_v0 = vld [vmem:[%s6364_s1 + $0x84] ss:$8 sps:$4 sm:$0xff]  }
  0x42   :  { %518 = vmatmul.mubr.bf16.vlgmr.msra.gmra.mrb[0].mxu0 %v3945_v34  ;;  %1052 = vmatmul.mubr.bf16.vlgmr.msra.gmra.mrb[0].mxu1 %v3948_v35  ;;  %v4045_v34 = vld [vmem:[%s6364_s1 + $0x100] ss:$8 sps:$4 sm:$0xff]  }
  0x43   :  { %527 = vmatprep.mubr.bf16.mxu0 %v3951_v36  ;;  %1061 = vmatprep.mubr.bf16.mxu1 %v3953_v37  ;;  %v4046_v35 = vld [vmem:[%s6364_s1 + $0x268] ss:$8 sps:$4 sm:$0xff]   ;;  %v6369_v36 = vmov 0   ;;  %v2618_v37 = vld [vmem:[%s6365_s2] sm:$0xff] }
  0x44   :  { %1644 = vmatpush1.bf16.msra.mxu0 %v4276_v1  ;;  %2268 = vmatpush1.bf16.msra.mxu1 %v4276_v1  ;;  %v3995_v1 = vld [vmem:[%s6364_s1 + $0x1ec] ss:$8 sps:$4 sm:$0xff]  }
  0x45   :  { %1645 = vmatprep.subr.bf16.mxu0 %v4283_v2  ;;  %2269 = vmatprep.subr.bf16.mxu1 %v4283_v2  ;;  %v3997_v2 = vld [vmem:[%s6364_s1 + $0x80] ss:$8 sps:$4 sm:$0xff]  }
  0x46   :  { %3895 = vset.pattern.permute.xlu0 %v6369_v36  ;;  %3896 = vset.pattern.permute.xlu1 %v6369_v36 }
  0x47   :  { %2665 = vperm.xlu0 %3895, %v2618_v37   ;;  %v4091_v37 = vld [vmem:[%s6364_s1 + $0x2e0] ss:$8 sps:$4 sm:$0xff]  }
  0x48   :  { %1646 = vmatpush1.bf16.msra.mxu0 %v4290_v3  ;;  %2270 = vmatpush1.bf16.msra.mxu1 %v4290_v3  ;;  %v3998_v3 = vld [vmem:[%s6364_s1 + $0x1e8] ss:$8 sps:$4 sm:$0xff]  }
  0x49   :  { %1647 = vmatprep.subr.bf16.mxu0 %v4297_v4  ;;  %2271 = vmatprep.subr.bf16.mxu1 %v4297_v4  ;;  %v3999_v4 = vld [vmem:[%s6364_s1 + $0x94] ss:$8 sps:$4 sm:$0xff]  }
  0x4a   :  { %528 = vmatmul.mubr.bf16.gmra.mrb[4].mxu0 %v3955_v38  ;;  %1062 = vmatmul.mubr.bf16.gmra.mrb[4].mxu1 %v3956_v39  ;;  %v4047_v38 = vld [vmem:[%s6364_s1 + $0x114] ss:$8 sps:$4 sm:$0xff]  }
  0x4b   :  { %537 = vmatprep.mubr.bf16.mxu0 %v3957_v40  ;;  %1071 = vmatprep.mubr.bf16.mxu1 %v3959_v41  ;;  %v4049_v39 = vld [vmem:[%s6364_s1 + $0x27c] ss:$8 sps:$4 sm:$0xff]   ;;  %v2620_v40 = vld [vmem:[%s6365_s2 + $0x10] sm:$0xff]  ;;  %v2619_v41 = vld [vmem:[%s6365_s2 + $0x8] sm:$0xff] }
  0x4c   :  { %1648 = vmatpush1.bf16.msra.mxu0 %v4304_v5  ;;  %2272 = vmatpush1.bf16.msra.mxu1 %v4304_v5  ;;  %v4001_v5 = vld [vmem:[%s6364_s1 + $0x1fc] ss:$8 sps:$4 sm:$0xff]  }
  0x4d   :  { %1649 = vmatprep.subr.bf16.mxu0 %v4311_v6  ;;  %2273 = vmatprep.subr.bf16.mxu1 %v4311_v6  ;;  %v4003_v6 = vld [vmem:[%s6364_s1 + $0x90] ss:$8 sps:$4 sm:$0xff]  }
  0x4e   :  { %2675 = vperm.xlu1 %3896, %v2620_v40   ;;  %2670 = vperm.xlu0 %3895, %v2619_v41   ;;  %v4093_v40 = vld [vmem:[%s6364_s1 + $0x2f4] ss:$8 sps:$4 sm:$0xff]  }
  0x4f   :  { %v4095_v41 = vld [vmem:[%s6364_s1 + $0x45c] ss:$8 sps:$4 sm:$0xff]  }
  0x50   :  { %1650 = vmatpush1.bf16.msra.mxu0 %v4318_v7  ;;  %2274 = vmatpush1.bf16.msra.mxu1 %v4318_v7  ;;  %v4004_v7 = vld [vmem:[%s6364_s1 + $0x1f8] ss:$8 sps:$4 sm:$0xff]  }
  0x51   :  { %1651 = vmatprep.subr.bf16.mxu0 %v4325_v8  ;;  %2275 = vmatprep.subr.bf16.mxu1 %v4325_v8  ;;  %v4005_v8 = vld [vmem:[%s6364_s1 + $0xa4] ss:$8 sps:$4 sm:$0xff]  }
  0x52   :  { %538 = vmatmul.mubr.bf16.gmra.mrb[8].mxu0 %v3961_v42  ;;  %1072 = vmatmul.mubr.bf16.gmra.mrb[8].mxu1 %v3962_v43  ;;  %v4051_v42 = vld [vmem:[%s6364_s1 + $0x110] ss:$8 sps:$4 sm:$0xff]  }
  0x53   :  { %547 = vmatprep.mubr.bf16.mxu0 %v3963_v44  ;;  %1081 = vmatprep.mubr.bf16.mxu1 %v3965_v45  ;;  %v4052_v43 = vld [vmem:[%s6364_s1 + $0x278] ss:$8 sps:$4 sm:$0xff]   ;;  %v4053_v45 = vld [vmem:[%s6364_s1 + $0x124] ss:$8 sps:$4 sm:$0xff]  }
  0x54   :  { %1652 = vmatpush1.bf16.msra.mxu0 %v4332_v9  ;;  %2276 = vmatpush1.bf16.msra.mxu1 %v4332_v9  ;;  %v4007_v9 = vld [vmem:[%s6364_s1 + $0x20c] ss:$8 sps:$4 sm:$0xff]   ;;  %v2622_v44 = vld [vmem:[%s6365_s2 + $0x20] sm:$0xff] }
  0x55   :  { %1653 = vmatprep.subr.bf16.mxu0 %v4339_v10  ;;  %2277 = vmatprep.subr.bf16.mxu1 %v4339_v10  ;;  %v4009_v10 = vld [vmem:[%s6364_s1 + $0xa0] ss:$8 sps:$4 sm:$0xff]  }
  0x56   :  { %2685 = vperm.xlu0 %3895, %v2622_v44   ;;  %v2644_v44 = vld [vmem:[%s6365_s2 + $0xd0] sm:$0xff] }
  0x58   :  { %1654 = vmatpush1.bf16.msra.mxu0 %v4346_v11  ;;  %2278 = vmatpush1.bf16.msra.mxu1 %v4346_v11  ;;  %v4010_v11 = vld [vmem:[%s6364_s1 + $0x208] ss:$8 sps:$4 sm:$0xff]  }
  0x59   :  { %1655 = vmatprep.subr.bf16.mxu0 %v4353_v12  ;;  %2279 = vmatprep.subr.bf16.mxu1 %v4353_v12  ;;  %v4011_v12 = vld [vmem:[%s6364_s1 + $0xb4] ss:$8 sps:$4 sm:$0xff]  }
  0x5a   :  { %548 = vmatmul.mubr.bf16.gmra.mrb[12].mxu0 %v3967_v46  ;;  %1082 = vmatmul.mubr.bf16.gmra.mrb[12].mxu1 %v3968_v47  ;;  %v4055_v46 = vld [vmem:[%s6364_s1 + $0x28c] ss:$8 sps:$4 sm:$0xff]   ;;  %v2621_v47 = vld [vmem:[%s6365_s2 + $0x18] sm:$0xff] }
  0x5b   :  { %557 = vmatprep.mubr.bf16.mxu0 %v3969_v48  ;;  %1091 = vmatprep.mubr.bf16.mxu1 %v3971_v49  ;;  %v2623_v48 = vld [vmem:[%s6365_s2 + $0x28] sm:$0xff]  ;;  %v2624_v49 = vld [vmem:[%s6365_s2 + $0x30] sm:$0xff] }
  0x5c   :  { %1656 = vmatpush1.bf16.msra.mxu0 %v4363_v14  ;;  %2280 = vmatpush1.bf16.msra.mxu1 %v4363_v14  ;;  %v4015_v14 = vld [vmem:[%s6364_s1 + $0xb0] ss:$8 sps:$4 sm:$0xff]  }
  0x5d   :  { %1657 = vmatprep.subr.bf16.mxu0 %v4373_v16  ;;  %2281 = vmatprep.subr.bf16.mxu1 %v4373_v16  ;;  %v4017_v16 = vld [vmem:[%s6364_s1 + $0xc4] ss:$8 sps:$4 sm:$0xff]  }
  0x5e   :  { %2680 = vperm.xlu1 %3896, %v2621_v47   ;;  %2695 = vperm.xlu0 %3895, %v2624_v49   ;;  %v2658_v47 = vld [vmem:[%s6365_s2 + $0x140] sm:$0xff]  ;;  %v4101_v49 = vld [vmem:[%s6364_s1 + $0x46c] ss:$8 sps:$4 sm:$0xff]  }
  0x60   :  { %1658 = vmatpush1.bf16.msra.mxu0 %v4380_v17  ;;  %2282 = vmatpush1.bf16.msra.mxu1 %v4380_v17  ;;  %v4019_v17 = vld [vmem:[%s6364_s1 + $0x22c] ss:$8 sps:$4 sm:$0xff]  }
  0x61   :  { %1659 = vmatprep.subr.bf16.mxu0 %v4387_v18  ;;  %2283 = vmatprep.subr.bf16.mxu1 %v4387_v18  ;;  %v4021_v18 = vld [vmem:[%s6364_s1 + $0xc0] ss:$8 sps:$4 sm:$0xff]  }
  0x62   :  { %558 = vmatmul.mubr.bf16.gmra.mrb[16].mxu0 %v3973_v50  ;;  %1092 = vmatmul.mubr.bf16.gmra.mrb[16].mxu1 %v3974_v51  ;;  %v4057_v50 = vld [vmem:[%s6364_s1 + $0x120] ss:$8 sps:$4 sm:$0xff]  }
  0x63   :  { %567 = vmatprep.mubr.bf16.mxu0 %v3975_v52  ;;  %1101 = vmatprep.mubr.bf16.mxu1 %v3977_v53  ;;  %v4058_v51 = vld [vmem:[%s6364_s1 + $0x288] ss:$8 sps:$4 sm:$0xff]   ;;  %v2626_v52 = vld [vmem:[%s6365_s2 + $0x40] sm:$0xff]  ;;  %v4059_v53 = vld [vmem:[%s6364_s1 + $0x134] ss:$8 sps:$4 sm:$0xff]  }
  0x64   :  { %1660 = vmatpush1.bf16.msra.mxu0 %v4394_v19  ;;  %2284 = vmatpush1.bf16.msra.mxu1 %v4394_v19  ;;  %v4022_v19 = vld [vmem:[%s6364_s1 + $0x228] ss:$8 sps:$4 sm:$0xff]  }
  0x65   :  { %1661 = vmatprep.subr.bf16.mxu0 %v4401_v20  ;;  %2285 = vmatprep.subr.bf16.mxu1 %v4401_v20  ;;  %v4023_v20 = vld [vmem:[%s6364_s1 + $0xd4] ss:$8 sps:$4 sm:$0xff]  }
  0x66   :  { %2690 = vperm.xlu1 %3896, %v2623_v48   ;;  %2705 = vperm.xlu0 %3895, %v2626_v52   ;;  %v4099_v48 = vld [vmem:[%s6364_s1 + $0x304] ss:$8 sps:$4 sm:$0xff]  }
  0x67   :  { %v2646_v52 = vld [vmem:[%s6365_s2 + $0xe0] sm:$0xff] }
  0x68   :  { %1662 = vmatpush1.bf16.msra.mxu0 %v4408_v21  ;;  %2286 = vmatpush1.bf16.msra.mxu1 %v4408_v21  ;;  %v4025_v21 = vld [vmem:[%s6364_s1 + $0x23c] ss:$8 sps:$4 sm:$0xff]  }
  0x69   :  { %1663 = vmatprep.subr.bf16.mxu0 %v4415_v22  ;;  %2287 = vmatprep.subr.bf16.mxu1 %v4415_v22  ;;  %v4027_v22 = vld [vmem:[%s6364_s1 + $0xd0] ss:$8 sps:$4 sm:$0xff]  }
  0x6a   :  { %568 = vmatmul.mubr.bf16.gmra.mrb[20].mxu0 %v3979_v54  ;;  %1102 = vmatmul.mubr.bf16.gmra.mrb[20].mxu1 %v3980_v55  ;;  %v4061_v54 = vld [vmem:[%s6364_s1 + $0x29c] ss:$8 sps:$4 sm:$0xff]  }
  0x6b   :  { %577 = vmatprep.mubr.bf16.mxu0 %v3981_v56  ;;  %1111 = vmatprep.mubr.bf16.mxu1 %v3983_v57  ;;  %v2625_v55 = vld [vmem:[%s6365_s2 + $0x38] sm:$0xff]  ;;  %v2627_v56 = vld [vmem:[%s6365_s2 + $0x48] sm:$0xff]  ;;  %v2628_v57 = vld [vmem:[%s6365_s2 + $0x50] sm:$0xff] }
  0x6c   :  { %1664 = vmatpush1.bf16.msra.mxu0 %v4422_v23  ;;  %2288 = vmatpush1.bf16.msra.mxu1 %v4422_v23  ;;  %v4028_v23 = vld [vmem:[%s6364_s1 + $0x238] ss:$8 sps:$4 sm:$0xff]  }
  0x6d   :  { %1665 = vmatprep.subr.bf16.mxu0 %v4429_v24  ;;  %2289 = vmatprep.subr.bf16.mxu1 %v4429_v24  ;;  %v4029_v24 = vld [vmem:[%s6364_s1 + $0xe4] ss:$8 sps:$4 sm:$0xff]  }
  0x6e   :  { %2700 = vperm.xlu1 %3896, %v2625_v55   ;;  %2715 = vperm.xlu0 %3895, %v2628_v57   ;;  %v2660_v55 = vld [vmem:[%s6365_s2 + $0x150] sm:$0xff]  ;;  %v4107_v57 = vld [vmem:[%s6364_s1 + $0x47c] ss:$8 sps:$4 sm:$0xff]  }
  0x70   :  { %1666 = vmatpush1.bf16.msra.mxu0 %v4436_v25  ;;  %2290 = vmatpush1.bf16.msra.mxu1 %v4436_v25  ;;  %v4031_v25 = vld [vmem:[%s6364_s1 + $0x24c] ss:$8 sps:$4 sm:$0xff]  }
  0x71   :  { %1667 = vmatprep.subr.bf16.mxu0 %v4443_v26  ;;  %2291 = vmatprep.subr.bf16.mxu1 %v4443_v26  ;;  %v4033_v26 = vld [vmem:[%s6364_s1 + $0xe0] ss:$8 sps:$4 sm:$0xff]  }
  0x72   :  { %578 = vmatmul.mubr.bf16.gmra.mrb[24].mxu0 %v3985_v58  ;;  %1112 = vmatmul.mubr.bf16.gmra.mrb[24].mxu1 %v3986_v59  ;;  %v4063_v58 = vld [vmem:[%s6364_s1 + $0x130] ss:$8 sps:$4 sm:$0xff]  }
  0x73   :  { %587 = vmatprep.mubr.bf16.mxu0 %v3987_v60  ;;  %1121 = vmatprep.mubr.bf16.mxu1 %v3989_v61  ;;  %v4064_v59 = vld [vmem:[%s6364_s1 + $0x298] ss:$8 sps:$4 sm:$0xff]   ;;  %v4065_v61 = vld [vmem:[%s6364_s1 + $0x144] ss:$8 sps:$4 sm:$0xff]  }
  0x74   :  { %1668 = vmatpush1.bf16.msra.mxu0 %v4450_v27  ;;  %2292 = vmatpush1.bf16.msra.mxu1 %v4450_v27  ;;  %v4034_v27 = vld [vmem:[%s6364_s1 + $0x248] ss:$8 sps:$4 sm:$0xff]   ;;  %v2630_v60 = vld [vmem:[%s6365_s2 + $0x60] sm:$0xff] }
  0x75   :  { %1669 = vmatprep.subr.bf16.mxu0 %v4457_v28  ;;  %2293 = vmatprep.subr.bf16.mxu1 %v4457_v28  ;;  %v4035_v28 = vld [vmem:[%s6364_s1 + $0xf4] ss:$8 sps:$4 sm:$0xff]  }
  0x76   :  { %2710 = vperm.xlu1 %3896, %v2627_v56   ;;  %2725 = vperm.xlu0 %3895, %v2630_v60   ;;  %v4105_v56 = vld [vmem:[%s6364_s1 + $0x314] ss:$8 sps:$4 sm:$0xff]  }
  0x77   :  { %v2648_v60 = vld [vmem:[%s6365_s2 + $0xf0] sm:$0xff] }
  0x78   :  { %1670 = vmatpush1.bf16.msra.mxu0 %v4464_v29  ;;  %2294 = vmatpush1.bf16.msra.mxu1 %v4464_v29  ;;  %v4037_v29 = vld [vmem:[%s6364_s1 + $0x25c] ss:$8 sps:$4 sm:$0xff]  }
  0x79   :  { %1671 = vmatprep.subr.bf16.mxu0 %v4471_v30  ;;  %2295 = vmatprep.subr.bf16.mxu1 %v4471_v30  ;;  %v4039_v30 = vld [vmem:[%s6364_s1 + $0xf0] ss:$8 sps:$4 sm:$0xff]  }
  0x7a   :  { %588 = vmatmul.mubr.bf16.gmra.mrb[28].mxu0 %v3991_v62  ;;  %1122 = vmatmul.mubr.bf16.gmra.mrb[28].mxu1 %v3992_v63  ;;  %v4067_v62 = vld [vmem:[%s6364_s1 + $0x2ac] ss:$8 sps:$4 sm:$0xff]   ;;  %v2629_v63 = vld [vmem:[%s6365_s2 + $0x58] sm:$0xff] }
  0x7b   :  { %597 = vmatprep.mubr.bf16.mxu0 %v3993_v0  ;;  %1131 = vmatprep.mubr.bf16.mxu1 %v3995_v1  ;;  %v2631_v0 = vld [vmem:[%s6365_s2 + $0x68] sm:$0xff]  ;;  %v2632_v1 = vld [vmem:[%s6365_s2 + $0x70] sm:$0xff] }
  0x7c   :  { %1672 = vmatpush1.bf16.msra.mxu0 %v4478_v31  ;;  %2296 = vmatpush1.bf16.msra.mxu1 %v4478_v31  ;;  %v4040_v31 = vld [vmem:[%s6364_s1 + $0x258] ss:$8 sps:$4 sm:$0xff]  }
  0x7d   :  { %1673 = vmatprep.subr.bf16.mxu0 %v4485_v32  ;;  %2297 = vmatprep.subr.bf16.mxu1 %v4485_v32  ;;  %v4041_v32 = vld [vmem:[%s6364_s1 + $0x104] ss:$8 sps:$4 sm:$0xff]  }
  0x7e   :  { %2720 = vperm.xlu1 %3896, %v2629_v63   ;;  %2735 = vperm.xlu0 %3895, %v2632_v1   ;;  %v4109_v63 = vld [vmem:[%s6364_s1 + $0x310] ss:$8 sps:$4 sm:$0xff]  }
  0x80   :  { %1674 = vmatpush1.bf16.msra.mxu0 %v4492_v33  ;;  %2298 = vmatpush1.bf16.msra.mxu1 %v4492_v33  ;;  %v4043_v33 = vld [vmem:[%s6364_s1 + $0x26c] ss:$8 sps:$4 sm:$0xff]  }
  0x82   :  { %598 = vmatmul.mubr.bf16.gmra.mrb[32].mxu0 %v3997_v2  ;;  %1132 = vmatmul.mubr.bf16.gmra.mrb[32].mxu1 %v3998_v3  ;;  %v4069_v2 = vld [vmem:[%s6364_s1 + $0x140] ss:$8 sps:$4 sm:$0xff]  }
  0x83   :  { %607 = vmatprep.mubr.bf16.mxu0 %v3999_v4  ;;  %1141 = vmatprep.mubr.bf16.mxu1 %v4001_v5  ;;  %v4070_v3 = vld [vmem:[%s6364_s1 + $0x2a8] ss:$8 sps:$4 sm:$0xff]   ;;  %v2634_v4 = vld [vmem:[%s6365_s2 + $0x80] sm:$0xff]  ;;  %v4071_v5 = vld [vmem:[%s6364_s1 + $0x154] ss:$8 sps:$4 sm:$0xff]  }
  0x84   :  { %2730 = vperm.xlu1 %3896, %v2631_v0   ;;  %2745 = vperm.xlu0 %3895, %v2634_v4   ;;  %v2662_v4 = vld [vmem:[%s6365_s2 + $0x160] sm:$0xff] }
  0x8a   :  { %608 = vmatmul.mubr.bf16.gmra.mrb[36].mxu0 %v4003_v6  ;;  %1142 = vmatmul.mubr.bf16.gmra.mrb[36].mxu1 %v4004_v7  ;;  %v4073_v6 = vld [vmem:[%s6364_s1 + $0x2bc] ss:$8 sps:$4 sm:$0xff]  }
  0x8b   :  { %617 = vmatprep.mubr.bf16.mxu0 %v4005_v8  ;;  %1151 = vmatprep.mubr.bf16.mxu1 %v4007_v9  ;;  %v2633_v7 = vld [vmem:[%s6365_s2 + $0x78] sm:$0xff]  ;;  %v2635_v8 = vld [vmem:[%s6365_s2 + $0x88] sm:$0xff]  ;;  %v2636_v9 = vld [vmem:[%s6365_s2 + $0x90] sm:$0xff] }
  0x8c   :  { %2740 = vperm.xlu1 %3896, %v2633_v7   ;;  %2755 = vperm.xlu0 %3895, %v2636_v9   ;;  %v4113_v9 = vld [vmem:[%s6364_s1 + $0x48c] ss:$8 sps:$4 sm:$0xff]  }
  0x90   :  { %2750 = vperm.xlu1 %3896, %v2635_v8   ;;  %v4111_v8 = vld [vmem:[%s6364_s1 + $0x324] ss:$8 sps:$4 sm:$0xff]  }
  0x92   :  { %618 = vmatmul.mubr.bf16.gmra.mrb[40].mxu0 %v4009_v10  ;;  %1152 = vmatmul.mubr.bf16.gmra.mrb[40].mxu1 %v4010_v11  ;;  %v97_v10 = vld [vmem:[%s6364_s1 + $0x160] sm:$0xff]  ;;  %v3604_v11 = vld [vmem:[%s6364_s1 + $0x2c8] sm:$0xff] }
  0x93   :  { %627 = vmatprep.mubr.bf16.mxu0 %v4011_v12  ;;  %1161 = vmatprep.mubr.bf16.mxu1 %v4013_v13  ;;  %v4075_v12 = vld [vmem:[%s6364_s1 + $0x150] ss:$8 sps:$4 sm:$0xff]  }
  0x94   :  { %v4076_v13 = vld [vmem:[%s6364_s1 + $0x2b8] ss:$8 sps:$4 sm:$0xff]  }
  0x9a   :  { %628 = vmatmul.mubr.bf16.gmra.mrb[44].mxu0 %v4015_v14  ;;  %1162 = vmatmul.mubr.bf16.gmra.mrb[44].mxu1 %v4016_v15  ;;  %v2650_v14 = vld [vmem:[%s6365_s2 + $0x100] sm:$0xff]  ;;  %v3527_v15 = vcombine.high %v97_v10, %v97_v10 }
  0x9b   :  { %637 = vmatprep.mubr.bf16.mxu0 %v4017_v16  ;;  %1171 = vmatprep.mubr.bf16.mxu1 %v4019_v17  ;;  %v3650_v16 = vcombine.high %v3604_v11, %v3604_v11  ;;  %v2637_v17 = vld [vmem:[%s6365_s2 + $0x98] sm:$0xff] }
  0x9c   :  { %2825 = vperm.xlu0 %3895, %v2650_v14   ;;  %2760 = vperm.xlu1 %3896, %v2637_v17  }
  0xa2   :  { %638 = vmatmul.mubr.bf16.gmra.mrb[48].mxu0 %v4021_v18  ;;  %1172 = vmatmul.mubr.bf16.gmra.mrb[48].mxu1 %v4022_v19  ;;  %v2651_v18 = vld [vmem:[%s6365_s2 + $0x108] sm:$0xff]  ;;  %v2638_v19 = vld [vmem:[%s6365_s2 + $0xa0] sm:$0xff] }
  0xa3   :  { %647 = vmatprep.mubr.bf16.mxu0 %v4023_v20  ;;  %1181 = vmatprep.mubr.bf16.mxu1 %v4025_v21  ;;  %v3526_v20 = vcombine.low %v97_v10, %v97_v10  ;;  %v3649_v21 = vcombine.low %v3604_v11, %v3604_v11 }
  0xa4   :  { %2765 = vperm.xlu0 %3895, %v2638_v19   ;;  %2830 = vperm.xlu1 %3896, %v2651_v18   ;;  %v4115_v19 = vld [vmem:[%s6364_s1 + $0x320] ss:$8 sps:$4 sm:$0xff]  }
  0xaa   :  { %648 = vmatmul.mubr.bf16.gmra.mrb[52].mxu0 %v4027_v22  ;;  %1182 = vmatmul.mubr.bf16.gmra.mrb[52].mxu1 %v4028_v23  ;;  %v2652_v22 = vld [vmem:[%s6365_s2 + $0x110] sm:$0xff] }
  0xab   :  { %657 = vmatprep.mubr.bf16.mxu0 %v4029_v24  ;;  %1191 = vmatprep.mubr.bf16.mxu1 %v4031_v25  ;;  %v4083_v23 = vld [vmem:[%s6364_s1 + $0x2d4] ss:$8 sps:$4 sm:$0xff]   ;;  %v2639_v25 = vld [vmem:[%s6365_s2 + $0xa8] sm:$0xff] }
  0xac   :  { %v4086_v24 = vld [vmem:[%s6364_s1 + $0x43c] ss:$8 sps:$4 sm:$0xff]   ;;  %2835 = vperm.xlu0 %3895, %v2652_v22   ;;  %2770 = vperm.xlu1 %3896, %v2639_v25  }
  0xb2   :  { %658 = vmatmul.mubr.bf16.gmra.mrb[56].mxu0 %v4033_v26  ;;  %1192 = vmatmul.mubr.bf16.gmra.mrb[56].mxu1 %v4034_v27  ;;  %v2653_v26 = vld [vmem:[%s6365_s2 + $0x118] sm:$0xff]  ;;  %v2640_v27 = vld [vmem:[%s6365_s2 + $0xb0] sm:$0xff] }
  0xb3   :  { %667 = vmatprep.mubr.bf16.mxu0 %v4035_v28  ;;  %1201 = vmatprep.mubr.bf16.mxu1 %v4037_v29  ;;  %v4081_v28 = vld [vmem:[%s6364_s1 + $0x2d0] ss:$8 sps:$4 sm:$0xff]  }
  0xb4   :  { %2775 = vperm.xlu0 %3895, %v2640_v27   ;;  %2840 = vperm.xlu1 %3896, %v2653_v26   ;;  %v4084_v29 = vld [vmem:[%s6364_s1 + $0x438] ss:$8 sps:$4 sm:$0xff]  }
  0xba   :  { %668 = vmatmul.mubr.bf16.gmra.mrb[60].mxu0 %v4039_v30  ;;  %1202 = vmatmul.mubr.bf16.gmra.mrb[60].mxu1 %v4040_v31  ;;  %v2654_v30 = vld [vmem:[%s6365_s2 + $0x120] sm:$0xff] }
  0xbb   :  { %677 = vmatprep.mubr.bf16.mxu0 %v4041_v32  ;;  %1211 = vmatprep.mubr.bf16.mxu1 %v4043_v33  ;;  %v4087_v31 = vld [vmem:[%s6364_s1 + $0x2e4] ss:$8 sps:$4 sm:$0xff]   ;;  %v2641_v33 = vld [vmem:[%s6365_s2 + $0xb8] sm:$0xff] }
  0xbc   :  { %v4089_v32 = vld [vmem:[%s6364_s1 + $0x44c] ss:$8 sps:$4 sm:$0xff]   ;;  %2845 = vperm.xlu0 %3895, %v2654_v30   ;;  %2780 = vperm.xlu1 %3896, %v2641_v33  }
  0xbd   :  { %v3136_v33 = vld [vmem:[%s6366_s4 + $0x10] sm:$0xff]  ;;  %v4147_v30 = vld [vmem:[%s6364_s1 + $0x384] ss:$8 sps:$4 sm:$0xff]  }
  0xc2   :  { %678 = vmatmul.mubr.bf16.gmra.mrb[64].mxu0 %v4045_v34  ;;  %1212 = vmatmul.mubr.bf16.gmra.mrb[64].mxu1 %v4046_v35  ;;  %v2655_v34 = vld [vmem:[%s6365_s2 + $0x128] sm:$0xff]  ;;  %v2642_v35 = vld [vmem:[%s6365_s2 + $0xc0] sm:$0xff] }
  0xc3   :  { %687 = vmatprep.mubr.bf16.mxu0 %v4047_v38  ;;  %1221 = vmatprep.mubr.bf16.mxu1 %v4049_v39  ;;  %v4092_v38 = vld [vmem:[%s6364_s1 + $0x448] ss:$8 sps:$4 sm:$0xff]  }
  0xc4   :  { %2785 = vperm.xlu0 %3895, %v2642_v35   ;;  %2850 = vperm.xlu1 %3896, %v2655_v34   ;;  %v2656_v39 = vld [vmem:[%s6365_s2 + $0x130] sm:$0xff]  ;;  %v3138_v35 = vld [vmem:[%s6366_s4 + $0x20] sm:$0xff] }
  0xc8   :  { %2855 = vperm.xlu0 %3895, %v2656_v39  }
  0xca   :  { %688 = vmatmul.mubr.bf16.gmra.mrb[68].mxu0 %v4051_v42  ;;  %1222 = vmatmul.mubr.bf16.gmra.mrb[68].mxu1 %v4052_v43  ;;  %v2643_v42 = vld [vmem:[%s6365_s2 + $0xc8] sm:$0xff]  ;;  %v2657_v43 = vld [vmem:[%s6365_s2 + $0x138] sm:$0xff] }
  0xcb   :  { %697 = vmatprep.mubr.bf16.mxu0 %v4053_v45  ;;  %1231 = vmatprep.mubr.bf16.mxu1 %v4055_v46  ;;  %v4097_v45 = vld [vmem:[%s6364_s1 + $0x2f0] ss:$8 sps:$4 sm:$0xff]  }
  0xcc   :  { %2790 = vperm.xlu1 %3896, %v2643_v42   ;;  %2795 = vperm.xlu0 %3895, %v2644_v44   ;;  %v4098_v46 = vld [vmem:[%s6364_s1 + $0x458] ss:$8 sps:$4 sm:$0xff]  }
  0xcd   :  { %v4122_v44 = vld [vmem:[%s6364_s1 + $0x498] ss:$8 sps:$4 sm:$0xff]  }
  0xd0   :  { %2860 = vperm.xlu1 %3896, %v2657_v43   ;;  %2865 = vperm.xlu0 %3895, %v2658_v47  }
  0xd2   :  { %698 = vmatmul.mubr.bf16.gmra.mrb[72].mxu0 %v4057_v50  ;;  %1232 = vmatmul.mubr.bf16.gmra.mrb[72].mxu1 %v4058_v51  ;;  %v2645_v50 = vld [vmem:[%s6365_s2 + $0xd8] sm:$0xff]  ;;  %v2659_v51 = vld [vmem:[%s6365_s2 + $0x148] sm:$0xff] }
  0xd3   :  { %707 = vmatprep.mubr.bf16.mxu0 %v4059_v53  ;;  %1241 = vmatprep.mubr.bf16.mxu1 %v4061_v54  ;;  %v4103_v53 = vld [vmem:[%s6364_s1 + $0x300] ss:$8 sps:$4 sm:$0xff]  }
  0xd4   :  { %2800 = vperm.xlu1 %3896, %v2645_v50   ;;  %2805 = vperm.xlu0 %3895, %v2646_v52   ;;  %v4104_v54 = vld [vmem:[%s6364_s1 + $0x468] ss:$8 sps:$4 sm:$0xff]   ;;  %v4125_v50 = vld [vmem:[%s6364_s1 + $0x4ac] ss:$8 sps:$4 sm:$0xff]  }
  0xd8   :  { %2870 = vperm.xlu1 %3896, %v2659_v51   ;;  %2875 = vperm.xlu0 %3895, %v2660_v55  }
  0xda   :  { %708 = vmatmul.mubr.bf16.gmra.mrb[76].mxu0 %v4063_v58  ;;  %1242 = vmatmul.mubr.bf16.gmra.mrb[76].mxu1 %v4064_v59  ;;  %v2647_v58 = vld [vmem:[%s6365_s2 + $0xe8] sm:$0xff]  ;;  %v2661_v59 = vld [vmem:[%s6365_s2 + $0x158] sm:$0xff] }
  0xdb   :  { %717 = vmatprep.mubr.bf16.mxu0 %v4065_v61  ;;  %1251 = vmatprep.mubr.bf16.mxu1 %v4067_v62 }
  0xdc   :  { %2810 = vperm.xlu1 %3896, %v2647_v58   ;;  %2815 = vperm.xlu0 %3895, %v2648_v60   ;;  %v4139_v60 = vld [vmem:[%s6364_s1 + $0x360] ss:$8 sps:$4 sm:$0xff]  }
  0xe0   :  { %2880 = vperm.xlu1 %3896, %v2661_v59   ;;  %2885 = vperm.xlu0 %3895, %v2662_v4   ;;  %v4127_v4 = vld [vmem:[%s6364_s1 + $0x340] ss:$8 sps:$4 sm:$0xff]  }
  0xe2   :  { %718 = vmatmul.mubr.bf16.gmra.mrb[80].mxu0 %v4069_v2  ;;  %1252 = vmatmul.mubr.bf16.gmra.mrb[80].mxu1 %v4070_v3  ;;  %v4110_v3 = vld [vmem:[%s6364_s1 + $0x478] ss:$8 sps:$4 sm:$0xff]  }
  0xe3   :  { %727 = vmatprep.mubr.bf16.mxu0 %v4071_v5  ;;  %1261 = vmatprep.mubr.bf16.mxu1 %v4073_v6 }
  0xea   :  { %728 = vmatmul.mubr.bf16.gmra.mrb[84].mxu0 %v4075_v12  ;;  %1262 = vmatmul.mubr.bf16.gmra.mrb[84].mxu1 %v4076_v13  ;;  %v2649_v13 = vld [vmem:[%s6365_s2 + $0xf8] sm:$0xff] }
  0xeb   :  { %737 = vmatprep.mubr.bf16.mxu0 %v3527_v15  ;;  %1271 = vmatprep.mubr.bf16.mxu1 %v3650_v16  ;;  %v3134_v15 = vld [vmem:[%s6366_s4] sm:$0xff]  ;;  %v3135_v16 = vld [vmem:[%s6366_s4 + $0x8] sm:$0xff] }
  0xec   :  { %2820 = vperm.xlu1 %3896, %v2649_v13   ;;  %3151 = vperm.xlu0 %3895, %v3135_v16   ;;  %v4129_v16 = vld [vmem:[%s6364_s1 + $0x354] ss:$8 sps:$4 sm:$0xff]  }
  0xf0   :  { %3146 = vperm.xlu1 %3896, %v3134_v15  }
  0xf2   :  { %738 = vmatmul.mubr.bf16.gmra.mrb[88].mxu0 %v3526_v20  ;;  %1272 = vmatmul.mubr.bf16.gmra.mrb[88].mxu1 %v3649_v21  ;;  %v4145_v20 = vld [vmem:[%s6364_s1 + $0x370] ss:$8 sps:$4 sm:$0xff]  }
  0xf3   :  { %1675 = vmatprep.mubr.bf16.mxu0 %v4083_v23  ;;  %2299 = vmatprep.mubr.bf16.mxu1 %v4086_v24  ;;  %v4116_v23 = vld [vmem:[%s6364_s1 + $0x488] ss:$8 sps:$4 sm:$0xff]   ;;  %v3137_v24 = vld [vmem:[%s6366_s4 + $0x18] sm:$0xff] }
  0xf4   :  { %3161 = vperm.xlu0 %3895, %v3137_v24   ;;  %3156 = vperm.xlu1 %3896, %v3136_v33  }
  0xf8   :  { %3166 = vperm.xlu1 %3896, %v3138_v35  }
  0xfa   :  { %1676 = vmatmul.mubr.bf16.vlgmr.msra.gmra.mrb[92].mxu0 %v4081_v28  ;;  %2300 = vmatmul.mubr.bf16.vlgmr.msra.gmra.mrb[92].mxu1 %v4084_v29  ;;  %v4117_v28 = vld [vmem:[%s6364_s1 + $0x334] ss:$8 sps:$4 sm:$0xff]  }
  0xfb   :  { %1685 = vmatprep.mubr.bf16.mxu0 %v4087_v31  ;;  %2309 = vmatprep.mubr.bf16.mxu1 %v4089_v32  ;;  %v4119_v29 = vld [vmem:[%s6364_s1 + $0x49c] ss:$8 sps:$4 sm:$0xff]  }
 0x102   :  { %1686 = vmatmul.mubr.bf16.gmra.mrb[96].mxu0 %v4091_v37  ;;  %2310 = vmatmul.mubr.bf16.gmra.mrb[96].mxu1 %v4092_v38  ;;  %v3139_v37 = vld [vmem:[%s6366_s4 + $0x28] sm:$0xff] }
 0x103   :  { %1695 = vmatprep.mubr.bf16.mxu0 %v4093_v40  ;;  %2319 = vmatprep.mubr.bf16.mxu1 %v4095_v41  ;;  %v4121_v40 = vld [vmem:[%s6364_s1 + $0x330] ss:$8 sps:$4 sm:$0xff]  }
 0x104   :  { %3171 = vperm.xlu0 %3895, %v3139_v37  }
 0x10a   :  { %1696 = vmatmul.mubr.bf16.gmra.mrb[100].mxu0 %v4097_v45  ;;  %2320 = vmatmul.mubr.bf16.gmra.mrb[100].mxu1 %v4098_v46  ;;  %v3141_v45 = vld [vmem:[%s6366_s4 + $0x38] sm:$0xff] }
 0x10b   :  { %1705 = vmatprep.mubr.bf16.mxu0 %v4099_v48  ;;  %2329 = vmatprep.mubr.bf16.mxu1 %v4101_v49  ;;  %v4123_v49 = vld [vmem:[%s6364_s1 + $0x344] ss:$8 sps:$4 sm:$0xff]  }
 0x10c   :  { %3181 = vperm.xlu0 %3895, %v3141_v45   ;;  %v4133_v45 = vld [vmem:[%s6364_s1 + $0x350] ss:$8 sps:$4 sm:$0xff]  }
 0x112   :  { %1706 = vmatmul.mubr.bf16.gmra.mrb[104].mxu0 %v4103_v53  ;;  %2330 = vmatmul.mubr.bf16.gmra.mrb[104].mxu1 %v4104_v54  ;;  %v3140_v54 = vld [vmem:[%s6366_s4 + $0x30] sm:$0xff] }
 0x113   :  { %1715 = vmatprep.mubr.bf16.mxu0 %v4105_v56  ;;  %2339 = vmatprep.mubr.bf16.mxu1 %v4107_v57  ;;  %v3142_v56 = vld [vmem:[%s6366_s4 + $0x40] sm:$0xff]  ;;  %v3143_v57 = vld [vmem:[%s6366_s4 + $0x48] sm:$0xff] }
 0x114   :  { %3176 = vperm.xlu1 %3896, %v3140_v54   ;;  %3191 = vperm.xlu0 %3895, %v3143_v57   ;;  %v4135_v57 = vld [vmem:[%s6364_s1 + $0x364] ss:$8 sps:$4 sm:$0xff]  }
 0x115   :  { %v5011_v61 = vpop.f32.mrb[0].mxu0  ;;  %v5013_v62 = vpop.f32.mrb[0].mxu1 }
 0x116   :  { %v5020_v1 = vpop.f32.mrb[1].mxu0  ;;  %v5022_v2 = vpop.f32.mrb[1].mxu1 }
 0x117   :  { %v5032_v6 = vpop.f32.mrb[2].mxu0  ;;  %v5034_v7 = vpop.f32.mrb[2].mxu1 }
 0x118   :  { %v5044_v11 = vpop.f32.mrb[3].mxu0  ;;  %v5046_v12 = vpop.f32.mrb[3].mxu1  ;;  %3186 = vperm.xlu1 %3896, %v3142_v56  }
 0x11a   :  { %1716 = vmatmul.mubr.bf16.gmra.mrb[108].mxu0 %v4109_v63  ;;  %2340 = vmatmul.mubr.bf16.gmra.mrb[108].mxu1 %v4110_v3 }
 0x11b   :  { %1725 = vmatprep.mubr.bf16.mxu0 %v4111_v8  ;;  %2349 = vmatprep.mubr.bf16.mxu1 %v4113_v9  ;;  %v4128_v8 = vld [vmem:[%s6364_s1 + $0x4a8] ss:$8 sps:$4 sm:$0xff]  }
 0x11d   :  { %v5059_v17 = vpop.f32.mrb[4].mxu0  ;;  %v5061_v18 = vpop.f32.mrb[4].mxu1 }
 0x11e   :  { %v5068_v21 = vpop.f32.mrb[5].mxu0  ;;  %v5070_v22 = vpop.f32.mrb[5].mxu1 }
 0x11f   :  { %v5080_v26 = vpop.f32.mrb[6].mxu0  ;;  %v5082_v27 = vpop.f32.mrb[6].mxu1 }
 0x120   :  { %v5092_v31 = vpop.f32.mrb[7].mxu0  ;;  %v5094_v32 = vpop.f32.mrb[7].mxu1 }
 0x122   :  { %1726 = vmatmul.mubr.bf16.gmra.mrb[112].mxu0 %v4115_v19  ;;  %2350 = vmatmul.mubr.bf16.gmra.mrb[112].mxu1 %v4116_v23  ;;  %v4131_v19 = vld [vmem:[%s6364_s1 + $0x4bc] ss:$8 sps:$4 sm:$0xff]  }
 0x123   :  { %1735 = vmatprep.mubr.bf16.mxu0 %v4117_v28  ;;  %2359 = vmatprep.mubr.bf16.mxu1 %v4119_v29  ;;  %v4141_v23 = vld [vmem:[%s6364_s1 + $0x374] ss:$8 sps:$4 sm:$0xff]  }
 0x125   :  { %v5107_v38 = vpop.f32.mrb[8].mxu0  ;;  %v5109_v39 = vpop.f32.mrb[8].mxu1 }
 0x126   :  { %v5116_v42 = vpop.f32.mrb[9].mxu0  ;;  %v5118_v43 = vpop.f32.mrb[9].mxu1 }
 0x127   :  { %v5128_v47 = vpop.f32.mrb[10].mxu0  ;;  %v5130_v48 = vpop.f32.mrb[10].mxu1 }
 0x128   :  { %v5140_v52 = vpop.f32.mrb[11].mxu0  ;;  %v5142_v53 = vpop.f32.mrb[11].mxu1 }
 0x12a   :  { %1736 = vmatmul.mubr.bf16.gmra.mrb[116].mxu0 %v4121_v40  ;;  %2360 = vmatmul.mubr.bf16.gmra.mrb[116].mxu1 %v4122_v44 }
 0x12b   :  { %1745 = vmatprep.mubr.bf16.mxu0 %v4123_v49  ;;  %2369 = vmatprep.mubr.bf16.mxu1 %v4125_v50  ;;  %v4134_v49 = vld [vmem:[%s6364_s1 + $0x4b8] ss:$8 sps:$4 sm:$0xff]   ;;  %v4143_v50 = vld [vmem:[%s6364_s1 + $0x4dc] ss:$8 sps:$4 sm:$0xff]  }
 0x12d   :  { %v5155_v58 = vpop.f32.mrb[12].mxu0  ;;  %v5157_v59 = vpop.f32.mrb[12].mxu1 }
 0x12e   :  { %v5161_v63 = vpop.f32.mrb[13].mxu0  ;;  %v5163_v3 = vpop.f32.mrb[13].mxu1 }
 0x12f   :  { %v5173_v13 = vpop.f32.mrb[14].mxu0  ;;  %v5175_v15 = vpop.f32.mrb[14].mxu1 }
 0x130   :  { %v5185_v24 = vpop.f32.mrb[15].mxu0  ;;  %v5187_v28 = vpop.f32.mrb[15].mxu1 }
 0x132   :  { %1746 = vmatmul.mubr.bf16.gmra.mrb[120].mxu0 %v4127_v4  ;;  %2370 = vmatmul.mubr.bf16.gmra.mrb[120].mxu1 %v4128_v8  ;;  %v4137_v4 = vld [vmem:[%s6364_s1 + $0x4cc] ss:$8 sps:$4 sm:$0xff]  }
 0x133   :  { %1755 = vmatprep.mubr.bf16.mxu0 %v4129_v16  ;;  %2379 = vmatprep.mubr.bf16.mxu1 %v4131_v19 }
 0x135   :  { %v5191_v33 = vpop.f32.mrb[16].mxu0  ;;  %v5193_v35 = vpop.f32.mrb[16].mxu1 }
 0x136   :  { %v5197_v40 = vpop.f32.mrb[17].mxu0  ;;  %v5199_v44 = vpop.f32.mrb[17].mxu1 }
 0x137   :  { %v5209_v54 = vpop.f32.mrb[18].mxu0  ;;  %v5211_v56 = vpop.f32.mrb[18].mxu1 }
 0x138   :  { %v5221_v16 = vpop.f32.mrb[19].mxu0  ;;  %v5223_v19 = vpop.f32.mrb[19].mxu1 }
 0x13a   :  { %1756 = vmatmul.mubr.bf16.gmra.mrb[124].mxu0 %v4133_v45  ;;  %2380 = vmatmul.mubr.bf16.gmra.mrb[124].mxu1 %v4134_v49  ;;  %v4140_v45 = vld [vmem:[%s6364_s1 + $0x4c8] ss:$8 sps:$4 sm:$0xff]   ;;  %v4149_v49 = vld [vmem:[%s6364_s1 + $0x4ec] ss:$8 sps:$4 sm:$0xff]  }
 0x13b   :  { %1765 = vmatprep.mubr.bf16.mxu0 %v4135_v57  ;;  %2389 = vmatprep.mubr.bf16.mxu1 %v4137_v4 }
 0x13d   :  { %v5227_v37 = vpop.f32.mrb[20].mxu0  ;;  %v5229_v29 = vpop.f32.mrb[20].mxu1 }
 0x13e   :  { %6515 = vst [vmem:[#allocation2_spill] sm:$0xff] %v5227_v37  ;;  %6516 = vst [vmem:[#allocation3_spill] sm:$0xff] %v5229_v29  ;;  %v5233_v9 = vpop.f32.mrb[21].mxu0  ;;  %v5235_v8 = vpop.f32.mrb[21].mxu1 }
 0x13f   :  { %6517 = vst [vmem:[#allocation4_spill] sm:$0xff] %v5233_v9  ;;  %6518 = vst [vmem:[#allocation5_spill] sm:$0xff] %v5235_v8  ;;  %v5245_v57 = vpop.f32.mrb[22].mxu0  ;;  %v5247_v4 = vpop.f32.mrb[22].mxu1 }
 0x140   :  { %6519 = vst [vmem:[#allocation6_spill] sm:$0xff] %v5245_v57  ;;  %6520 = vst [vmem:[#allocation7_spill] sm:$0xff] %v5247_v4  ;;  %v5257_v51 = vpop.f32.mrb[23].mxu0  ;;  %v5259_v46 = vpop.f32.mrb[23].mxu1 }
 0x141   :  { %6521 = vst [vmem:[#allocation8_spill] sm:$0xff] %v5257_v51  ;;  %6522 = vst [vmem:[#allocation9_spill] sm:$0xff] %v5259_v46 }
 0x142   :  { %1766 = vmatmul.mubr.bf16.gmra.mrb[128].mxu0 %v4139_v60  ;;  %2390 = vmatmul.mubr.bf16.gmra.mrb[128].mxu1 %v4140_v45  ;;  %v4146_v60 = vld [vmem:[%s6364_s1 + $0x4d8] ss:$8 sps:$4 sm:$0xff]  }
 0x143   :  { %1775 = vmatprep.mubr.bf16.mxu0 %v4141_v23  ;;  %2399 = vmatprep.mubr.bf16.mxu1 %v4143_v50  ;;  %v4155_v23 = vld [vmem:[%s6364_s1 + $0x4fc] ss:$8 sps:$4 sm:$0xff]  }
 0x145   :  { %v5263_v41 = vpop.f32.mrb[24].mxu0  ;;  %v5265_v34 = vpop.f32.mrb[24].mxu1 }
 0x146   :  { %6523 = vst [vmem:[#allocation10_spill] sm:$0xff] %v5263_v41  ;;  %6524 = vst [vmem:[#allocation11_spill] sm:$0xff] %v5265_v34  ;;  %v5269_v25 = vpop.f32.mrb[25].mxu0  ;;  %v5271_v55 = vpop.f32.mrb[25].mxu1 }
 0x147   :  { %6525 = vst [vmem:[#allocation12_spill] sm:$0xff] %v5269_v25  ;;  %6526 = vst [vmem:[#allocation13_spill] sm:$0xff] %v5271_v55  ;;  %v5281_v50 = vpop.f32.mrb[26].mxu0  ;;  %v5283_v45 = vpop.f32.mrb[26].mxu1  ;;  %v4153_v55 = vld [vmem:[%s6364_s1 + $0x394] ss:$8 sps:$4 sm:$0xff]  }
 0x148   :  { %6527 = vst [vmem:[#allocation14_spill] sm:$0xff] %v5281_v50  ;;  %6528 = vst [vmem:[#allocation15_spill] sm:$0xff] %v5283_v45  ;;  %v5293_v10 = vpop.f32.mrb[27].mxu0  ;;  %v5295_v5 = vpop.f32.mrb[27].mxu1  ;;  %v4151_v45 = vld [vmem:[%s6364_s1 + $0x380] ss:$8 sps:$4 sm:$0xff]  }
 0x149   :  { %6529 = vst [vmem:[#allocation16_spill] sm:$0xff] %v5293_v10  ;;  %6530 = vst [vmem:[#allocation17_spill] sm:$0xff] %v5295_v5  ;;  %v4159_v10 = vld [vmem:[%s6364_s1 + $0x3a4] ss:$8 sps:$4 sm:$0xff]  }
 0x14a   :  { %1776 = vmatmul.mubr.bf16.gmra.mrb[132].mxu0 %v4145_v20  ;;  %2400 = vmatmul.mubr.bf16.gmra.mrb[132].mxu1 %v4146_v60  ;;  %v4152_v20 = vld [vmem:[%s6364_s1 + $0x4e8] ss:$8 sps:$4 sm:$0xff]  }
 0x14b   :  { %1785 = vmatprep.mubr.bf16.mxu0 %v4147_v30  ;;  %2409 = vmatprep.mubr.bf16.mxu1 %v4149_v49  ;;  %v4161_v30 = vld [vmem:[%s6364_s1 + $0x50c] ss:$8 sps:$4 sm:$0xff]  }
 0x14d   :  { %v5299_v0 = vpop.f32.mrb[28].mxu0  ;;  %v5301_v36 = vpop.f32.mrb[28].mxu1 }
 0x14e   :  { %6531 = vst [vmem:[#allocation18_spill] sm:$0xff] %v5299_v0  ;;  %6532 = vst [vmem:[#allocation19_spill] sm:$0xff] %v5301_v36  ;;  %v5305_v25 = vpop.f32.mrb[29].mxu0  ;;  %v5307_v14 = vpop.f32.mrb[29].mxu1 }
 0x14f   :  { %6533 = vst [vmem:[#allocation20_spill] sm:$0xff] %v5305_v25  ;;  %6534 = vst [vmem:[#allocation21_spill] sm:$0xff] %v5307_v14  ;;  %v5317_v49 = vpop.f32.mrb[30].mxu0  ;;  %v5319_v60 = vpop.f32.mrb[30].mxu1 }
 0x150   :  { %6535 = vst [vmem:[#allocation22_spill] sm:$0xff] %v5317_v49  ;;  %6536 = vst [vmem:[#allocation23_spill] sm:$0xff] %v5319_v60  ;;  %v5329_v0 = vpop.f32.mrb[31].mxu0  ;;  %v5331_v5 = vpop.f32.mrb[31].mxu1  ;;  %v4157_v60 = vld [vmem:[%s6364_s1 + $0x390] ss:$8 sps:$4 sm:$0xff]  }
 0x151   :  { %6537 = vst [vmem:[#allocation24_spill] sm:$0xff] %v5329_v0  ;;  %6538 = vst [vmem:[#allocation25_spill] sm:$0xff] %v5331_v5  ;;  %v4165_v0 = vld [vmem:[%s6364_s1 + $0x3b4] ss:$8 sps:$4 sm:$0xff]  }
 0x152   :  { %1786 = vmatmul.mubr.bf16.gmra.mrb[136].mxu0 %v4151_v45  ;;  %2410 = vmatmul.mubr.bf16.gmra.mrb[136].mxu1 %v4152_v20 }
 0x153   :  { %1795 = vmatprep.mubr.bf16.mxu0 %v4153_v55  ;;  %2419 = vmatprep.mubr.bf16.mxu1 %v4155_v23  ;;  %v4158_v55 = vld [vmem:[%s6364_s1 + $0x4f8] ss:$8 sps:$4 sm:$0xff]   ;;  %v4167_v23 = vld [vmem:[%s6364_s1 + $0x51c] ss:$8 sps:$4 sm:$0xff]  }
 0x155   :  { %v5335_v14 = vpop.f32.mrb[32].mxu0  ;;  %v5337_v25 = vpop.f32.mrb[32].mxu1 }
 0x156   :  { %6539 = vst [vmem:[#allocation26_spill] sm:$0xff] %v5335_v14  ;;  %6540 = vst [vmem:[#allocation27_spill] sm:$0xff] %v5337_v25  ;;  %v5341_v50 = vpop.f32.mrb[33].mxu0  ;;  %v5343_v36 = vpop.f32.mrb[33].mxu1 }
 0x157   :  { %6541 = vst [vmem:[#allocation28_spill] sm:$0xff] %v5341_v50  ;;  %6542 = vst [vmem:[#allocation29_spill] sm:$0xff] %v5343_v36  ;;  %v5353_v45 = vpop.f32.mrb[34].mxu0  ;;  %v5355_v20 = vpop.f32.mrb[34].mxu1 }
 0x158   :  { %6543 = vst [vmem:[#allocation30_spill] sm:$0xff] %v5353_v45  ;;  %6544 = vst [vmem:[#allocation31_spill] sm:$0xff] %v5355_v20  ;;  %v5365_v14 = vpop.f32.mrb[35].mxu0  ;;  %v5367_v5 = vpop.f32.mrb[35].mxu1  ;;  %v4163_v20 = vld [vmem:[%s6364_s1 + $0x3a0] ss:$8 sps:$4 sm:$0xff]  }
 0x159   :  { %6545 = vst [vmem:[#allocation32_spill] sm:$0xff] %v5365_v14  ;;  %6546 = vst [vmem:[#allocation33_spill] sm:$0xff] %v5367_v5  ;;  %v4171_v14 = vld [vmem:[%s6364_s1 + $0x3c4] ss:$8 sps:$4 sm:$0xff]  }
 0x15a   :  { %1796 = vmatmul.mubr.bf16.gmra.mrb[140].mxu0 %v4157_v60  ;;  %2420 = vmatmul.mubr.bf16.gmra.mrb[140].mxu1 %v4158_v55 }
 0x15b   :  { %1805 = vmatprep.mubr.bf16.mxu0 %v4159_v10  ;;  %2429 = vmatprep.mubr.bf16.mxu1 %v4161_v30  ;;  %v4164_v10 = vld [vmem:[%s6364_s1 + $0x508] ss:$8 sps:$4 sm:$0xff]   ;;  %v4173_v30 = vld [vmem:[%s6364_s1 + $0x52c] ss:$8 sps:$4 sm:$0xff]  }
 0x15d   :  { %v5371_v36 = vpop.f32.mrb[36].mxu0  ;;  %v5373_v50 = vpop.f32.mrb[36].mxu1 }
 0x15e   :  { %6547 = vst [vmem:[#allocation34_spill] sm:$0xff] %v5371_v36  ;;  %6548 = vst [vmem:[#allocation35_spill] sm:$0xff] %v5373_v50  ;;  %v5377_v49 = vpop.f32.mrb[37].mxu0  ;;  %v5379_v25 = vpop.f32.mrb[37].mxu1 }
 0x15f   :  { %6549 = vst [vmem:[#allocation36_spill] sm:$0xff] %v5377_v49  ;;  %6550 = vst [vmem:[#allocation37_spill] sm:$0xff] %v5379_v25  ;;  %v5389_v60 = vpop.f32.mrb[38].mxu0  ;;  %v5391_v55 = vpop.f32.mrb[38].mxu1 }
 0x160   :  { %6551 = vst [vmem:[#allocation38_spill] sm:$0xff] %v5389_v60  ;;  %6552 = vst [vmem:[#allocation39_spill] sm:$0xff] %v5391_v55  ;;  %v5401_v36 = vpop.f32.mrb[39].mxu0  ;;  %v5403_v5 = vpop.f32.mrb[39].mxu1  ;;  %v4169_v55 = vld [vmem:[%s6364_s1 + $0x3b0] ss:$8 sps:$4 sm:$0xff]  }
 0x161   :  { %6553 = vst [vmem:[#allocation40_spill] sm:$0xff] %v5401_v36  ;;  %6554 = vst [vmem:[#allocation41_spill] sm:$0xff] %v5403_v5  ;;  %v4177_v36 = vld [vmem:[%s6364_s1 + $0x3d4] ss:$8 sps:$4 sm:$0xff]  }
 0x162   :  { %1806 = vmatmul.mubr.bf16.gmra.mrb[144].mxu0 %v4163_v20  ;;  %2430 = vmatmul.mubr.bf16.gmra.mrb[144].mxu1 %v4164_v10 }
 0x163   :  { %1815 = vmatprep.mubr.bf16.mxu0 %v4165_v0  ;;  %2439 = vmatprep.mubr.bf16.mxu1 %v4167_v23  ;;  %v4170_v0 = vld [vmem:[%s6364_s1 + $0x518] ss:$8 sps:$4 sm:$0xff]   ;;  %v4179_v23 = vld [vmem:[%s6364_s1 + $0x53c] ss:$8 sps:$4 sm:$0xff]  }
 0x165   :  { %v5407_v25 = vpop.f32.mrb[40].mxu0  ;;  %v5409_v49 = vpop.f32.mrb[40].mxu1 }
 0x166   :  { %6555 = vst [vmem:[#allocation42_spill] sm:$0xff] %v5407_v25  ;;  %6556 = vst [vmem:[#allocation43_spill] sm:$0xff] %v5409_v49  ;;  %v5413_v45 = vpop.f32.mrb[41].mxu0  ;;  %v5415_v50 = vpop.f32.mrb[41].mxu1 }
 0x167   :  { %6557 = vst [vmem:[#allocation44_spill] sm:$0xff] %v5413_v45  ;;  %6558 = vst [vmem:[#allocation45_spill] sm:$0xff] %v5415_v50  ;;  %v5425_v20 = vpop.f32.mrb[42].mxu0  ;;  %v5427_v10 = vpop.f32.mrb[42].mxu1 }
 0x168   :  { %6559 = vst [vmem:[#allocation46_spill] sm:$0xff] %v5425_v20  ;;  %6560 = vst [vmem:[#allocation47_spill] sm:$0xff] %v5427_v10  ;;  %v5437_v25 = vpop.f32.mrb[43].mxu0  ;;  %v5439_v5 = vpop.f32.mrb[43].mxu1  ;;  %v4175_v10 = vld [vmem:[%s6364_s1 + $0x3c0] ss:$8 sps:$4 sm:$0xff]  }
 0x169   :  { %6561 = vst [vmem:[#allocation48_spill] sm:$0xff] %v5437_v25  ;;  %6562 = vst [vmem:[#allocation49_spill] sm:$0xff] %v5439_v5  ;;  %v4183_v25 = vld [vmem:[%s6364_s1 + $0x3e4] ss:$8 sps:$4 sm:$0xff]  }
 0x16a   :  { %1816 = vmatmul.mubr.bf16.gmra.mrb[148].mxu0 %v4169_v55  ;;  %2440 = vmatmul.mubr.bf16.gmra.mrb[148].mxu1 %v4170_v0 }
 0x16b   :  { %1825 = vmatprep.mubr.bf16.mxu0 %v4171_v14  ;;  %2449 = vmatprep.mubr.bf16.mxu1 %v4173_v30  ;;  %v4176_v14 = vld [vmem:[%s6364_s1 + $0x528] ss:$8 sps:$4 sm:$0xff]   ;;  %v4186_v30 = vld [vmem:[%s6364_s1 + $0x54c] ss:$8 sps:$4 sm:$0xff]  }
 0x16d   :  { %v5443_v50 = vpop.f32.mrb[44].mxu0  ;;  %v5445_v45 = vpop.f32.mrb[44].mxu1 }
 0x16e   :  { %6563 = vst [vmem:[#allocation50_spill] sm:$0xff] %v5443_v50  ;;  %6564 = vst [vmem:[#allocation51_spill] sm:$0xff] %v5445_v45  ;;  %v5449_v60 = vpop.f32.mrb[45].mxu0  ;;  %v5451_v49 = vpop.f32.mrb[45].mxu1 }
 0x16f   :  { %6565 = vst [vmem:[#allocation52_spill] sm:$0xff] %v5449_v60  ;;  %6566 = vst [vmem:[#allocation53_spill] sm:$0xff] %v5451_v49  ;;  %v5461_v55 = vpop.f32.mrb[46].mxu0  ;;  %v5463_v0 = vpop.f32.mrb[46].mxu1 }
 0x170   :  { %6567 = vst [vmem:[#allocation54_spill] sm:$0xff] %v5461_v55  ;;  %6568 = vst [vmem:[#allocation55_spill] sm:$0xff] %v5463_v0  ;;  %v5473_v50 = vpop.f32.mrb[47].mxu0  ;;  %v5475_v5 = vpop.f32.mrb[47].mxu1  ;;  %v4181_v0 = vld [vmem:[%s6364_s1 + $0x3d0] ss:$8 sps:$4 sm:$0xff]  }
 0x171   :  { %6569 = vst [vmem:[#allocation56_spill] sm:$0xff] %v5473_v50  ;;  %6570 = vst [vmem:[#allocation57_spill] sm:$0xff] %v5475_v5  ;;  %v4189_v50 = vld [vmem:[%s6364_s1 + $0x3f4] ss:$8 sps:$4 sm:$0xff]  }
 0x172   :  { %1826 = vmatmul.mubr.bf16.gmra.mrb[152].mxu0 %v4175_v10  ;;  %2450 = vmatmul.mubr.bf16.gmra.mrb[152].mxu1 %v4176_v14 }
 0x173   :  { %1835 = vmatprep.mubr.bf16.mxu0 %v4177_v36  ;;  %2459 = vmatprep.mubr.bf16.mxu1 %v4179_v23  ;;  %v4182_v36 = vld [vmem:[%s6364_s1 + $0x538] ss:$8 sps:$4 sm:$0xff]   ;;  %v4192_v23 = vld [vmem:[%s6364_s1 + $0x55c] ss:$8 sps:$4 sm:$0xff]  }
 0x175   :  { %v5479_v49 = vpop.f32.mrb[48].mxu0  ;;  %v5481_v60 = vpop.f32.mrb[48].mxu1 }
 0x176   :  { %6571 = vst [vmem:[#allocation58_spill] sm:$0xff] %v5479_v49  ;;  %6572 = vst [vmem:[#allocation59_spill] sm:$0xff] %v5481_v60  ;;  %v5485_v20 = vpop.f32.mrb[49].mxu0  ;;  %v5487_v45 = vpop.f32.mrb[49].mxu1 }
 0x177   :  { %6573 = vst [vmem:[#allocation60_spill] sm:$0xff] %v5485_v20  ;;  %6574 = vst [vmem:[#allocation61_spill] sm:$0xff] %v5487_v45  ;;  %v5497_v10 = vpop.f32.mrb[50].mxu0  ;;  %v5499_v14 = vpop.f32.mrb[50].mxu1 }
 0x178   :  { %6575 = vst [vmem:[#allocation62_spill] sm:$0xff] %v5497_v10  ;;  %6576 = vst [vmem:[#allocation63_spill] sm:$0xff] %v5499_v14  ;;  %v5509_v49 = vpop.f32.mrb[51].mxu0  ;;  %v5511_v5 = vpop.f32.mrb[51].mxu1  ;;  %v4185_v14 = vld [vmem:[%s6364_s1 + $0x3e0] ss:$8 sps:$4 sm:$0xff]  }
 0x179   :  { %6577 = vst [vmem:[#allocation64_spill] sm:$0xff] %v5509_v49  ;;  %6578 = vst [vmem:[#allocation65_spill] sm:$0xff] %v5511_v5  ;;  %v4195_v49 = vld [vmem:[%s6364_s1 + $0x404] ss:$8 sps:$4 sm:$0xff]  }
 0x17a   :  { %1836 = vmatmul.mubr.bf16.gmra.mrb[156].mxu0 %v4181_v0  ;;  %2460 = vmatmul.mubr.bf16.gmra.mrb[156].mxu1 %v4182_v36 }
 0x17b   :  { %1845 = vmatprep.mubr.bf16.mxu0 %v4183_v25  ;;  %2469 = vmatprep.mubr.bf16.mxu1 %v4186_v30  ;;  %v4188_v25 = vld [vmem:[%s6364_s1 + $0x548] ss:$8 sps:$4 sm:$0xff]   ;;  %v4198_v30 = vld [vmem:[%s6364_s1 + $0x56c] ss:$8 sps:$4 sm:$0xff]  }
 0x17d   :  { %v5515_v45 = vpop.f32.mrb[52].mxu0  ;;  %v5517_v20 = vpop.f32.mrb[52].mxu1 }
 0x17e   :  { %6579 = vst [vmem:[#allocation66_spill] sm:$0xff] %v5515_v45  ;;  %6580 = vst [vmem:[#allocation67_spill] sm:$0xff] %v5517_v20  ;;  %v5521_v55 = vpop.f32.mrb[53].mxu0  ;;  %v5523_v60 = vpop.f32.mrb[53].mxu1 }
 0x17f   :  { %6581 = vst [vmem:[#allocation68_spill] sm:$0xff] %v5521_v55  ;;  %6582 = vst [vmem:[#allocation69_spill] sm:$0xff] %v5523_v60  ;;  %v5533_v0 = vpop.f32.mrb[54].mxu0  ;;  %v5535_v36 = vpop.f32.mrb[54].mxu1 }
 0x180   :  { %6583 = vst [vmem:[#allocation70_spill] sm:$0xff] %v5533_v0  ;;  %6584 = vst [vmem:[#allocation71_spill] sm:$0xff] %v5535_v36  ;;  %v5545_v45 = vpop.f32.mrb[55].mxu0  ;;  %v5547_v5 = vpop.f32.mrb[55].mxu1  ;;  %v4191_v36 = vld [vmem:[%s6364_s1 + $0x3f0] ss:$8 sps:$4 sm:$0xff]  }
 0x181   :  { %6585 = vst [vmem:[#allocation72_spill] sm:$0xff] %v5545_v45  ;;  %6586 = vst [vmem:[#allocation73_spill] sm:$0xff] %v5547_v5  ;;  %v4201_v45 = vld [vmem:[%s6364_s1 + $0x414] ss:$8 sps:$4 sm:$0xff]  }
 0x182   :  { %1846 = vmatmul.mubr.bf16.gmra.mrb[160].mxu0 %v4185_v14  ;;  %2470 = vmatmul.mubr.bf16.gmra.mrb[160].mxu1 %v4188_v25 }
 0x183   :  { %1855 = vmatprep.mubr.bf16.mxu0 %v4189_v50  ;;  %2479 = vmatprep.mubr.bf16.mxu1 %v4192_v23  ;;  %v4194_v50 = vld [vmem:[%s6364_s1 + $0x558] ss:$8 sps:$4 sm:$0xff]   ;;  %v4204_v23 = vld [vmem:[%s6364_s1 + $0x57c] ss:$8 sps:$4 sm:$0xff]  }
 0x185   :  { %v5551_v60 = vpop.f32.mrb[56].mxu0  ;;  %v5553_v55 = vpop.f32.mrb[56].mxu1 }
 0x186   :  { %6587 = vst [vmem:[#allocation74_spill] sm:$0xff] %v5551_v60  ;;  %6588 = vst [vmem:[#allocation75_spill] sm:$0xff] %v5553_v55  ;;  %v5557_v10 = vpop.f32.mrb[57].mxu0  ;;  %v5559_v20 = vpop.f32.mrb[57].mxu1 }
 0x187   :  { %6589 = vst [vmem:[#allocation76_spill] sm:$0xff] %v5557_v10  ;;  %6590 = vst [vmem:[#allocation77_spill] sm:$0xff] %v5559_v20  ;;  %v5569_v14 = vpop.f32.mrb[58].mxu0  ;;  %v5571_v25 = vpop.f32.mrb[58].mxu1 }
 0x188   :  { %6591 = vst [vmem:[#allocation78_spill] sm:$0xff] %v5569_v14  ;;  %6592 = vst [vmem:[#allocation79_spill] sm:$0xff] %v5571_v25  ;;  %v5581_v60 = vpop.f32.mrb[59].mxu0  ;;  %v5583_v5 = vpop.f32.mrb[59].mxu1  ;;  %v4197_v25 = vld [vmem:[%s6364_s1 + $0x400] ss:$8 sps:$4 sm:$0xff]  }
 0x189   :  { %6593 = vst [vmem:[#allocation80_spill] sm:$0xff] %v5581_v60  ;;  %6594 = vst [vmem:[#allocation81_spill] sm:$0xff] %v5583_v5  ;;  %v4207_v60 = vld [vmem:[%s6364_s1 + $0x424] ss:$8 sps:$4 sm:$0xff]  }
 0x18a   :  { %1856 = vmatmul.mubr.bf16.gmra.mrb[164].mxu0 %v4191_v36  ;;  %2480 = vmatmul.mubr.bf16.gmra.mrb[164].mxu1 %v4194_v50 }
 0x18b   :  { %1865 = vmatprep.mubr.bf16.mxu0 %v4195_v49  ;;  %2489 = vmatprep.mubr.bf16.mxu1 %v4198_v30  ;;  %v4200_v49 = vld [vmem:[%s6364_s1 + $0x568] ss:$8 sps:$4 sm:$0xff]   ;;  %v4210_v30 = vld [vmem:[%s6364_s1 + $0x58c] ss:$8 sps:$4 sm:$0xff]  }
 0x18d   :  { %v5587_v20 = vpop.f32.mrb[60].mxu0  ;;  %v5589_v10 = vpop.f32.mrb[60].mxu1 }
 0x18e   :  { %6595 = vst [vmem:[#allocation82_spill] sm:$0xff] %v5587_v20  ;;  %6596 = vst [vmem:[#allocation83_spill] sm:$0xff] %v5589_v10  ;;  %v5593_v0 = vpop.f32.mrb[61].mxu0  ;;  %v5595_v55 = vpop.f32.mrb[61].mxu1 }
 0x18f   :  { %6597 = vst [vmem:[#allocation84_spill] sm:$0xff] %v5593_v0  ;;  %6598 = vst [vmem:[#allocation85_spill] sm:$0xff] %v5595_v55  ;;  %v5605_v36 = vpop.f32.mrb[62].mxu0  ;;  %v5607_v50 = vpop.f32.mrb[62].mxu1 }
 0x190   :  { %6599 = vst [vmem:[#allocation86_spill] sm:$0xff] %v5605_v36  ;;  %6600 = vst [vmem:[#allocation87_spill] sm:$0xff] %v5607_v50  ;;  %v5617_v20 = vpop.f32.mrb[63].mxu0  ;;  %v5619_v5 = vpop.f32.mrb[63].mxu1  ;;  %v4203_v50 = vld [vmem:[%s6364_s1 + $0x410] ss:$8 sps:$4 sm:$0xff]  }
 0x191   :  { %6601 = vst [vmem:[#allocation88_spill] sm:$0xff] %v5617_v20  ;;  %6602 = vst [vmem:[#allocation89_spill] sm:$0xff] %v5619_v5 }
 0x192   :  { %1866 = vmatmul.mubr.bf16.gmra.mrb[168].mxu0 %v4197_v25  ;;  %2490 = vmatmul.mubr.bf16.gmra.mrb[168].mxu1 %v4200_v49 }
 0x193   :  { %1875 = vmatprep.mubr.bf16.mxu0 %v4201_v45  ;;  %2499 = vmatprep.mubr.bf16.mxu1 %v4204_v23  ;;  %v4206_v45 = vld [vmem:[%s6364_s1 + $0x578] ss:$8 sps:$4 sm:$0xff]  }
 0x195   :  { %v5623_v55 = vpop.f32.mrb[64].mxu0  ;;  %v5625_v0 = vpop.f32.mrb[64].mxu1 }
 0x196   :  { %6603 = vst [vmem:[#allocation90_spill] sm:$0xff] %v5623_v55  ;;  %6604 = vst [vmem:[#allocation91_spill] sm:$0xff] %v5625_v0  ;;  %v5629_v14 = vpop.f32.mrb[65].mxu0  ;;  %v5631_v10 = vpop.f32.mrb[65].mxu1 }
 0x197   :  { %6605 = vst [vmem:[#allocation92_spill] sm:$0xff] %v5629_v14  ;;  %6606 = vst [vmem:[#allocation93_spill] sm:$0xff] %v5631_v10  ;;  %v5641_v25 = vpop.f32.mrb[66].mxu0  ;;  %v5643_v49 = vpop.f32.mrb[66].mxu1  ;;  %v3695_v10 = vld [vmem:[%s6364_s1 + $0x430] sm:$0xff]  ;;  %v3786_v14 = vld [vmem:[%s6364_s1 + $0x598] sm:$0xff] }
 0x198   :  { %6607 = vst [vmem:[#allocation94_spill] sm:$0xff] %v5641_v25  ;;  %6608 = vst [vmem:[#allocation95_spill] sm:$0xff] %v5643_v49  ;;  %v5653_v55 = vpop.f32.mrb[67].mxu0  ;;  %v5655_v5 = vpop.f32.mrb[67].mxu1  ;;  %v3741_v25 = vcombine.high %v3695_v10, %v3695_v10  ;;  %v3740_v34 = vcombine.low %v3695_v10, %v3695_v10  ;;  %v6627_v10 = vmov 0  }
 0x199   :  { %6609 = vst [vmem:[#allocation96_spill] sm:$0xff] %v5653_v55  ;;  %6610 = vst [vmem:[#allocation97_spill] sm:$0xff] %v5655_v5 }
 0x19a   :  { %1876 = vmatmul.mubr.bf16.gmra.mrb[172].mxu0 %v4203_v50  ;;  %2500 = vmatmul.mubr.bf16.gmra.mrb[172].mxu1 %v4206_v45  ;;  %v5695_v45 = vpop.permute.xlu0 %2665 }
 0x19b   :  { %1885 = vmatprep.mubr.bf16.mxu0 %v4207_v60  ;;  %2509 = vmatprep.mubr.bf16.mxu1 %v4210_v30  ;;  %v4209_v60 = vld [vmem:[%s6364_s1 + $0x420] ss:$8 sps:$4 sm:$0xff]  }
 0x19c   :  { %v4212_v30 = vld [vmem:[%s6364_s1 + $0x588] ss:$8 sps:$4 sm:$0xff]  }
 0x19d   :  { %v5665_v0 = vpop.f32.mrb[68].mxu0  ;;  %v5667_v49 = vpop.f32.mrb[68].mxu1 }
 0x19e   :  { %6611 = vst [vmem:[#allocation98_spill] sm:$0xff] %v5665_v0  ;;  %6612 = vst [vmem:[#allocation99_spill] sm:$0xff] %v5667_v49  ;;  %v5671_v23 = vpop.f32.mrb[69].mxu0  ;;  %v5673_v50 = vpop.f32.mrb[69].mxu1  ;;  %v3832_v49 = vcombine.high %v3786_v14, %v3786_v14 }
 0x19f   :  { %6613 = vst [vmem:[#allocation100_spill] sm:$0xff] %v5671_v23  ;;  %6614 = vst [vmem:[#allocation101_spill] sm:$0xff] %v5673_v50  ;;  %v5683_v5 = vpop.f32.mrb[70].mxu0  ;;  %v5685_v55 = vpop.f32.mrb[70].mxu1 }
 0x1a0   :  { %6615 = vst [vmem:[#allocation102_spill] sm:$0xff] %v5683_v5  ;;  %6616 = vst [vmem:[#allocation103_spill] sm:$0xff] %v5685_v55  ;;  %v5689_v20 = vpop.f32.mrb[71].mxu0  ;;  %v5691_v36 = vpop.f32.mrb[71].mxu1 }
 0x1a1   :  { %6617 = vst [vmem:[#allocation104_spill] sm:$0xff] %v5689_v20  ;;  %6618 = vst [vmem:[#allocation105_spill] sm:$0xff] %v5691_v36  ;;  %v5697_v50 = vpop.permute.xlu1 %2675 }
 0x1a2   :  { %1886 = vmatmul.mubr.bf16.gmra.mrb[176].mxu0 %v4209_v60  ;;  %2510 = vmatmul.mubr.bf16.gmra.mrb[176].mxu1 %v4212_v30  ;;  %v3831_v60 = vcombine.low %v3786_v14, %v3786_v14  ;;  %v5724_v14 = vpop.permute.xlu0 %2670 }
 0x1a3   :  { %1895 = vmatprep.mubr.bf16.mxu0 %v3741_v25  ;;  %2519 = vmatprep.mubr.bf16.mxu1 %v3832_v49 }
 0x1a5   :  { %v5699_v23 = vpop.f32.mrb[72].mxu0  ;;  %v5701_v41 = vpop.f32.mrb[72].mxu1 }
 0x1a6   :  { %6619 = vst [vmem:[#allocation106_spill] sm:$0xff] %v5699_v23  ;;  %6620 = vst [vmem:[#allocation107_spill] sm:$0xff] %v5701_v41  ;;  %v5705_v55 = vpop.f32.mrb[73].mxu0  ;;  %v5707_v5 = vpop.f32.mrb[73].mxu1 }
 0x1a7   :  { %6621 = vst [vmem:[#allocation108_spill] sm:$0xff] %v5705_v55  ;;  %6622 = vst [vmem:[#allocation109_spill] sm:$0xff] %v5707_v5  ;;  %v5711_v49 = vpop.f32.mrb[74].mxu0  ;;  %v5713_v30 = vpop.f32.mrb[74].mxu1 }
 0x1a8   :  { %6623 = vst [vmem:[#allocation110_spill] sm:$0xff] %v5711_v49  ;;  %6624 = vst [vmem:[#allocation111_spill] sm:$0xff] %v5713_v30  ;;  %v5717_v20 = vpop.f32.mrb[75].mxu0  ;;  %v5719_v46 = vpop.f32.mrb[75].mxu1 }
 0x1a9   :  { %6625 = vst [vmem:[#allocation112_spill] sm:$0xff] %v5717_v20  ;;  %6626 = vst [vmem:[#allocation113_spill] sm:$0xff] %v5719_v46  ;;  %v5726_v25 = vpop.permute.xlu1 %2680 }
 0x1aa   :  { %1896 = vmatmul.mubr.bf16.gmra.mrb[180].mxu0 %v3740_v34  ;;  %2520 = vmatmul.mubr.bf16.gmra.mrb[180].mxu1 %v3831_v60 }
 0x1ab   :  { %3407 = vmatprep.mubr.bf16.mxu0 %v6627_v10 }
 0x1ad   :  { %v5728_v5 = vpop.f32.mrb[76].mxu0  ;;  %v5730_v55 = vpop.f32.mrb[76].mxu1 }
 0x1ae   :  { %6628 = vst [vmem:[#allocation114_spill] sm:$0xff] %v5728_v5  ;;  %6629 = vst [vmem:[#allocation115_spill] sm:$0xff] %v5730_v55  ;;  %v5734_v30 = vpop.f32.mrb[77].mxu0  ;;  %v5736_v49 = vpop.f32.mrb[77].mxu1 }
 0x1af   :  { %6630 = vst [vmem:[#allocation116_spill] sm:$0xff] %v5734_v30  ;;  %6631 = vst [vmem:[#allocation117_spill] sm:$0xff] %v5736_v49  ;;  %v5740_v60 = vpop.f32.mrb[78].mxu0  ;;  %v5742_v0 = vpop.f32.mrb[78].mxu1 }
 0x1b0   :  { %6632 = vst [vmem:[#allocation118_spill] sm:$0xff] %v5740_v60  ;;  %6633 = vst [vmem:[#allocation119_spill] sm:$0xff] %v5742_v0  ;;  %v5746_v46 = vpop.f32.mrb[79].mxu0  ;;  %v5748_v20 = vpop.f32.mrb[79].mxu1 }
 0x1b1   :  { %6634 = vst [vmem:[#allocation120_spill] sm:$0xff] %v5746_v46  ;;  %6635 = vst [vmem:[#allocation121_spill] sm:$0xff] %v5748_v20  ;;  %v5752_v55 = vpop.permute.xlu0 %2685  ;;  %v5754_v5 = vpop.permute.xlu1 %2690 }
 0x1b5   :  { %v5756_v41 = vpop.f32.mrb[80].mxu0  ;;  %v5758_v34 = vpop.f32.mrb[80].mxu1 }
 0x1b6   :  { %6636 = vst [vmem:[#allocation122_spill] sm:$0xff] %v5756_v41  ;;  %6637 = vst [vmem:[#allocation123_spill] sm:$0xff] %v5758_v34  ;;  %v5762_v30 = vpop.f32.mrb[81].mxu0  ;;  %v5764_v10 = vpop.f32.mrb[81].mxu1 }
 0x1b7   :  { %6638 = vst [vmem:[#allocation124_spill] sm:$0xff] %v5762_v30  ;;  %6639 = vst [vmem:[#allocation125_spill] sm:$0xff] %v5764_v10  ;;  %v5768_v60 = vpop.f32.mrb[82].mxu0  ;;  %v5770_v36 = vpop.f32.mrb[82].mxu1 }
 0x1b8   :  { %6640 = vst [vmem:[#allocation126_spill] sm:$0xff] %v5768_v60  ;;  %6641 = vst [vmem:[#allocation127_spill] sm:$0xff] %v5770_v36  ;;  %v5774_v46 = vpop.f32.mrb[83].mxu0  ;;  %v5776_v23 = vpop.f32.mrb[83].mxu1 }
 0x1b9   :  { %6642 = vst [vmem:[#allocation128_spill] sm:$0xff] %v5774_v46  ;;  %6643 = vst [vmem:[#allocation129_spill] sm:$0xff] %v5776_v23  ;;  %v5780_v34 = vpop.permute.xlu0 %2695  ;;  %v5782_v41 = vpop.permute.xlu1 %2700 }
 0x1bd   :  { %v5784_v51 = vpop.f32.mrb[84].mxu0  ;;  %v5786_v0 = vpop.f32.mrb[84].mxu1 }
 0x1be   :  { %6644 = vst [vmem:[#allocation130_spill] sm:$0xff] %v5784_v51  ;;  %6645 = vst [vmem:[#allocation131_spill] sm:$0xff] %v5786_v0  ;;  %v5790_v30 = vpop.f32.mrb[85].mxu0  ;;  %v5792_v20 = vpop.f32.mrb[85].mxu1 }
 0x1bf   :  { %6646 = vst [vmem:[#allocation132_spill] sm:$0xff] %v5790_v30  ;;  %6647 = vst [vmem:[#allocation133_spill] sm:$0xff] %v5792_v20  ;;  %v5796_v60 = vpop.f32.mrb[86].mxu0  ;;  %v5798_v49 = vpop.f32.mrb[86].mxu1  ;;  %v6660_v20 = vmax.f32 %v5011_v61, %v5013_v62  ;;  %v6663_v61 = vmax.f32 %v5044_v11, %v5046_v12 }
 0x1c0   :  { %6648 = vst [vmem:[#allocation134_spill] sm:$0xff] %v5796_v60  ;;  %6649 = vst [vmem:[#allocation135_spill] sm:$0xff] %v5798_v49  ;;  %v5802_v46 = vpop.f32.mrb[87].mxu0  ;;  %v5804_v4 = vpop.f32.mrb[87].mxu1 }
 0x1c1   :  { %6650 = vst [vmem:[#allocation136_spill] sm:$0xff] %v5802_v46  ;;  %6651 = vst [vmem:[#allocation137_spill] sm:$0xff] %v5804_v4  ;;  %v5808_v0 = vpop.permute.xlu0 %2705  ;;  %v5810_v51 = vpop.permute.xlu1 %2710 }
 0x1c2   :  { %6652 = vst [vmem:[#allocation138_spill] sm:$0xff] %v5808_v0  ;;  %6653 = vst [vmem:[#allocation139_spill] sm:$0xff] %v5810_v51  ;;  %v6661_v0 = vmax.f32 %v5020_v1, %v5022_v2 }
 0x1c5   :  { %v5812_v57 = vpop.f32.mrb[88].mxu0  ;;  %v5814_v36 = vpop.f32.mrb[88].mxu1 }
 0x1c6   :  { %6654 = vst [vmem:[#allocation140_spill] sm:$0xff] %v5812_v57  ;;  %6655 = vst [vmem:[#allocation141_spill] sm:$0xff] %v5814_v36  ;;  %v5818_v30 = vpop.f32.mrb[89].mxu0  ;;  %v5820_v23 = vpop.f32.mrb[89].mxu1 }
 0x1c7   :  { %6656 = vst [vmem:[#allocation142_spill] sm:$0xff] %v5818_v30  ;;  %6657 = vst [vmem:[#allocation143_spill] sm:$0xff] %v5820_v23  ;;  %v743_v60 = vpop.f32.mrb[90].mxu0  ;;  %v1277_v10 = vpop.f32.mrb[90].mxu1 }
 0x1c8   :  { %v744_v4 = vpop.f32.mrb[91].mxu0  ;;  %v1278_v46 = vpop.f32.mrb[91].mxu1 }
 0x1c9   :  { %v5824_v8 = vpop.permute.xlu0 %2715  ;;  %v5826_v9 = vpop.permute.xlu1 %2720  ;;  %v6662_v46 = vmax.f32 %v5032_v6, %v5034_v7  ;;  %v4219_v6 = vld [vmem:[%s6367_s3 + $0x4] ss:$12 sps:$4 sm:$0xff]  }
 0x1ca   :  { %6658 = vst [vmem:[#allocation144_spill] sm:$0xff] %v5824_v8  ;;  %6659 = vst [vmem:[#allocation145_spill] sm:$0xff] %v5826_v9  ;;  %3324 = vmatprep.mubr.bf16.mxu1 %v4219_v6 }
 0x1cd   :  { %v1677_v29 = vpop.f32.mrb[92].mxu0  ;;  %v2301_v37 = vpop.f32.mrb[92].mxu1 }
 0x1ce   :  { %v1904_v36 = vmax.f32 %v6660_v20, %v1677_v29  ;;  %v1679_v57 = vpop.f32.mrb[93].mxu0  ;;  %v2303_v51 = vpop.f32.mrb[93].mxu1 }
 0x1cf   :  { %v1905_v49 = vmax.f32 %v6661_v0, %v1679_v57  ;;  %v1681_v60 = vpop.f32.mrb[94].mxu0  ;;  %v2305_v10 = vpop.f32.mrb[94].mxu1 }
 0x1d0   :  { %v2528_v4 = vmax.f32 %v1904_v36, %v2301_v37  ;;  %v1906_v23 = vmax.f32 %v6662_v46, %v1681_v60  ;;  %v1683_v30 = vpop.f32.mrb[95].mxu0  ;;  %v2307_v9 = vpop.f32.mrb[95].mxu1  ;;  %v6665_v60 = vmax.f32 %v5068_v21, %v5070_v22 }
 0x1d1   :  { %v2529_v8 = vmax.f32 %v1905_v49, %v2303_v51  ;;  %v1907_v62 = vmax.f32 %v6663_v61, %v1683_v30  ;;  %v5843_v37 = vpop.permute.xlu0 %2725  ;;  %v5845_v0 = vpop.permute.xlu1 %2730 }
 0x1d2   :  { %v2888_v29 = vadd.f32 %v5695_v45, %v2528_v4  ;;  %v2530_v20 = vmax.f32 %v1906_v23, %v2305_v10 }
 0x1d3   :  { %v2889_v1 = vadd.f32 %v5695_v45, %v2529_v8  ;;  %v2531_v2 = vmax.f32 %v1907_v62, %v2307_v9  ;;  %v6664_v9 = vmax.f32 %v5059_v17, %v5061_v18  ;;  %v6667_v18 = vmax.f32 %v5092_v31, %v5094_v32 }
 0x1d4   :  { %v2890_v57 = vadd.f32 %v5724_v14, %v2530_v20  ;;  %v2978_v7 = vmax.f32 %v2888_v29, 0.0 }
 0x1d5   :  { %v2979_v51 = vmax.f32 %v2889_v1, 0.0  ;;  %v2891_v11 = vadd.f32 %v5724_v14, %v2531_v2  ;;  %v1687_v12 = vpop.f32.mrb[96].mxu0  ;;  %v2311_v36 = vpop.f32.mrb[96].mxu1  ;;  %v6666_v14 = vmax.f32 %v5080_v26, %v5082_v27 }
 0x1d6   :  { %v2980_v23 = vmax.f32 %v2890_v57, 0.0  ;;  %v1908_v8 = vmax.f32 %v6664_v9, %v1687_v12  ;;  %v1689_v45 = vpop.f32.mrb[97].mxu0  ;;  %v2313_v49 = vpop.f32.mrb[97].mxu1 }
 0x1d7   :  { %v2981_v30 = vmax.f32 %v2891_v11, 0.0  ;;  %v1909_v10 = vmax.f32 %v6665_v60, %v1689_v45  ;;  %v1691_v4 = vpop.f32.mrb[98].mxu0  ;;  %v2315_v46 = vpop.f32.mrb[98].mxu1 }
 0x1d8   :  { %v3068_v61 = vpack.c.bf16 %v2980_v23, %v2978_v7  ;;  %v2532_v62 = vmax.f32 %v1908_v8, %v2311_v36  ;;  %v1910_v29 = vmax.f32 %v6666_v14, %v1691_v4  ;;  %v1693_v20 = vpop.f32.mrb[99].mxu0  ;;  %v2317_v1 = vpop.f32.mrb[99].mxu1  ;;  %v6668_v23 = vmax.f32 %v5107_v38, %v5109_v39 }
 0x1d9   :  { %v2533_v17 = vmax.f32 %v1909_v10, %v2313_v49  ;;  %v1911_v2 = vmax.f32 %v6667_v18, %v1693_v20  ;;  %v3069_v57 = vpack.c.bf16 %v2981_v30, %v2979_v51  ;;  %v5866_v12 = vpop.permute.xlu0 %2735  ;;  %v5868_v26 = vpop.permute.xlu1 %2740  ;;  %v6669_v30 = vmax.f32 %v5116_v42, %v5118_v43 }
 0x1da   :  { %v2892_v6 = vadd.f32 %v5697_v50, %v2532_v62  ;;  %v2534_v21 = vmax.f32 %v1910_v29, %v2315_v46  ;;  %v6671_v39 = vmax.f32 %v5140_v52, %v5142_v53 }
 0x1db   :  { %v2893_v22 = vadd.f32 %v5697_v50, %v2533_v17  ;;  %v2535_v11 = vmax.f32 %v1911_v2, %v2317_v1  ;;  %3292 = vmatprep.subr.bf16.mxu1 %v3069_v57 }
 0x1dc   :  { %v2894_v7 = vadd.f32 %v5726_v25, %v2534_v21  ;;  %3293 = vmatpush1.bf16.msra.mxu1 %v3068_v61  ;;  %v2982_v32 = vmax.f32 %v2892_v6, 0.0  ;;  %v6670_v61 = vmax.f32 %v5128_v47, %v5130_v48 }
 0x1dd   :  { %v2895_v27 = vadd.f32 %v5726_v25, %v2535_v11  ;;  %v1697_v36 = vpop.f32.mrb[100].mxu0  ;;  %v2321_v31 = vpop.f32.mrb[100].mxu1  ;;  %v2983_v45 = vmax.f32 %v2893_v22, 0.0  ;;  %v6672_v22 = vmax.f32 %v5155_v58, %v5157_v59  ;;  %v6675_v59 = vmax.f32 %v5185_v24, %v5187_v28 }
 0x1de   :  { %v2984_v51 = vmax.f32 %v2894_v7, 0.0  ;;  %v1912_v9 = vmax.f32 %v6668_v23, %v1697_v36  ;;  %v1699_v50 = vpop.f32.mrb[101].mxu0  ;;  %v2323_v8 = vpop.f32.mrb[101].mxu1 }
 0x1df   :  { %v2985_v49 = vmax.f32 %v2895_v27, 0.0  ;;  %v1913_v60 = vmax.f32 %v6669_v30, %v1699_v50  ;;  %v1701_v10 = vpop.f32.mrb[102].mxu0  ;;  %v2325_v4 = vpop.f32.mrb[102].mxu1  ;;  %v6674_v50 = vmax.f32 %v5173_v13, %v5175_v15 }
 0x1e0   :  { %v3070_v46 = vpack.c.bf16 %v2984_v51, %v2982_v32  ;;  %v2536_v25 = vmax.f32 %v1912_v9, %v2321_v31  ;;  %v1914_v62 = vmax.f32 %v6670_v61, %v1701_v10  ;;  %v1703_v14 = vpop.f32.mrb[103].mxu0  ;;  %v2327_v29 = vpop.f32.mrb[103].mxu1  ;;  %v6673_v31 = vmax.f32 %v5161_v63, %v5163_v3 }
 0x1e1   :  { %v2537_v38 = vmax.f32 %v1913_v60, %v2323_v8  ;;  %v1915_v20 = vmax.f32 %v6671_v39, %v1703_v14  ;;  %v3071_v1 = vpack.c.bf16 %v2985_v49, %v2983_v45  ;;  %v5886_v57 = vpop.permute.xlu0 %2745  ;;  %v5888_v47 = vpop.permute.xlu1 %2750  ;;  %v6676_v14 = vmax.f32 %v5191_v33, %v5193_v35 }
 0x1e2   :  { %v2896_v17 = vadd.f32 %v5752_v55, %v2536_v25  ;;  %v2538_v42 = vmax.f32 %v1914_v62, %v2325_v4  ;;  %v6679_v35 = vmax.f32 %v5221_v16, %v5223_v19 }
 0x1e3   :  { %v2897_v43 = vadd.f32 %v5752_v55, %v2537_v38  ;;  %v2539_v18 = vmax.f32 %v1915_v20, %v2327_v29  ;;  %3294 = vmatprep.subr.bf16.mxu1 %v3071_v1  ;;  %v6677_v1 = vmax.f32 %v5197_v40, %v5199_v44 }
 0x1e4   :  { %v2898_v2 = vadd.f32 %v5754_v5, %v2538_v42  ;;  %3295 = vmatpush1.bf16.msra.mxu1 %v3070_v46  ;;  %v2986_v53 = vmax.f32 %v2896_v17, 0.0 }
 0x1e5   :  { %v2899_v48 = vadd.f32 %v5754_v5, %v2539_v18  ;;  %v1707_v6 = vpop.f32.mrb[104].mxu0  ;;  %v2331_v52 = vpop.f32.mrb[104].mxu1  ;;  %v2987_v27 = vmax.f32 %v2897_v43, 0.0 }
 0x1e6   :  { %v2988_v21 = vmax.f32 %v2898_v2, 0.0  ;;  %v1916_v11 = vmax.f32 %v6672_v22, %v1707_v6  ;;  %v1709_v55 = vpop.f32.mrb[105].mxu0  ;;  %v2333_v7 = vpop.f32.mrb[105].mxu1  ;;  %v6678_v2 = vmax.f32 %v5209_v54, %v5211_v56  ;;  %v6680_v22 = vld [vmem:[#allocation138_spill] sm:$0xff]  ;;  %v6681_v54 = vld [vmem:[#allocation139_spill] sm:$0xff] }
 0x1e7   :  { %v2989_v36 = vmax.f32 %v2899_v48, 0.0  ;;  %v1917_v32 = vmax.f32 %v6673_v31, %v1709_v55  ;;  %v1711_v51 = vpop.f32.mrb[106].mxu0  ;;  %v2335_v23 = vpop.f32.mrb[106].mxu1 }
 0x1e8   :  { %v3072_v9 = vpack.c.bf16 %v2988_v21, %v2986_v53  ;;  %v2540_v5 = vmax.f32 %v1916_v11, %v2331_v52  ;;  %v1918_v8 = vmax.f32 %v6674_v50, %v1711_v51  ;;  %v1713_v45 = vpop.f32.mrb[107].mxu0  ;;  %v2337_v49 = vpop.f32.mrb[107].mxu1  ;;  %v6682_v51 = vld [vmem:[#allocation2_spill] sm:$0xff] }
 0x1e9   :  { %v2541_v58 = vmax.f32 %v1917_v32, %v2333_v7  ;;  %v1919_v30 = vmax.f32 %v6675_v59, %v1713_v45  ;;  %v3073_v60 = vpack.c.bf16 %v2989_v36, %v2987_v27  ;;  %v5905_v46 = vpop.permute.xlu0 %2755  ;;  %v5908_v15 = vpop.permute.xlu1 %2760  ;;  %v6686_v59 = vld [vmem:[#allocation5_spill] sm:$0xff] }
 0x1ea   :  { %v2900_v10 = vadd.f32 %v5780_v34, %v2540_v5  ;;  %v2542_v63 = vmax.f32 %v1918_v8, %v2335_v23  ;;  %v6683_v23 = vld [vmem:[#allocation3_spill] sm:$0xff] }
 0x1eb   :  { %v2901_v3 = vadd.f32 %v5780_v34, %v2541_v58  ;;  %v2543_v4 = vmax.f32 %v1919_v30, %v2337_v49  ;;  %3296 = vmatprep.subr.bf16.mxu1 %v3073_v60  ;;  %v6685_v58 = vld [vmem:[#allocation4_spill] sm:$0xff] }
 0x1ec   :  { %v2902_v13 = vadd.f32 %v5782_v41, %v2542_v63  ;;  %3297 = vmatpush1.bf16.msra.mxu1 %v3072_v9  ;;  %v2990_v28 = vmax.f32 %v2900_v10, 0.0  ;;  %v6684_v9 = vmax.f32 %v6682_v51, %v6683_v23  ;;  %v6687_v30 = vmax.f32 %v6685_v58, %v6686_v59 }
 0x1ed   :  { %v2903_v25 = vadd.f32 %v5782_v41, %v2543_v4  ;;  %v1717_v61 = vpop.f32.mrb[108].mxu0  ;;  %v2341_v24 = vpop.f32.mrb[108].mxu1  ;;  %v2991_v39 = vmax.f32 %v2901_v3, 0.0 }
 0x1ee   :  { %v2992_v62 = vmax.f32 %v2902_v13, 0.0  ;;  %v1920_v29 = vmax.f32 %v6676_v14, %v1717_v61  ;;  %v1719_v34 = vpop.f32.mrb[109].mxu0  ;;  %v2343_v38 = vpop.f32.mrb[109].mxu1  ;;  %v6688_v13 = vld [vmem:[#allocation6_spill] sm:$0xff] }
 0x1ef   :  { %v2993_v20 = vmax.f32 %v2903_v25, 0.0  ;;  %v1921_v17 = vmax.f32 %v6677_v1, %v1719_v34  ;;  %v1721_v42 = vpop.f32.mrb[110].mxu0  ;;  %v2345_v43 = vpop.f32.mrb[110].mxu1  ;;  %v6689_v25 = vld [vmem:[#allocation7_spill] sm:$0xff]  ;;  %v6692_v34 = vld [vmem:[#allocation9_spill] sm:$0xff]  ;;  %v6694_v1 = vld [vmem:[#allocation144_spill] sm:$0xff] }
 0x1f0   :  { %v3074_v18 = vpack.c.bf16 %v2992_v62, %v2990_v28  ;;  %v2544_v41 = vmax.f32 %v1920_v29, %v2341_v24  ;;  %v1922_v48 = vmax.f32 %v6678_v2, %v1721_v42  ;;  %v1723_v6 = vpop.f32.mrb[111].mxu0  ;;  %v2347_v52 = vpop.f32.mrb[111].mxu1  ;;  %v6690_v61 = vmax.f32 %v6688_v13, %v6689_v25  ;;  %v6691_v29 = vld [vmem:[#allocation8_spill] sm:$0xff] }
 0x1f1   :  { %v2545_v33 = vmax.f32 %v1921_v17, %v2343_v38  ;;  %v1923_v53 = vmax.f32 %v6679_v35, %v1723_v6  ;;  %v3075_v21 = vpack.c.bf16 %v2993_v20, %v2991_v39  ;;  %v5925_v7 = vpop.permute.xlu0 %2825  ;;  %v5927_v27 = vpop.permute.xlu1 %2830  ;;  %v6693_v38 = vmax.f32 %v6691_v29, %v6692_v34 }
 0x1f2   :  { %v2904_v11 = vadd.f32 %v6680_v22, %v2544_v41  ;;  %v2546_v40 = vmax.f32 %v1922_v48, %v2345_v43  ;;  %v6695_v48 = vld [vmem:[#allocation145_spill] sm:$0xff] }
 0x1f3   :  { %v2905_v44 = vadd.f32 %v6680_v22, %v2545_v33  ;;  %v2547_v55 = vmax.f32 %v1923_v53, %v2347_v52  ;;  %3298 = vmatprep.subr.bf16.mxu1 %v3075_v21  ;;  %v6696_v22 = vld [vmem:[#allocation10_spill] sm:$0xff] }
 0x1f4   :  { %v2906_v56 = vadd.f32 %v6681_v54, %v2546_v40  ;;  %3299 = vmatpush1.bf16.msra.mxu1 %v3074_v18  ;;  %v2994_v19 = vmax.f32 %v2904_v11, 0.0  ;;  %v6697_v11 = vld [vmem:[#allocation11_spill] sm:$0xff] }
 0x1f5   :  { %v2907_v36 = vadd.f32 %v6681_v54, %v2547_v55  ;;  %v1727_v31 = vpop.f32.mrb[112].mxu0  ;;  %v2351_v16 = vpop.f32.mrb[112].mxu1  ;;  %v2995_v45 = vmax.f32 %v2905_v44, 0.0  ;;  %v6698_v40 = vmax.f32 %v6696_v22, %v6697_v11 }
 0x1f6   :  { %v2996_v32 = vmax.f32 %v2906_v56, 0.0  ;;  %v1924_v5 = vmax.f32 %v6684_v9, %v1727_v31  ;;  %v1729_v50 = vpop.f32.mrb[113].mxu0  ;;  %v2353_v8 = vpop.f32.mrb[113].mxu1  ;;  %v6699_v31 = vld [vmem:[#allocation12_spill] sm:$0xff] }
 0x1f7   :  { %v2997_v49 = vmax.f32 %v2907_v36, 0.0  ;;  %v1925_v60 = vmax.f32 %v6687_v30, %v1729_v50  ;;  %v1731_v10 = vpop.f32.mrb[114].mxu0  ;;  %v2355_v63 = vpop.f32.mrb[114].mxu1  ;;  %v6702_v50 = vld [vmem:[#allocation14_spill] sm:$0xff] }
 0x1f8   :  { %v3076_v3 = vpack.c.bf16 %v2996_v32, %v2994_v19  ;;  %v2548_v4 = vmax.f32 %v1924_v5, %v2351_v16  ;;  %v1926_v24 = vmax.f32 %v6690_v61, %v1731_v10  ;;  %v1733_v28 = vpop.f32.mrb[115].mxu0  ;;  %v2357_v62 = vpop.f32.mrb[115].mxu1  ;;  %v6700_v16 = vld [vmem:[#allocation13_spill] sm:$0xff] }
 0x1f9   :  { %v2549_v14 = vmax.f32 %v1925_v60, %v2353_v8  ;;  %v1927_v39 = vmax.f32 %v6693_v38, %v1733_v28  ;;  %v3077_v20 = vpack.c.bf16 %v2997_v49, %v2995_v45  ;;  %v5945_v41 = vpop.permute.xlu0 %2765  ;;  %v5947_v2 = vpop.permute.xlu1 %2770  ;;  %v6701_v19 = vmax.f32 %v6699_v31, %v6700_v16  ;;  %v6703_v8 = vld [vmem:[#allocation15_spill] sm:$0xff]  ;;  %v6705_v60 = vld [vmem:[#allocation16_spill] sm:$0xff]  ;;  %v6706_v10 = vld [vmem:[#allocation17_spill] sm:$0xff] }
 0x1fa   :  { %v2908_v17 = vadd.f32 %v6694_v1, %v2548_v4  ;;  %v2550_v42 = vmax.f32 %v1926_v24, %v2355_v63  ;;  %v6704_v45 = vmax.f32 %v6702_v50, %v6703_v8  ;;  %v6707_v63 = vmax.f32 %v6705_v60, %v6706_v10  ;;  %v6717_v16 = vld [vmem:[#allocation24_spill] sm:$0xff] }
 0x1fb   :  { %v2909_v43 = vadd.f32 %v6694_v1, %v2549_v14  ;;  %v2551_v18 = vmax.f32 %v1927_v39, %v2357_v62  ;;  %3300 = vmatprep.subr.bf16.mxu1 %v3077_v20  ;;  %v6708_v1 = vld [vmem:[#allocation18_spill] sm:$0xff] }
 0x1fc   :  { %v2910_v6 = vadd.f32 %v6695_v48, %v2550_v42  ;;  %3301 = vmatpush1.bf16.msra.mxu1 %v3076_v3  ;;  %v2998_v53 = vmax.f32 %v2908_v17, 0.0  ;;  %v6709_v17 = vld [vmem:[#allocation19_spill] sm:$0xff] }
 0x1fd   :  { %v2911_v52 = vadd.f32 %v6695_v48, %v2551_v18  ;;  %v1737_v33 = vpop.f32.mrb[116].mxu0  ;;  %v2361_v35 = vpop.f32.mrb[116].mxu1  ;;  %v2999_v56 = vmax.f32 %v2909_v43, 0.0  ;;  %v6710_v42 = vmax.f32 %v6708_v1, %v6709_v17 }
 0x1fe   :  { %v3000_v21 = vmax.f32 %v2910_v6, 0.0  ;;  %v1928_v44 = vmax.f32 %v6698_v40, %v1737_v33  ;;  %v1739_v55 = vpop.f32.mrb[117].mxu0  ;;  %v2363_v54 = vpop.f32.mrb[117].mxu1  ;;  %v6712_v33 = vld [vmem:[#allocation21_spill] sm:$0xff]  ;;  %v6714_v40 = vld [vmem:[#allocation22_spill] sm:$0xff] }
 0x1ff   :  { %v3001_v36 = vmax.f32 %v2911_v52, 0.0  ;;  %v1929_v32 = vmax.f32 %v6701_v19, %v1739_v55  ;;  %v1741_v51 = vpop.f32.mrb[118].mxu0  ;;  %v2365_v23 = vpop.f32.mrb[118].mxu1  ;;  %v6711_v52 = vld [vmem:[#allocation20_spill] sm:$0xff]  ;;  %v6718_v19 = vld [vmem:[#allocation25_spill] sm:$0xff] }
 0x200   :  { %v3078_v9 = vpack.c.bf16 %v3000_v21, %v2998_v53  ;;  %v2552_v5 = vmax.f32 %v1928_v44, %v2361_v35  ;;  %v1930_v49 = vmax.f32 %v6704_v45, %v1741_v51  ;;  %v1743_v58 = vpop.f32.mrb[119].mxu0  ;;  %v2367_v59 = vpop.f32.mrb[119].mxu1  ;;  %v6713_v35 = vmax.f32 %v6711_v52, %v6712_v33  ;;  %v6715_v44 = vld [vmem:[#allocation23_spill] sm:$0xff]  ;;  %v6729_v33 = vld [vmem:[#allocation32_spill] sm:$0xff] }
 0x201   :  { %v2553_v30 = vmax.f32 %v1929_v32, %v2363_v54  ;;  %v1931_v3 = vmax.f32 %v6707_v63, %v1743_v58  ;;  %v3079_v4 = vpack.c.bf16 %v3001_v36, %v2999_v56  ;;  %v5965_v28 = vpop.permute.xlu0 %2835  ;;  %v5967_v62 = vpop.permute.xlu1 %2840  ;;  %v6716_v55 = vmax.f32 %v6714_v40, %v6715_v44 }
 0x202   :  { %v2912_v13 = vadd.f32 %v5843_v37, %v2552_v5  ;;  %v2554_v25 = vmax.f32 %v1930_v49, %v2365_v23  ;;  %v6719_v32 = vmax.f32 %v6717_v16, %v6718_v19 }
 0x203   :  { %v2913_v61 = vadd.f32 %v5843_v37, %v2553_v30  ;;  %v2555_v24 = vmax.f32 %v1931_v3, %v2367_v59  ;;  %3302 = vmatprep.subr.bf16.mxu1 %v3079_v4  ;;  %v6720_v3 = vld [vmem:[#allocation26_spill] sm:$0xff]  ;;  %v6721_v4 = vld [vmem:[#allocation27_spill] sm:$0xff] }
 0x204   :  { %v2914_v14 = vadd.f32 %v5845_v0, %v2554_v25  ;;  %3303 = vmatpush1.bf16.msra.mxu1 %v3078_v9  ;;  %v3002_v39 = vmax.f32 %v2912_v13, 0.0  ;;  %v6722_v13 = vmax.f32 %v6720_v3, %v6721_v4 }
 0x205   :  { %v2915_v29 = vadd.f32 %v5845_v0, %v2555_v24  ;;  %v1747_v34 = vpop.f32.mrb[120].mxu0  ;;  %v2371_v38 = vpop.f32.mrb[120].mxu1  ;;  %v3003_v48 = vmax.f32 %v2913_v61, 0.0 }
 0x206   :  { %v3004_v20 = vmax.f32 %v2914_v14, 0.0  ;;  %v1932_v43 = vmax.f32 %v6710_v42, %v1747_v34  ;;  %v1749_v37 = vpop.f32.mrb[121].mxu0  ;;  %v2373_v18 = vpop.f32.mrb[121].mxu1  ;;  %v6724_v34 = vld [vmem:[#allocation29_spill] sm:$0xff]  ;;  %v6726_v42 = vld [vmem:[#allocation30_spill] sm:$0xff] }
 0x207   :  { %v3005_v6 = vmax.f32 %v2915_v29, 0.0  ;;  %v1933_v53 = vmax.f32 %v6713_v35, %v1749_v37  ;;  %v1751_v21 = vpop.f32.mrb[122].mxu0  ;;  %v2375_v22 = vpop.f32.mrb[122].mxu1  ;;  %v6723_v29 = vld [vmem:[#allocation28_spill] sm:$0xff]  ;;  %v6730_v35 = vld [vmem:[#allocation33_spill] sm:$0xff] }
 0x208   :  { %v3080_v11 = vpack.c.bf16 %v3004_v20, %v3002_v39  ;;  %v2556_v0 = vmax.f32 %v1932_v43, %v2371_v38  ;;  %v1934_v54 = vmax.f32 %v6716_v55, %v1751_v21  ;;  %v1753_v56 = vpop.f32.mrb[123].mxu0  ;;  %v2377_v36 = vpop.f32.mrb[123].mxu1  ;;  %v6725_v38 = vmax.f32 %v6723_v29, %v6724_v34  ;;  %v6727_v43 = vld [vmem:[#allocation31_spill] sm:$0xff]  ;;  %v6741_v34 = vld [vmem:[#allocation40_spill] sm:$0xff] }
 0x209   :  { %v2557_v31 = vmax.f32 %v1933_v53, %v2373_v18  ;;  %v1935_v51 = vmax.f32 %v6719_v32, %v1753_v56  ;;  %v3081_v23 = vpack.c.bf16 %v3005_v6, %v3003_v48  ;;  %v5985_v45 = vpop.permute.xlu0 %2775  ;;  %v5987_v49 = vpop.permute.xlu1 %2780  ;;  %v6728_v37 = vmax.f32 %v6726_v42, %v6727_v43 }
 0x20a   :  { %v2916_v9 = vadd.f32 %v5866_v12, %v2556_v0  ;;  %v2558_v5 = vmax.f32 %v1934_v54, %v2375_v22  ;;  %v6731_v53 = vmax.f32 %v6729_v33, %v6730_v35 }
 0x20b   :  { %v2917_v50 = vadd.f32 %v5866_v12, %v2557_v31  ;;  %v2559_v8 = vmax.f32 %v1935_v51, %v2377_v36  ;;  %3304 = vmatprep.subr.bf16.mxu1 %v3081_v23  ;;  %v6732_v51 = vld [vmem:[#allocation34_spill] sm:$0xff]  ;;  %v6733_v23 = vld [vmem:[#allocation35_spill] sm:$0xff] }
 0x20c   :  { %v2918_v58 = vadd.f32 %v5868_v26, %v2558_v5  ;;  %3305 = vmatpush1.bf16.msra.mxu1 %v3080_v11  ;;  %v3006_v10 = vmax.f32 %v2916_v9, 0.0  ;;  %v6734_v9 = vmax.f32 %v6732_v51, %v6733_v23 }
 0x20d   :  { %v2919_v59 = vadd.f32 %v5868_v26, %v2559_v8  ;;  %v1757_v30 = vpop.f32.mrb[124].mxu0  ;;  %v2381_v60 = vpop.f32.mrb[124].mxu1  ;;  %v3007_v24 = vmax.f32 %v2917_v50, 0.0 }
 0x20e   :  { %v3008_v63 = vmax.f32 %v2918_v58, 0.0  ;;  %v1936_v25 = vmax.f32 %v6722_v13, %v1757_v30  ;;  %v1759_v12 = vpop.f32.mrb[125].mxu0  ;;  %v2383_v61 = vpop.f32.mrb[125].mxu1  ;;  %v6736_v30 = vld [vmem:[#allocation37_spill] sm:$0xff]  ;;  %v6738_v13 = vld [vmem:[#allocation38_spill] sm:$0xff] }
 0x20f   :  { %v3009_v14 = vmax.f32 %v2919_v59, 0.0  ;;  %v1937_v39 = vmax.f32 %v6725_v38, %v1759_v12  ;;  %v1761_v20 = vpop.f32.mrb[126].mxu0  ;;  %v2385_v1 = vpop.f32.mrb[126].mxu1  ;;  %v6735_v59 = vld [vmem:[#allocation36_spill] sm:$0xff]  ;;  %v6742_v38 = vld [vmem:[#allocation41_spill] sm:$0xff] }
 0x210   :  { %v3082_v17 = vpack.c.bf16 %v3008_v63, %v3006_v10  ;;  %v2560_v26 = vmax.f32 %v1936_v25, %v2381_v60  ;;  %v1938_v18 = vmax.f32 %v6728_v37, %v1761_v20  ;;  %v1763_v48 = vpop.f32.mrb[127].mxu0  ;;  %v2387_v6 = vpop.f32.mrb[127].mxu1  ;;  %v6737_v60 = vmax.f32 %v6735_v59, %v6736_v30  ;;  %v6739_v25 = vld [vmem:[#allocation39_spill] sm:$0xff]  ;;  %v6753_v30 = vld [vmem:[#allocation48_spill] sm:$0xff] }
 0x211   :  { %v2561_v52 = vmax.f32 %v1937_v39, %v2383_v61  ;;  %v1939_v21 = vmax.f32 %v6731_v53, %v1763_v48  ;;  %v3083_v22 = vpack.c.bf16 %v3009_v14, %v3007_v24  ;;  %v6005_v55 = vpop.permute.xlu0 %2845  ;;  %v6007_v54 = vpop.permute.xlu1 %2850  ;;  %v6740_v12 = vmax.f32 %v6738_v13, %v6739_v25 }
 0x212   :  { %v2920_v11 = vadd.f32 %v5886_v57, %v2560_v26  ;;  %v2562_v0 = vmax.f32 %v1938_v18, %v2385_v1  ;;  %v6743_v39 = vmax.f32 %v6741_v34, %v6742_v38 }
 0x213   :  { %v2921_v40 = vadd.f32 %v5886_v57, %v2561_v52  ;;  %v2563_v44 = vmax.f32 %v1939_v21, %v2387_v6  ;;  %3306 = vmatprep.subr.bf16.mxu1 %v3083_v22  ;;  %v6744_v21 = vld [vmem:[#allocation42_spill] sm:$0xff]  ;;  %v6745_v22 = vld [vmem:[#allocation43_spill] sm:$0xff] }
 0x214   :  { %v2922_v56 = vadd.f32 %v5888_v47, %v2562_v0  ;;  %3307 = vmatpush1.bf16.msra.mxu1 %v3082_v17  ;;  %v3010_v19 = vmax.f32 %v2920_v11, 0.0  ;;  %v6746_v11 = vmax.f32 %v6744_v21, %v6745_v22 }
 0x215   :  { %v2923_v36 = vadd.f32 %v5888_v47, %v2563_v44  ;;  %v1767_v31 = vpop.f32.mrb[128].mxu0  ;;  %v2391_v16 = vpop.f32.mrb[128].mxu1  ;;  %v3011_v8 = vmax.f32 %v2921_v40, 0.0 }
 0x216   :  { %v3012_v32 = vmax.f32 %v2922_v56, 0.0  ;;  %v1940_v5 = vmax.f32 %v6734_v9, %v1767_v31  ;;  %v1769_v57 = vpop.f32.mrb[129].mxu0  ;;  %v2393_v50 = vpop.f32.mrb[129].mxu1  ;;  %v6748_v31 = vld [vmem:[#allocation45_spill] sm:$0xff]  ;;  %v6750_v9 = vld [vmem:[#allocation46_spill] sm:$0xff] }
 0x217   :  { %v3013_v58 = vmax.f32 %v2923_v36, 0.0  ;;  %v1941_v10 = vmax.f32 %v6737_v60, %v1769_v57  ;;  %v1771_v63 = vpop.f32.mrb[130].mxu0  ;;  %v2395_v3 = vpop.f32.mrb[130].mxu1  ;;  %v6747_v36 = vld [vmem:[#allocation44_spill] sm:$0xff]  ;;  %v6754_v60 = vld [vmem:[#allocation49_spill] sm:$0xff] }
 0x218   :  { %v3084_v4 = vpack.c.bf16 %v3012_v32, %v3010_v19  ;;  %v2564_v47 = vmax.f32 %v1940_v5, %v2391_v16  ;;  %v1942_v61 = vmax.f32 %v6740_v12, %v1771_v63  ;;  %v1773_v24 = vpop.f32.mrb[131].mxu0  ;;  %v2397_v14 = vpop.f32.mrb[131].mxu1  ;;  %v6749_v16 = vmax.f32 %v6747_v36, %v6748_v31  ;;  %v6751_v5 = vld [vmem:[#allocation47_spill] sm:$0xff]  ;;  %v6765_v31 = vld [vmem:[#allocation56_spill] sm:$0xff] }
 0x219   :  { %v2565_v29 = vmax.f32 %v1941_v10, %v2393_v50  ;;  %v1943_v20 = vmax.f32 %v6743_v39, %v1773_v24  ;;  %v3085_v1 = vpack.c.bf16 %v3013_v58, %v3011_v8  ;;  %v6025_v37 = vpop.permute.xlu0 %2785  ;;  %v6027_v18 = vpop.permute.xlu1 %2790  ;;  %v6752_v57 = vmax.f32 %v6750_v9, %v6751_v5 }
 0x21a   :  { %v2924_v17 = vadd.f32 %v5905_v46, %v2564_v47  ;;  %v2566_v26 = vmax.f32 %v1942_v61, %v2395_v3  ;;  %v6755_v10 = vmax.f32 %v6753_v30, %v6754_v60 }
 0x21b   :  { %v2925_v42 = vadd.f32 %v5905_v46, %v2565_v29  ;;  %v2567_v43 = vmax.f32 %v1943_v20, %v2397_v14  ;;  %3308 = vmatprep.subr.bf16.mxu1 %v3085_v1  ;;  %v6756_v20 = vld [vmem:[#allocation50_spill] sm:$0xff]  ;;  %v6757_v1 = vld [vmem:[#allocation51_spill] sm:$0xff] }
 0x21c   :  { %v2926_v48 = vadd.f32 %v5908_v15, %v2566_v26  ;;  %3309 = vmatpush1.bf16.msra.mxu1 %v3084_v4  ;;  %v3014_v35 = vmax.f32 %v2924_v17, 0.0  ;;  %v6758_v17 = vmax.f32 %v6756_v20, %v6757_v1 }
 0x21d   :  { %v2927_v6 = vadd.f32 %v5908_v15, %v2567_v43  ;;  %v1777_v52 = vpop.f32.mrb[132].mxu0  ;;  %v2401_v33 = vpop.f32.mrb[132].mxu1  ;;  %v3015_v44 = vmax.f32 %v2925_v42, 0.0 }
 0x21e   :  { %v3016_v53 = vmax.f32 %v2926_v48, 0.0  ;;  %v1944_v0 = vmax.f32 %v6746_v11, %v1777_v52  ;;  %v1779_v46 = vpop.f32.mrb[133].mxu0  ;;  %v2403_v40 = vpop.f32.mrb[133].mxu1  ;;  %v6760_v52 = vld [vmem:[#allocation53_spill] sm:$0xff]  ;;  %v6762_v11 = vld [vmem:[#allocation54_spill] sm:$0xff] }
 0x21f   :  { %v3017_v56 = vmax.f32 %v2927_v6, 0.0  ;;  %v1945_v19 = vmax.f32 %v6749_v16, %v1779_v46  ;;  %v1781_v32 = vpop.f32.mrb[134].mxu0  ;;  %v2405_v51 = vpop.f32.mrb[134].mxu1  ;;  %v6759_v6 = vld [vmem:[#allocation52_spill] sm:$0xff]  ;;  %v6766_v16 = vld [vmem:[#allocation57_spill] sm:$0xff] }
 0x220   :  { %v3086_v23 = vpack.c.bf16 %v3016_v53, %v3014_v35  ;;  %v2568_v15 = vmax.f32 %v1944_v0, %v2401_v33  ;;  %v1946_v50 = vmax.f32 %v6752_v57, %v1781_v32  ;;  %v1783_v8 = vpop.f32.mrb[135].mxu0  ;;  %v2407_v58 = vpop.f32.mrb[135].mxu1  ;;  %v6761_v33 = vmax.f32 %v6759_v6, %v6760_v52  ;;  %v6763_v0 = vld [vmem:[#allocation55_spill] sm:$0xff]  ;;  %v6777_v52 = vld [vmem:[#allocation64_spill] sm:$0xff] }
 0x221   :  { %v2569_v59 = vmax.f32 %v1945_v19, %v2403_v40  ;;  %v1947_v63 = vmax.f32 %v6755_v10, %v1783_v8  ;;  %v3087_v3 = vpack.c.bf16 %v3017_v56, %v3015_v44  ;;  %v6045_v12 = vpop.permute.xlu0 %2855  ;;  %v6047_v61 = vpop.permute.xlu1 %2860  ;;  %v6764_v46 = vmax.f32 %v6762_v11, %v6763_v0 }
 0x222   :  { %v2928_v4 = vadd.f32 %v5945_v41, %v2568_v15  ;;  %v2570_v47 = vmax.f32 %v1946_v50, %v2405_v51  ;;  %v6767_v19 = vmax.f32 %v6765_v31, %v6766_v16 }
 0x223   :  { %v2929_v13 = vadd.f32 %v5945_v41, %v2569_v59  ;;  %v2571_v25 = vmax.f32 %v1947_v63, %v2407_v58  ;;  %3310 = vmatprep.subr.bf16.mxu1 %v3087_v3  ;;  %v6768_v63 = vld [vmem:[#allocation58_spill] sm:$0xff]  ;;  %v6769_v3 = vld [vmem:[#allocation59_spill] sm:$0xff] }
 0x224   :  { %v2930_v24 = vadd.f32 %v5947_v2, %v2570_v47  ;;  %3311 = vmatpush1.bf16.msra.mxu1 %v3086_v23  ;;  %v3018_v38 = vmax.f32 %v2928_v4, 0.0  ;;  %v6770_v4 = vmax.f32 %v6768_v63, %v6769_v3 }
 0x225   :  { %v2931_v14 = vadd.f32 %v5947_v2, %v2571_v25  ;;  %v1787_v29 = vpop.f32.mrb[136].mxu0  ;;  %v2411_v34 = vpop.f32.mrb[136].mxu1  ;;  %v3019_v43 = vmax.f32 %v2929_v13, 0.0 }
 0x226   :  { %v3020_v39 = vmax.f32 %v2930_v24, 0.0  ;;  %v1948_v26 = vmax.f32 %v6758_v17, %v1787_v29  ;;  %v1789_v41 = vpop.f32.mrb[137].mxu0  ;;  %v2413_v42 = vpop.f32.mrb[137].mxu1  ;;  %v6772_v29 = vld [vmem:[#allocation61_spill] sm:$0xff]  ;;  %v6774_v17 = vld [vmem:[#allocation62_spill] sm:$0xff] }
 0x227   :  { %v3021_v48 = vmax.f32 %v2931_v14, 0.0  ;;  %v1949_v35 = vmax.f32 %v6761_v33, %v1789_v41  ;;  %v1791_v53 = vpop.f32.mrb[138].mxu0  ;;  %v2415_v21 = vpop.f32.mrb[138].mxu1  ;;  %v6771_v14 = vld [vmem:[#allocation60_spill] sm:$0xff]  ;;  %v6778_v33 = vld [vmem:[#allocation65_spill] sm:$0xff] }
 0x228   :  { %v3088_v22 = vpack.c.bf16 %v3020_v39, %v3018_v38  ;;  %v2572_v2 = vmax.f32 %v1948_v26, %v2411_v34  ;;  %v1950_v40 = vmax.f32 %v6764_v46, %v1791_v53  ;;  %v1793_v44 = vpop.f32.mrb[139].mxu0  ;;  %v2417_v56 = vpop.f32.mrb[139].mxu1  ;;  %v6773_v34 = vmax.f32 %v6771_v14, %v6772_v29  ;;  %v6775_v26 = vld [vmem:[#allocation63_spill] sm:$0xff]  ;;  %v6789_v29 = vld [vmem:[#allocation72_spill] sm:$0xff] }
 0x229   :  { %v2573_v36 = vmax.f32 %v1949_v35, %v2413_v42  ;;  %v1951_v32 = vmax.f32 %v6767_v19, %v1793_v44  ;;  %v3089_v51 = vpack.c.bf16 %v3021_v48, %v3019_v43  ;;  %v2796_v57 = vpop.permute.xlu0 %2795  ;;  %v6065_v50 = vpop.permute.xlu1 %2800  ;;  %v6776_v41 = vmax.f32 %v6774_v17, %v6775_v26 }
 0x22a   :  { %v2932_v23 = vadd.f32 %v5985_v45, %v2572_v2  ;;  %v2574_v15 = vmax.f32 %v1950_v40, %v2415_v21  ;;  %v6779_v35 = vmax.f32 %v6777_v52, %v6778_v33 }
 0x22b   :  { %v2933_v9 = vadd.f32 %v5985_v45, %v2573_v36  ;;  %v2575_v5 = vmax.f32 %v1951_v32, %v2417_v56  ;;  %3312 = vmatprep.subr.bf16.mxu1 %v3089_v51  ;;  %v6780_v32 = vld [vmem:[#allocation66_spill] sm:$0xff]  ;;  %v6781_v51 = vld [vmem:[#allocation67_spill] sm:$0xff] }
 0x22c   :  { %v2934_v8 = vadd.f32 %v5987_v49, %v2574_v15  ;;  %3313 = vmatpush1.bf16.msra.mxu1 %v3088_v22  ;;  %v3022_v60 = vmax.f32 %v2932_v23, 0.0  ;;  %v6782_v23 = vmax.f32 %v6780_v32, %v6781_v51 }
 0x22d   :  { %v2935_v58 = vadd.f32 %v5987_v49, %v2575_v5  ;;  %v1797_v59 = vpop.f32.mrb[140].mxu0  ;;  %v2421_v30 = vpop.f32.mrb[140].mxu1  ;;  %v3023_v25 = vmax.f32 %v2933_v9, 0.0 }
 0x22e   :  { %v3024_v10 = vmax.f32 %v2934_v8, 0.0  ;;  %v1952_v47 = vmax.f32 %v6770_v4, %v1797_v59  ;;  %v1799_v13 = vpop.f32.mrb[141].mxu0  ;;  %v2423_v45 = vpop.f32.mrb[141].mxu1  ;;  %v6784_v59 = vld [vmem:[#allocation69_spill] sm:$0xff]  ;;  %v6786_v4 = vld [vmem:[#allocation70_spill] sm:$0xff] }
 0x22f   :  { %v3025_v24 = vmax.f32 %v2935_v58, 0.0  ;;  %v1953_v38 = vmax.f32 %v6773_v34, %v1799_v13  ;;  %v1801_v39 = vpop.f32.mrb[142].mxu0  ;;  %v2425_v20 = vpop.f32.mrb[142].mxu1  ;;  %v6783_v58 = vld [vmem:[#allocation68_spill] sm:$0xff]  ;;  %v6790_v34 = vld [vmem:[#allocation73_spill] sm:$0xff] }
 0x230   :  { %v3090_v1 = vpack.c.bf16 %v3024_v10, %v3022_v60  ;;  %v2576_v49 = vmax.f32 %v1952_v47, %v2421_v30  ;;  %v1954_v42 = vmax.f32 %v6776_v41, %v1801_v39  ;;  %v1803_v43 = vpop.f32.mrb[143].mxu0  ;;  %v2427_v48 = vpop.f32.mrb[143].mxu1  ;;  %v6785_v30 = vmax.f32 %v6783_v58, %v6784_v59  ;;  %v6787_v47 = vld [vmem:[#allocation71_spill] sm:$0xff]  ;;  %v6801_v59 = vld [vmem:[#allocation80_spill] sm:$0xff] }
 0x231   :  { %v2577_v6 = vmax.f32 %v1953_v38, %v2423_v45  ;;  %v1955_v53 = vmax.f32 %v6779_v35, %v1803_v43  ;;  %v3091_v21 = vpack.c.bf16 %v3025_v24, %v3023_v25  ;;  %v6083_v46 = vpop.permute.xlu0 %2865  ;;  %v6085_v40 = vpop.permute.xlu1 %2870  ;;  %v6788_v13 = vmax.f32 %v6786_v4, %v6787_v47 }
 0x232   :  { %v2936_v22 = vadd.f32 %v6025_v37, %v2576_v49  ;;  %v2578_v2 = vmax.f32 %v1954_v42, %v2425_v20  ;;  %v6791_v38 = vmax.f32 %v6789_v29, %v6790_v34 }
 0x233   :  { %v2937_v11 = vadd.f32 %v6025_v37, %v2577_v6  ;;  %v2579_v0 = vmax.f32 %v1955_v53, %v2427_v48  ;;  %3314 = vmatprep.subr.bf16.mxu1 %v3091_v21  ;;  %v6792_v53 = vld [vmem:[#allocation74_spill] sm:$0xff]  ;;  %v6793_v21 = vld [vmem:[#allocation75_spill] sm:$0xff] }
 0x234   :  { %v2938_v44 = vadd.f32 %v6027_v18, %v2578_v2  ;;  %3315 = vmatpush1.bf16.msra.mxu1 %v3090_v1  ;;  %v3026_v16 = vmax.f32 %v2936_v22, 0.0  ;;  %v6794_v22 = vmax.f32 %v6792_v53, %v6793_v21 }
 0x235   :  { %v2939_v56 = vadd.f32 %v6027_v18, %v2579_v0  ;;  %v1807_v36 = vpop.f32.mrb[144].mxu0  ;;  %v2431_v31 = vpop.f32.mrb[144].mxu1  ;;  %v3027_v5 = vmax.f32 %v2937_v11, 0.0 }
 0x236   :  { %v3028_v19 = vmax.f32 %v2938_v44, 0.0  ;;  %v1956_v15 = vmax.f32 %v6782_v23, %v1807_v36  ;;  %v1809_v37 = vpop.f32.mrb[145].mxu0  ;;  %v2433_v9 = vpop.f32.mrb[145].mxu1  ;;  %v6796_v36 = vld [vmem:[#allocation77_spill] sm:$0xff]  ;;  %v6798_v23 = vld [vmem:[#allocation78_spill] sm:$0xff] }
 0x237   :  { %v3029_v8 = vmax.f32 %v2939_v56, 0.0  ;;  %v1957_v60 = vmax.f32 %v6785_v30, %v1809_v37  ;;  %v1811_v10 = vpop.f32.mrb[146].mxu0  ;;  %v2435_v63 = vpop.f32.mrb[146].mxu1  ;;  %v6795_v56 = vld [vmem:[#allocation76_spill] sm:$0xff]  ;;  %v6802_v30 = vld [vmem:[#allocation81_spill] sm:$0xff] }
 0x238   :  { %v3092_v3 = vpack.c.bf16 %v3028_v19, %v3026_v16  ;;  %v2580_v18 = vmax.f32 %v1956_v15, %v2431_v31  ;;  %v1958_v45 = vmax.f32 %v6788_v13, %v1811_v10  ;;  %v1813_v25 = vpop.f32.mrb[147].mxu0  ;;  %v2437_v24 = vpop.f32.mrb[147].mxu1  ;;  %v6797_v31 = vmax.f32 %v6795_v56, %v6796_v36  ;;  %v6799_v15 = vld [vmem:[#allocation79_spill] sm:$0xff] }
 0x239   :  { %v2581_v14 = vmax.f32 %v1957_v60, %v2433_v9  ;;  %v1959_v39 = vmax.f32 %v6791_v38, %v1813_v25  ;;  %v3093_v20 = vpack.c.bf16 %v3029_v8, %v3027_v5  ;;  %v2806_v41 = vpop.permute.xlu0 %2805  ;;  %v2811_v42 = vpop.permute.xlu1 %2810  ;;  %v6800_v37 = vmax.f32 %v6798_v23, %v6799_v15 }
 0x23a   :  { %v2940_v1 = vadd.f32 %v2796_v57, %v2580_v18  ;;  %v2582_v49 = vmax.f32 %v1958_v45, %v2435_v63  ;;  %v6803_v60 = vmax.f32 %v6801_v59, %v6802_v30 }
 0x23b   :  { %v2941_v17 = vadd.f32 %v2796_v57, %v2581_v14  ;;  %v2583_v26 = vmax.f32 %v1959_v39, %v2437_v24  ;;  %3316 = vmatprep.subr.bf16.mxu1 %v3093_v20  ;;  %v6804_v39 = vld [vmem:[#allocation82_spill] sm:$0xff]  ;;  %v6805_v20 = vld [vmem:[#allocation83_spill] sm:$0xff] }
 0x23c   :  { %v2942_v43 = vadd.f32 %v6065_v50, %v2582_v49  ;;  %3317 = vmatpush1.bf16.msra.mxu1 %v3092_v3  ;;  %v3030_v33 = vmax.f32 %v2940_v1, 0.0  ;;  %v6806_v1 = vmax.f32 %v6804_v39, %v6805_v20 }
 0x23d   :  { %v2943_v48 = vadd.f32 %v6065_v50, %v2583_v26  ;;  %v1817_v6 = vpop.f32.mrb[148].mxu0  ;;  %v2441_v52 = vpop.f32.mrb[148].mxu1  ;;  %v3031_v57 = vmax.f32 %v2941_v17, 0.0 }
 0x23e   :  { %v3032_v35 = vmax.f32 %v2942_v43, 0.0  ;;  %v1960_v2 = vmax.f32 %v6794_v22, %v1817_v6  ;;  %v1819_v11 = vpop.f32.mrb[149].mxu0  ;;  %v2443_v0 = vpop.f32.mrb[149].mxu1  ;;  %v6808_v6 = vld [vmem:[#allocation85_spill] sm:$0xff]  ;;  %v6810_v22 = vld [vmem:[#allocation86_spill] sm:$0xff] }
 0x23f   :  { %v3033_v44 = vmax.f32 %v2943_v48, 0.0  ;;  %v1961_v16 = vmax.f32 %v6797_v31, %v1819_v11  ;;  %v1821_v19 = vpop.f32.mrb[150].mxu0  ;;  %v2445_v32 = vpop.f32.mrb[150].mxu1  ;;  %v6813_v31 = vld [vmem:[#allocation88_spill] sm:$0xff] }
 0x240   :  { %v3094_v51 = vpack.c.bf16 %v3032_v35, %v3030_v33  ;;  %v2584_v50 = vmax.f32 %v1960_v2, %v2441_v52  ;;  %v1962_v9 = vmax.f32 %v6800_v37, %v1821_v19  ;;  %v1823_v5 = vpop.f32.mrb[151].mxu0  ;;  %v2447_v8 = vpop.f32.mrb[151].mxu1  ;;  %v6811_v2 = vld [vmem:[#allocation87_spill] sm:$0xff] }
 0x241   :  { %v2585_v58 = vmax.f32 %v1961_v16, %v2443_v0  ;;  %v1963_v10 = vmax.f32 %v6803_v60, %v1823_v5  ;;  %v3095_v63 = vpack.c.bf16 %v3033_v44, %v3031_v57  ;;  %v6115_v4 = vpop.permute.xlu0 %2875  ;;  %v6117_v45 = vpop.permute.xlu1 %2880  ;;  %v6812_v11 = vmax.f32 %v6810_v22, %v6811_v2  ;;  %v6814_v16 = vld [vmem:[#allocation89_spill] sm:$0xff] }
 0x242   :  { %v2944_v3 = vadd.f32 %v2806_v41, %v2584_v50  ;;  %v2586_v18 = vmax.f32 %v1962_v9, %v2445_v32  ;;  %v6815_v19 = vmax.f32 %v6813_v31, %v6814_v16 }
 0x243   :  { %v2945_v47 = vadd.f32 %v2806_v41, %v2585_v58  ;;  %v2587_v13 = vmax.f32 %v1963_v10, %v2447_v8  ;;  %3318 = vmatprep.subr.bf16.mxu1 %v3095_v63  ;;  %v6807_v41 = vld [vmem:[#allocation84_spill] sm:$0xff]  ;;  %v6816_v10 = vld [vmem:[#allocation90_spill] sm:$0xff]  ;;  %v6817_v63 = vld [vmem:[#allocation91_spill] sm:$0xff] }
 0x244   :  { %v2946_v25 = vadd.f32 %v2811_v42, %v2586_v18  ;;  %3319 = vmatpush1.bf16.msra.mxu1 %v3094_v51  ;;  %v3034_v34 = vmax.f32 %v2944_v3, 0.0  ;;  %v6809_v52 = vmax.f32 %v6807_v41, %v6808_v6  ;;  %v6818_v3 = vmax.f32 %v6816_v10, %v6817_v63  ;;  %v6834_v63 = vld [vmem:[#allocation102_spill] sm:$0xff] }
 0x245   :  { %v2947_v24 = vadd.f32 %v2811_v42, %v2587_v13  ;;  %v1827_v14 = vpop.f32.mrb[152].mxu0  ;;  %v2451_v29 = vpop.f32.mrb[152].mxu1  ;;  %v3035_v43 = vmax.f32 %v2945_v47, 0.0 }
 0x246   :  { %v3036_v38 = vmax.f32 %v2946_v25, 0.0  ;;  %v1964_v49 = vmax.f32 %v6806_v1, %v1827_v14  ;;  %v1829_v17 = vpop.f32.mrb[153].mxu0  ;;  %v2453_v26 = vpop.f32.mrb[153].mxu1  ;;  %v6819_v14 = vld [vmem:[#allocation92_spill] sm:$0xff] }
 0x247   :  { %v3037_v48 = vmax.f32 %v2947_v24, 0.0  ;;  %v1965_v33 = vmax.f32 %v6809_v52, %v1829_v17  ;;  %v1831_v35 = vpop.f32.mrb[154].mxu0  ;;  %v2455_v53 = vpop.f32.mrb[154].mxu1  ;;  %v6822_v17 = vld [vmem:[#allocation94_spill] sm:$0xff] }
 0x248   :  { %v3096_v21 = vpack.c.bf16 %v3036_v38, %v3034_v34  ;;  %v2588_v42 = vmax.f32 %v1964_v49, %v2451_v29  ;;  %v1966_v0 = vmax.f32 %v6812_v11, %v1831_v35  ;;  %v1833_v57 = vpop.f32.mrb[155].mxu0  ;;  %v2457_v44 = vpop.f32.mrb[155].mxu1  ;;  %v6820_v29 = vld [vmem:[#allocation93_spill] sm:$0xff] }
 0x249   :  { %v2816_v56 = vpop.permute.xlu0 %2815  ;;  %v2589_v36 = vmax.f32 %v1965_v33, %v2453_v26  ;;  %v1967_v32 = vmax.f32 %v6815_v19, %v1833_v57  ;;  %v3097_v51 = vpack.c.bf16 %v3037_v48, %v3035_v43  ;;  %v2821_v15 = vpop.permute.xlu1 %2820  ;;  %v6821_v34 = vmax.f32 %v6819_v14, %v6820_v29  ;;  %v6823_v26 = vld [vmem:[#allocation95_spill] sm:$0xff]  ;;  %v6825_v33 = vld [vmem:[#allocation96_spill] sm:$0xff]  ;;  %v6826_v35 = vld [vmem:[#allocation97_spill] sm:$0xff] }
 0x24a   :  { %v2948_v50 = vadd.f32 %v2816_v56, %v2588_v42  ;;  %v2590_v23 = vmax.f32 %v1966_v0, %v2455_v53  ;;  %v6824_v43 = vmax.f32 %v6822_v17, %v6823_v26  ;;  %v6827_v53 = vmax.f32 %v6825_v33, %v6826_v35  ;;  %v4217_v57 = vld [vmem:[%s6367_s3] ss:$12 sps:$4 sm:$0xff]   ;;  %v6837_v14 = vld [vmem:[#allocation104_spill] sm:$0xff]  ;;  %v6838_v29 = vld [vmem:[#allocation105_spill] sm:$0xff] }
 0x24b   :  { %v2949_v37 = vadd.f32 %v2816_v56, %v2589_v36  ;;  %v2591_v9 = vmax.f32 %v1967_v32, %v2457_v44  ;;  %3320 = vmatprep.subr.bf16.mxu1 %v3097_v51  ;;  %v4220_v56 = vld [vmem:[%s6367_s3 + $0x1c] ss:$12 sps:$4 sm:$0xff]  }
 0x24c   :  { %v2950_v5 = vadd.f32 %v2821_v15, %v2590_v23  ;;  %3321 = vmatpush1.bf16.msra.mxu1 %v3096_v21  ;;  %v3038_v30 = vmax.f32 %v2948_v50, 0.0  ;;  %v6829_v51 = vld [vmem:[#allocation99_spill] sm:$0xff] }
 0x24d   :  { %v2951_v8 = vadd.f32 %v2821_v15, %v2591_v9  ;;  %v1837_v58 = vpop.f32.mrb[156].mxu0  ;;  %v2461_v59 = vpop.f32.mrb[156].mxu1  ;;  %v3039_v25 = vmax.f32 %v2949_v37, 0.0 }
 0x24e   :  { %v3040_v60 = vmax.f32 %v2950_v5, 0.0  ;;  %v1968_v18 = vmax.f32 %v6818_v3, %v1837_v58  ;;  %v1839_v47 = vpop.f32.mrb[157].mxu0  ;;  %v2463_v13 = vpop.f32.mrb[157].mxu1  ;;  %v6832_v58 = vld [vmem:[#allocation101_spill] sm:$0xff]  ;;  %v6835_v3 = vld [vmem:[#allocation103_spill] sm:$0xff] }
 0x24f   :  { %v3041_v24 = vmax.f32 %v2951_v8, 0.0  ;;  %v1969_v38 = vmax.f32 %v6821_v34, %v1839_v47  ;;  %v1841_v39 = vpop.f32.mrb[158].mxu0  ;;  %v2465_v20 = vpop.f32.mrb[158].mxu1  ;;  %v6831_v8 = vld [vmem:[#allocation100_spill] sm:$0xff]  ;;  %v6839_v34 = vmax.f32 %v6837_v14, %v6838_v29 }
 0x250   :  { %v3098_v1 = vpack.c.bf16 %v3040_v60, %v3038_v30  ;;  %v2592_v49 = vmax.f32 %v1968_v18, %v2461_v59  ;;  %v1970_v48 = vmax.f32 %v6824_v43, %v1841_v39  ;;  %v1843_v41 = vpop.f32.mrb[159].mxu0  ;;  %v2467_v6 = vpop.f32.mrb[159].mxu1  ;;  %v6833_v59 = vmax.f32 %v6831_v8, %v6832_v58  ;;  %v4222_v43 = vld [vmem:[%s6367_s3 + $0x18] ss:$12 sps:$4 sm:$0xff]  }
 0x251   :  { %v2593_v52 = vmax.f32 %v1969_v38, %v2463_v13  ;;  %v1971_v21 = vmax.f32 %v6827_v53, %v1843_v41  ;;  %v3099_v42 = vpack.c.bf16 %v3041_v24, %v3039_v25  ;;  %v6836_v18 = vmax.f32 %v6834_v63, %v6835_v3  ;;  %v4223_v41 = vld [vmem:[%s6367_s3 + $0x34] ss:$12 sps:$4 sm:$0xff]   ;;  %v4225_v3 = vld [vmem:[%s6367_s3 + $0x30] ss:$12 sps:$4 sm:$0xff]  }
 0x252   :  { %v2952_v22 = vadd.f32 %v5925_v7, %v2592_v49  ;;  %v2594_v2 = vmax.f32 %v1970_v48, %v2465_v20 }
 0x253   :  { %v2953_v11 = vadd.f32 %v5925_v7, %v2593_v52  ;;  %v2595_v0 = vmax.f32 %v1971_v21, %v2467_v6  ;;  %3322 = vmatprep.subr.bf16.mxu1 %v3099_v42  ;;  %v6828_v7 = vld [vmem:[#allocation98_spill] sm:$0xff]  ;;  %v6841_v21 = vld [vmem:[#allocation107_spill] sm:$0xff] }
 0x254   :  { %v2954_v44 = vadd.f32 %v5927_v27, %v2594_v2  ;;  %3323 = vmatpush1.bf16.msra.mxu1 %v3098_v1  ;;  %v3042_v19 = vmax.f32 %v2952_v22, 0.0  ;;  %v6830_v50 = vmax.f32 %v6828_v7, %v6829_v51  ;;  %v6847_v7 = vld [vmem:[#allocation111_spill] sm:$0xff] }
 0x255   :  { %v2955_v36 = vadd.f32 %v5927_v27, %v2595_v0  ;;  %v1847_v31 = vpop.f32.mrb[160].mxu0  ;;  %v2471_v16 = vpop.f32.mrb[160].mxu1  ;;  %v3043_v9 = vmax.f32 %v2953_v11, 0.0 }
 0x256   :  { %v3044_v32 = vmax.f32 %v2954_v44, 0.0  ;;  %v1972_v23 = vmax.f32 %v6830_v50, %v1847_v31  ;;  %v1849_v15 = vpop.f32.mrb[161].mxu0  ;;  %v2473_v37 = vpop.f32.mrb[161].mxu1  ;;  %v6843_v44 = vld [vmem:[#allocation108_spill] sm:$0xff] }
 0x257   :  { %v3045_v5 = vmax.f32 %v2955_v36, 0.0  ;;  %v1973_v30 = vmax.f32 %v6833_v59, %v1849_v15  ;;  %v1851_v60 = vpop.f32.mrb[162].mxu0  ;;  %3325 = vmatmul.mubr.bf16.vlgmr.msra.gmra.mrb[184].mxu1 %v4217_v57  ;;  %v2475_v10 = vpop.f32.mrb[162].mxu1 }
 0x258   :  { %v3100_v27 = vpack.c.bf16 %v3044_v32, %v3042_v19  ;;  %v1974_v47 = vmax.f32 %v6836_v18, %v1851_v60  ;;  %v2596_v13 = vmax.f32 %v1972_v23, %v2471_v16  ;;  %v1853_v25 = vpop.f32.mrb[163].mxu0  ;;  %v2477_v24 = vpop.f32.mrb[163].mxu1  ;;  %3334 = vmatprep.mubr.bf16.mxu1 %v4220_v56  ;;  %v6844_v56 = vld [vmem:[#allocation109_spill] sm:$0xff]  ;;  %v6846_v32 = vld [vmem:[#allocation110_spill] sm:$0xff] }
 0x259   :  { %v1975_v38 = vmax.f32 %v6839_v34, %v1853_v25  ;;  %v2597_v39 = vmax.f32 %v1973_v30, %v2473_v37  ;;  %v3101_v20 = vpack.c.bf16 %v3045_v5, %v3043_v9  ;;  %v6845_v36 = vmax.f32 %v6843_v44, %v6844_v56  ;;  %v6849_v9 = vld [vmem:[#allocation112_spill] sm:$0xff]  ;;  %v6850_v5 = vld [vmem:[#allocation113_spill] sm:$0xff]  ;;  %v6853_v34 = vld [vmem:[#allocation115_spill] sm:$0xff] }
 0x25a   :  { %v2956_v1 = vadd.f32 %v5965_v28, %v2596_v13  ;;  %v2598_v49 = vmax.f32 %v1974_v47, %v2475_v10  ;;  %v6848_v51 = vmax.f32 %v6846_v32, %v6847_v7  ;;  %v6851_v8 = vmax.f32 %v6849_v9, %v6850_v5  ;;  %v4226_v47 = vld [vmem:[%s6367_s3 + $0x4c] ss:$12 sps:$4 sm:$0xff]   ;;  %v4229_v7 = vld [vmem:[%s6367_s3 + $0x64] ss:$12 sps:$4 sm:$0xff]  }
 0x25b   :  { %v2957_v17 = vadd.f32 %v5965_v28, %v2597_v39  ;;  %v2599_v26 = vmax.f32 %v1975_v38, %v2477_v24  ;;  %3375 = vmatprep.subr.bf16.mxu0 %v3101_v20  ;;  %v6840_v28 = vld [vmem:[#allocation106_spill] sm:$0xff]  ;;  %v6865_v9 = vld [vmem:[#allocation123_spill] sm:$0xff] }
 0x25c   :  { %v2958_v48 = vadd.f32 %v5967_v62, %v2598_v49  ;;  %3376 = vmatpush1.bf16.msra.mxu0 %v3100_v27  ;;  %v3046_v35 = vmax.f32 %v2956_v1, 0.0  ;;  %v6842_v42 = vmax.f32 %v6840_v28, %v6841_v21 }
 0x25d   :  { %v2959_v6 = vadd.f32 %v5967_v62, %v2599_v26  ;;  %v1857_v52 = vpop.f32.mrb[164].mxu0  ;;  %v2481_v33 = vpop.f32.mrb[164].mxu1  ;;  %v3047_v0 = vmax.f32 %v2957_v17, 0.0  ;;  %v6855_v26 = vld [vmem:[#allocation116_spill] sm:$0xff] }
 0x25e   :  { %v3048_v53 = vmax.f32 %v2958_v48, 0.0  ;;  %v1976_v22 = vmax.f32 %v6842_v42, %v1857_v52  ;;  %v1859_v2 = vpop.f32.mrb[165].mxu0  ;;  %v2483_v11 = vpop.f32.mrb[165].mxu1 }
 0x25f   :  { %v3049_v57 = vmax.f32 %v2959_v6, 0.0  ;;  %v1977_v31 = vmax.f32 %v6845_v36, %v1859_v2  ;;  %v1861_v16 = vpop.f32.mrb[166].mxu0  ;;  %3335 = vmatmul.mubr.bf16.gmra.mrb[188].mxu1 %v4222_v43  ;;  %v2485_v19 = vpop.f32.mrb[166].mxu1  ;;  %v6856_v43 = vld [vmem:[#allocation117_spill] sm:$0xff]  ;;  %v6861_v2 = vld [vmem:[#allocation120_spill] sm:$0xff] }
 0x260   :  { %v3102_v62 = vpack.c.bf16 %v3048_v53, %v3046_v35  ;;  %v1978_v50 = vmax.f32 %v6848_v51, %v1861_v16  ;;  %v2600_v23 = vmax.f32 %v1976_v22, %v2481_v33  ;;  %v1863_v15 = vpop.f32.mrb[167].mxu0  ;;  %v2487_v37 = vpop.f32.mrb[167].mxu1  ;;  %3344 = vmatprep.mubr.bf16.mxu1 %v4223_v41  ;;  %v6857_v48 = vmax.f32 %v6855_v26, %v6856_v43  ;;  %v6858_v33 = vld [vmem:[#allocation118_spill] sm:$0xff]  ;;  %v6859_v35 = vld [vmem:[#allocation119_spill] sm:$0xff] }
 0x261   :  { %v1979_v58 = vmax.f32 %v6851_v8, %v1863_v15  ;;  %v2601_v59 = vmax.f32 %v1977_v31, %v2483_v11  ;;  %v3103_v30 = vpack.c.bf16 %v3049_v57, %v3047_v0  ;;  %v6860_v53 = vmax.f32 %v6858_v33, %v6859_v35  ;;  %v6862_v11 = vld [vmem:[#allocation121_spill] sm:$0xff] }
 0x262   :  { %v2960_v60 = vadd.f32 %v6005_v55, %v2600_v23  ;;  %v2602_v10 = vmax.f32 %v1978_v50, %v2485_v19  ;;  %v6863_v0 = vmax.f32 %v6861_v2, %v6862_v11 }
 0x263   :  { %v2961_v27 = vadd.f32 %v6005_v55, %v2601_v59  ;;  %v2603_v63 = vmax.f32 %v1979_v58, %v2487_v37  ;;  %3377 = vmatprep.subr.bf16.mxu0 %v3103_v30  ;;  %v6852_v55 = vld [vmem:[#allocation114_spill] sm:$0xff] }
 0x264   :  { %v2962_v18 = vadd.f32 %v6007_v54, %v2602_v10  ;;  %3378 = vmatpush1.bf16.msra.mxu0 %v3102_v62  ;;  %v3050_v14 = vmax.f32 %v2960_v60, 0.0  ;;  %v6854_v38 = vmax.f32 %v6852_v55, %v6853_v34  ;;  %v4228_v62 = vld [vmem:[%s6367_s3 + $0x48] ss:$12 sps:$4 sm:$0xff]  }
 0x265   :  { %v2963_v13 = vadd.f32 %v6007_v54, %v2603_v63  ;;  %v1867_v25 = vpop.f32.mrb[168].mxu0  ;;  %v2491_v24 = vpop.f32.mrb[168].mxu1  ;;  %v3051_v49 = vmax.f32 %v2961_v27, 0.0  ;;  %v6867_v10 = vld [vmem:[#allocation124_spill] sm:$0xff]  ;;  %v6868_v27 = vld [vmem:[#allocation125_spill] sm:$0xff] }
 0x266   :  { %v3052_v29 = vmax.f32 %v2962_v18, 0.0  ;;  %v1980_v39 = vmax.f32 %v6854_v38, %v1867_v25  ;;  %v1869_v20 = vpop.f32.mrb[169].mxu0  ;;  %v2493_v1 = vpop.f32.mrb[169].mxu1  ;;  %v6869_v63 = vmax.f32 %v6867_v10, %v6868_v27  ;;  %v6871_v25 = vld [vmem:[#allocation127_spill] sm:$0xff]  ;;  %v6873_v38 = vld [vmem:[#allocation128_spill] sm:$0xff] }
 0x267   :  { %v3053_v17 = vmax.f32 %v2963_v13, 0.0  ;;  %v1981_v41 = vmax.f32 %v6857_v48, %v1869_v20  ;;  %v1871_v6 = vpop.f32.mrb[170].mxu0  ;;  %3345 = vmatmul.mubr.bf16.gmra.mrb[192].mxu1 %v4225_v3  ;;  %v2495_v52 = vpop.f32.mrb[170].mxu1  ;;  %v6870_v13 = vld [vmem:[#allocation126_spill] sm:$0xff] }
 0x268   :  { %v3104_v54 = vpack.c.bf16 %v3052_v29, %v3050_v14  ;;  %v1982_v28 = vmax.f32 %v6860_v53, %v1871_v6  ;;  %v2604_v21 = vmax.f32 %v1980_v39, %v2491_v24  ;;  %v1873_v42 = vpop.f32.mrb[171].mxu0  ;;  %v2497_v22 = vpop.f32.mrb[171].mxu1  ;;  %3354 = vmatprep.mubr.bf16.mxu1 %v4226_v47  ;;  %v6872_v24 = vmax.f32 %v6870_v13, %v6871_v25  ;;  %v6874_v39 = vld [vmem:[#allocation129_spill] sm:$0xff]  ;;  %v4231_v6 = vld [vmem:[%s6367_s3 + $0x60] ss:$12 sps:$4 sm:$0xff]   ;;  %v6888_v13 = vld [vmem:[#allocation140_spill] sm:$0xff] }
 0x269   :  { %v1983_v57 = vmax.f32 %v6863_v0, %v1873_v42  ;;  %v2605_v44 = vmax.f32 %v1981_v41, %v2493_v1  ;;  %v3105_v56 = vpack.c.bf16 %v3053_v17, %v3051_v49  ;;  %v6875_v20 = vmax.f32 %v6873_v38, %v6874_v39  ;;  %v6877_v42 = vld [vmem:[#allocation131_spill] sm:$0xff]  ;;  %v6889_v25 = vld [vmem:[#allocation141_spill] sm:$0xff] }
 0x26a   :  { %v2964_v36 = vadd.f32 %v6045_v12, %v2604_v21  ;;  %v2606_v31 = vmax.f32 %v1982_v28, %v2495_v52  ;;  %v6876_v21 = vld [vmem:[#allocation130_spill] sm:$0xff]  ;;  %v6892_v39 = vld [vmem:[#allocation143_spill] sm:$0xff] }
 0x26b   :  { %v2965_v16 = vadd.f32 %v6045_v12, %v2605_v44  ;;  %v2607_v19 = vmax.f32 %v1983_v57, %v2497_v22  ;;  %3379 = vmatprep.subr.bf16.mxu0 %v3105_v56  ;;  %v6864_v12 = vld [vmem:[#allocation122_spill] sm:$0xff]  ;;  %v6878_v22 = vmax.f32 %v6876_v21, %v6877_v42  ;;  %v6879_v44 = vld [vmem:[#allocation132_spill] sm:$0xff]  ;;  %v6880_v56 = vld [vmem:[#allocation133_spill] sm:$0xff] }
 0x26c   :  { %v2966_v32 = vadd.f32 %v6047_v61, %v2606_v31  ;;  %3380 = vmatpush1.bf16.msra.mxu0 %v3104_v54  ;;  %v3054_v15 = vmax.f32 %v2964_v36, 0.0  ;;  %v6866_v5 = vmax.f32 %v6864_v12, %v6865_v9  ;;  %v6881_v36 = vmax.f32 %v6879_v44, %v6880_v56  ;;  %v6886_v12 = vld [vmem:[#allocation137_spill] sm:$0xff] }
 0x26d   :  { %v2967_v51 = vadd.f32 %v6047_v61, %v2607_v19  ;;  %v1877_v50 = vpop.f32.mrb[172].mxu0  ;;  %v2501_v23 = vpop.f32.mrb[172].mxu1  ;;  %v3055_v30 = vmax.f32 %v2965_v16, 0.0 }
 0x26e   :  { %v3056_v37 = vmax.f32 %v2966_v32, 0.0  ;;  %v1984_v8 = vmax.f32 %v6866_v5, %v1877_v50  ;;  %v1879_v58 = vpop.f32.mrb[173].mxu0  ;;  %v2503_v59 = vpop.f32.mrb[173].mxu1  ;;  %v6883_v32 = vld [vmem:[#allocation135_spill] sm:$0xff] }
 0x26f   :  { %v3057_v60 = vmax.f32 %v2967_v51, 0.0  ;;  %v1985_v3 = vmax.f32 %v6869_v63, %v1879_v58  ;;  %v1881_v18 = vpop.f32.mrb[174].mxu0  ;;  %3355 = vmatmul.mubr.bf16.gmra.mrb[196].mxu1 %v4228_v62  ;;  %v2505_v47 = vpop.f32.mrb[174].mxu1  ;;  %v6882_v62 = vld [vmem:[#allocation134_spill] sm:$0xff] }
 0x270   :  { %v3106_v61 = vpack.c.bf16 %v3056_v37, %v3054_v15  ;;  %v1986_v14 = vmax.f32 %v6872_v24, %v1881_v18  ;;  %v2608_v29 = vmax.f32 %v1984_v8, %v2501_v23  ;;  %v1883_v55 = vpop.f32.mrb[175].mxu0  ;;  %v2507_v34 = vpop.f32.mrb[175].mxu1  ;;  %3364 = vmatprep.mubr.bf16.mxu1 %v4229_v7  ;;  %v6884_v7 = vmax.f32 %v6882_v62, %v6883_v32  ;;  %v6885_v37 = vld [vmem:[#allocation136_spill] sm:$0xff] }
 0x271   :  { %v1987_v1 = vmax.f32 %v6875_v20, %v1883_v55  ;;  %v2609_v49 = vmax.f32 %v1985_v3, %v2503_v59  ;;  %v3107_v17 = vpack.c.bf16 %v3057_v60, %v3055_v30  ;;  %v6887_v9 = vmax.f32 %v6885_v37, %v6886_v12 }
 0x272   :  { %v2968_v26 = vadd.f32 %v6083_v46, %v2608_v29  ;;  %v2610_v43 = vmax.f32 %v1986_v14, %v2505_v47  ;;  %v6890_v24 = vmax.f32 %v6888_v13, %v6889_v25 }
 0x273   :  { %v2969_v48 = vadd.f32 %v6083_v46, %v2609_v49  ;;  %v2611_v41 = vmax.f32 %v1987_v1, %v2507_v34  ;;  %3381 = vmatprep.subr.bf16.mxu0 %v3107_v17 }
 0x274   :  { %v2970_v52 = vadd.f32 %v6085_v40, %v2610_v43  ;;  %3382 = vmatpush1.bf16.msra.mxu0 %v3106_v61  ;;  %v3058_v53 = vmax.f32 %v2968_v26, 0.0 }
 0x275   :  { %v2971_v54 = vadd.f32 %v6085_v40, %v2611_v41  ;;  %v1887_v33 = vpop.f32.mrb[176].mxu0  ;;  %v2511_v35 = vpop.f32.mrb[176].mxu1  ;;  %v3059_v0 = vmax.f32 %v2969_v48, 0.0 }
 0x276   :  { %v3060_v28 = vmax.f32 %v2970_v52, 0.0  ;;  %v1988_v2 = vmax.f32 %v6878_v22, %v1887_v33  ;;  %v1889_v46 = vpop.f32.mrb[177].mxu0  ;;  %v2513_v11 = vpop.f32.mrb[177].mxu1  ;;  %v4232_v22 = vld [vmem:[%s6367_s3 + $0x8] ss:$12 sps:$4 sm:$0xff]  }
 0x277   :  { %v3061_v57 = vmax.f32 %v2971_v54, 0.0  ;;  %v1989_v31 = vmax.f32 %v6881_v36, %v1889_v46  ;;  %v1891_v16 = vpop.f32.mrb[178].mxu0  ;;  %3365 = vmatmul.mubr.bf16.gmra.mrb[200].mxu1 %v4231_v6  ;;  %v2515_v19 = vpop.f32.mrb[178].mxu1  ;;  %v4233_v46 = vld [vmem:[%s6367_s3 + $0x20] ss:$12 sps:$4 sm:$0xff]  }
 0x278   :  { %v3108_v40 = vpack.c.bf16 %v3060_v28, %v3058_v53  ;;  %v1990_v51 = vmax.f32 %v6884_v7, %v1891_v16  ;;  %v2612_v50 = vmax.f32 %v1988_v2, %v2511_v35  ;;  %v1893_v23 = vpop.f32.mrb[179].mxu0  ;;  %v2517_v15 = vpop.f32.mrb[179].mxu1  ;;  %v6894_v2 = vmov 0  }
 0x279   :  { %v1991_v5 = vmax.f32 %v6887_v9, %v1893_v23  ;;  %v2613_v8 = vmax.f32 %v1989_v31, %v2513_v11  ;;  %v3109_v58 = vpack.c.bf16 %v3061_v57, %v3059_v0  ;;  %v2886_v41 = vpop.permute.xlu0 %2885  ;;  %v4234_v11 = vld [vmem:[%s6367_s3 + $0x38] ss:$12 sps:$4 sm:$0xff]   ;;  %v4235_v0 = vld [vmem:[%s6367_s3 + $0x50] ss:$12 sps:$4 sm:$0xff]   ;;  %v4236_v57 = vld [vmem:[%s6367_s3 + $0x68] ss:$12 sps:$4 sm:$0xff]  }
 0x27a   :  { %v2972_v59 = vadd.f32 %v6115_v4, %v2612_v50  ;;  %v2614_v30 = vmax.f32 %v1990_v51, %v2515_v19 }
 0x27b   :  { %v2973_v60 = vadd.f32 %v6115_v4, %v2613_v8  ;;  %v2615_v10 = vmax.f32 %v1991_v5, %v2517_v15  ;;  %3383 = vmatprep.subr.bf16.mxu0 %v3109_v58  ;;  %v6891_v4 = vld [vmem:[#allocation142_spill] sm:$0xff] }
 0x27c   :  { %v2974_v27 = vadd.f32 %v6117_v45, %v2614_v30  ;;  %3384 = vmatpush1.bf16.msra.mxu0 %v3108_v40  ;;  %v3062_v47 = vmax.f32 %v2972_v59, 0.0  ;;  %v6893_v20 = vmax.f32 %v6891_v4, %v6892_v39  ;;  %v3147_v59 = vpop.permute.xlu1 %3146 }
 0x27d   :  { %v2975_v63 = vadd.f32 %v6117_v45, %v2615_v10  ;;  %v1897_v3 = vpop.f32.mrb[180].mxu0  ;;  %v2521_v18 = vpop.f32.mrb[180].mxu1  ;;  %v3063_v34 = vmax.f32 %v2973_v60, 0.0 }
 0x27e   :  { %v3064_v61 = vmax.f32 %v2974_v27, 0.0  ;;  %v1992_v14 = vmax.f32 %v6890_v24, %v1897_v3  ;;  %v1899_v29 = vpop.f32.mrb[181].mxu0  ;;  %v2523_v55 = vpop.f32.mrb[181].mxu1 }
 0x27f   :  { %v3065_v38 = vmax.f32 %v2975_v63, 0.0  ;;  %v1993_v1 = vmax.f32 %v6893_v20, %v1899_v29  ;;  %v1901_v49 = vpop.f32.mrb[182].mxu0  ;;  %v2525_v17 = vpop.f32.mrb[182].mxu1 }
 0x280   :  { %v3110_v26 = vpack.c.bf16 %v3064_v61, %v3062_v47  ;;  %v2616_v45 = vmax.f32 %v1992_v14, %v2521_v18  ;;  %v1902_v43 = vpop.f32.mrb[183].mxu0  ;;  %v2526_v48 = vpop.f32.mrb[183].mxu1 }
 0x281   :  { %v2617_v6 = vmax.f32 %v1993_v1, %v2523_v55  ;;  %v3111_v52 = vpack.c.bf16 %v3065_v38, %v3063_v34  ;;  %v3152_v60 = vpop.permute.xlu0 %3151  ;;  %v3157_v29 = vpop.permute.xlu1 %3156 }
 0x282   :  { %v2976_v54 = vadd.f32 %v2886_v41, %v2616_v45 }
 0x283   :  { %v2977_v33 = vadd.f32 %v2886_v41, %v2617_v6  ;;  %3385 = vmatprep.subr.bf16.mxu0 %v3111_v52 }
 0x284   :  { %v3066_v35 = vmax.f32 %v2976_v54, 0.0  ;;  %3386 = vmatpush1.bf16.msra.mxu0 %v3110_v26 }
 0x285   :  { %v3067_v53 = vmax.f32 %v2977_v33, 0.0  ;;  %v3162_v34 = vpop.permute.xlu0 %3161  ;;  %v3167_v41 = vpop.permute.xlu1 %3166 }
 0x286   :  { %v3112_v28 = vpack.c.bf16 %v3066_v35, %v3066_v35 }
 0x287   :  { %v3113_v21 = vpack.c.bf16 %v3067_v53, %v3067_v53 }
 0x288   :  { %v3287_v42 = vsel %vm3285_vm0, %v3112_v28, 0 }
 0x289   :  { %3848 = vmatprep.subr.msk.bf16.mxu0 %vm3285_vm0, %v3113_v21  ;;  %v3172_v52 = vpop.permute.xlu0 %3171 }
 0x28a   :  { %3388 = vmatpush1.bf16.msra.mxu0 %v3287_v42 }
 0x28d   :  { %3849 = vmatmul.mubr.msk.bf16.vlgmr.msra.gmra.mrb[184].mxu0 %vm3269_vm1, %v4232_v22 }
 0x28e   :  { %3417 = vmatprep.mubr.bf16.mxu0 %v6894_v2 }
 0x295   :  { %3850 = vmatmul.mubr.msk.bf16.gmra.mrb[188].mxu0 %vm3269_vm1, %v4233_v46 }
 0x296   :  { %3427 = vmatprep.mubr.bf16.mxu0 %v6894_v2 }
 0x29d   :  { %3851 = vmatmul.mubr.msk.bf16.gmra.mrb[192].mxu0 %vm3269_vm1, %v4234_v11 }
 0x29e   :  { %3437 = vmatprep.mubr.bf16.mxu0 %v6894_v2 }
 0x2a5   :  { %3852 = vmatmul.mubr.msk.bf16.gmra.mrb[196].mxu0 %vm3269_vm1, %v4235_v0  ;;  %v3177_v0 = vpop.permute.xlu1 %3176 }
 0x2a6   :  { %3447 = vmatprep.mubr.bf16.mxu0 %v6894_v2 }
 0x2ad   :  { %3853 = vmatmul.mubr.msk.bf16.gmra.mrb[200].mxu0 %vm3269_vm1, %v4236_v57 }
 0x32a   :  { %v3326_v44 = vpop.f32.mrb[184].mxu1 }
 0x32b   :  { %v3328_v56 = vpop.f32.mrb[185].mxu1  ;;  %v3327_v30 = vadd.f32 %v3326_v44, %v3147_v59  ;;  %v3182_v44 = vpop.permute.xlu0 %3181 }
 0x32c   :  { %v3330_v36 = vpop.f32.mrb[186].mxu1  ;;  %v3329_v10 = vadd.f32 %v3328_v56, %v3147_v59 }
 0x32d   :  { %v3332_v31 = vpop.f32.mrb[187].mxu1  ;;  %v3331_v63 = vadd.f32 %v3330_v36, %v3152_v60 }
 0x32e   :  { %v3333_v47 = vadd.f32 %v3332_v31, %v3152_v60 }
 0x332   :  { %v3336_v16 = vpop.f32.mrb[188].mxu1 }
 0x333   :  { %v3338_v19 = vpop.f32.mrb[189].mxu1  ;;  %v3337_v55 = vadd.f32 %v3336_v16, %v3157_v29 }
 0x334   :  { %v3340_v40 = vpop.f32.mrb[190].mxu1  ;;  %v3339_v38 = vadd.f32 %v3338_v19, %v3157_v29 }
 0x335   :  { %v3342_v62 = vpop.f32.mrb[191].mxu1  ;;  %v3341_v39 = vadd.f32 %v3340_v40, %v3162_v34 }
 0x336   :  { %v3343_v49 = vadd.f32 %v3342_v62, %v3162_v34 }
 0x33a   :  { %v3346_v32 = vpop.f32.mrb[192].mxu1 }
 0x33b   :  { %v3348_v7 = vpop.f32.mrb[193].mxu1  ;;  %v3347_v6 = vadd.f32 %v3346_v32, %v3167_v41 }
 0x33c   :  { %v3350_v51 = vpop.f32.mrb[194].mxu1  ;;  %v3349_v54 = vadd.f32 %v3348_v7, %v3167_v41 }
 0x33d   :  { %v3352_v50 = vpop.f32.mrb[195].mxu1  ;;  %v3351_v35 = vadd.f32 %v3350_v51, %v3172_v52 }
 0x33e   :  { %v3353_v21 = vadd.f32 %v3352_v50, %v3172_v52 }
 0x342   :  { %v6279_v23 = vpop.f32.mrb[196].mxu1 }
 0x343   :  { %v6281_v15 = vpop.f32.mrb[197].mxu1  ;;  %v3357_v57 = vadd.f32 %v6279_v23, %v3177_v0  ;;  %v3187_v23 = vpop.permute.xlu1 %3186 }
 0x344   :  { %v6283_v37 = vpop.f32.mrb[198].mxu1  ;;  %v3359_v56 = vadd.f32 %v6281_v15, %v3177_v0 }
 0x345   :  { %v6285_v12 = vpop.f32.mrb[199].mxu1  ;;  %v3361_v31 = vadd.f32 %v6283_v37, %v3182_v44  ;;  %v3192_v37 = vpop.permute.xlu0 %3191 }
 0x346   :  { %v3363_v40 = vadd.f32 %v6285_v12, %v3182_v44 }
 0x34a   :  { %v6287_v9 = vpop.f32.mrb[200].mxu1 }
 0x34b   :  { %v6289_v5 = vpop.f32.mrb[201].mxu1  ;;  %v3367_v15 = vadd.f32 %v6287_v9, %v3187_v23 }
 0x34c   :  { %v6291_v8 = vpop.f32.mrb[202].mxu1  ;;  %v3369_v12 = vadd.f32 %v6289_v5, %v3187_v23 }
 0x34d   :  { %v6293_v58 = vpop.f32.mrb[203].mxu1 }
 0x360   :  { %v3409_v27 = vpop.f32.mrb[184].mxu0 }
 0x361   :  { %v3410_v3 = vadd.f32 %v3409_v27, %v3327_v30  ;;  %v3411_v18 = vpop.f32.mrb[185].mxu0  ;;  %v3371_v30 = vadd.f32 %v6291_v8, %v3192_v37  ;;  %v3373_v27 = vadd.f32 %v6293_v58, %v3192_v37 }
 0x362   :  { %v3412_v61 = vadd.f32 %v3411_v18, %v3329_v10  ;;  %v3413_v13 = vpop.f32.mrb[186].mxu0 }
 0x363   :  { %3458 = vst [vmem:[%s6368_s5] sm:$0xff] %v3410_v3  ;;  %v3414_v25 = vadd.f32 %v3413_v13, %v3331_v63  ;;  %v3415_v24 = vpop.f32.mrb[187].mxu0 }
 0x364   :  { %3459 = vst [vmem:[%s6368_s5 + $0x8] sm:$0xff] %v3412_v61  ;;  %v3416_v14 = vadd.f32 %v3415_v24, %v3333_v47 }
 0x365   :  { %3460 = vst [vmem:[%s6368_s5 + $0x10] sm:$0xff] %v3414_v25 }
 0x366   :  { %3461 = vst [vmem:[%s6368_s5 + $0x18] sm:$0xff] %v3416_v14 }
 0x368   :  { %v3419_v4 = vpop.f32.mrb[188].mxu0 }
 0x369   :  { %v3420_v20 = vadd.f32 %v3419_v4, %v3337_v55  ;;  %v3421_v1 = vpop.f32.mrb[189].mxu0 }
 0x36a   :  { %v3422_v17 = vadd.f32 %v3421_v1, %v3339_v38  ;;  %v3423_v26 = vpop.f32.mrb[190].mxu0 }
 0x36b   :  { %3462 = vst [vmem:[%s6368_s5 + $0x20] sm:$0xff] %v3420_v20  ;;  %v3424_v45 = vadd.f32 %v3423_v26, %v3341_v39  ;;  %v3425_v43 = vpop.f32.mrb[191].mxu0 }
 0x36c   :  { %3463 = vst [vmem:[%s6368_s5 + $0x28] sm:$0xff] %v3422_v17  ;;  %v3426_v48 = vadd.f32 %v3425_v43, %v3343_v49 }
 0x36d   :  { %3464 = vst [vmem:[%s6368_s5 + $0x30] sm:$0xff] %v3424_v45 }
 0x36e   :  { %3465 = vst [vmem:[%s6368_s5 + $0x38] sm:$0xff] %v3426_v48 }
 0x370   :  { %v3429_v33 = vpop.f32.mrb[192].mxu0 }
 0x371   :  { %v3430_v53 = vadd.f32 %v3429_v33, %v3347_v6  ;;  %v3431_v28 = vpop.f32.mrb[193].mxu0 }
 0x372   :  { %v3432_v42 = vadd.f32 %v3431_v28, %v3349_v54  ;;  %v3433_v22 = vpop.f32.mrb[194].mxu0 }
 0x373   :  { %3466 = vst [vmem:[%s6368_s5 + $0x40] sm:$0xff] %v3430_v53  ;;  %v3434_v2 = vadd.f32 %v3433_v22, %v3351_v35  ;;  %v3435_v46 = vpop.f32.mrb[195].mxu0 }
 0x374   :  { %3467 = vst [vmem:[%s6368_s5 + $0x48] sm:$0xff] %v3432_v42  ;;  %v3436_v11 = vadd.f32 %v3435_v46, %v3353_v21 }
 0x375   :  { %3468 = vst [vmem:[%s6368_s5 + $0x50] sm:$0xff] %v3434_v2 }
 0x376   :  { %3469 = vst [vmem:[%s6368_s5 + $0x58] sm:$0xff] %v3436_v11 }
 0x378   :  { %v3439_v36 = vpop.f32.mrb[196].mxu0 }
 0x379   :  { %v3440_v16 = vadd.f32 %v3439_v36, %v3357_v57  ;;  %v3441_v19 = vpop.f32.mrb[197].mxu0 }
 0x37a   :  { %v3442_v62 = vadd.f32 %v3441_v19, %v3359_v56  ;;  %v3443_v32 = vpop.f32.mrb[198].mxu0 }
 0x37b   :  { %3470 = vst [vmem:[%s6368_s5 + $0x60] sm:$0xff] %v3440_v16  ;;  %v3444_v7 = vadd.f32 %v3443_v32, %v3361_v31  ;;  %v3445_v51 = vpop.f32.mrb[199].mxu0 }
 0x37c   :  { %3471 = vst [vmem:[%s6368_s5 + $0x68] sm:$0xff] %v3442_v62  ;;  %v3446_v50 = vadd.f32 %v3445_v51, %v3363_v40 }
 0x37d   :  { %3472 = vst [vmem:[%s6368_s5 + $0x70] sm:$0xff] %v3444_v7 }
 0x37e   :  { %3473 = vst [vmem:[%s6368_s5 + $0x78] sm:$0xff] %v3446_v50 }
 0x380   :  { %v3449_v59 = vpop.f32.mrb[200].mxu0 }
 0x381   :  { %v3450_v60 = vadd.f32 %v3449_v59, %v3367_v15  ;;  %v3451_v10 = vpop.f32.mrb[201].mxu0 }
 0x382   :  { %v3452_v63 = vadd.f32 %v3451_v10, %v3369_v12  ;;  %v3453_v3 = vpop.f32.mrb[202].mxu0 }
 0x383   :  { %3474 = vst [vmem:[%s6368_s5 + $0x80] sm:$0xff] %v3450_v60  ;;  %v3454_v18 = vadd.f32 %v3453_v3, %v3371_v30  ;;  %v3455_v47 = vpop.f32.mrb[203].mxu0 }
 0x384   :  { %3475 = vst [vmem:[%s6368_s5 + $0x88] sm:$0xff] %v3452_v63  ;;  %v3456_v9 = vadd.f32 %v3455_v47, %v3373_v27 }
 0x385   :  { %3476 = vst [vmem:[%s6368_s5 + $0x90] sm:$0xff] %v3454_v18 }
 0x386   :  { %3477 = vst [vmem:[%s6368_s5 + $0x98] sm:$0xff] %v3456_v9 }

</bundles_post_ra>
